<compile_context>
chip_gen: v5e
topology: v5e:2x2
jax: 0.10.0
libtpu: 0.0.40
codegen_flags: <defaults>
</compile_context>

<pallas_src>
import jax
import jax.numpy as jnp
from jax import lax
from jax.experimental import pallas as pl
from jax.experimental.pallas import tpu as pltpu

NSUB = 4            # fixed RK4 substeps per requested output interval
_MAX_UNROLL = 16    # max intervals statically unrolled per grid step
_LANE = 128
_SUBLANE = 8


def _ceil_to(x, m):
    return ((x + m - 1) // m) * m


def _make_solver_kernel(time_chunk, n_sub, T, D):
    def kernel(tab_ref, y0_ref, w1_ref, b1_ref, w2_ref, b2_ref, out_ref, y_state):
        # tab_ref: SMEM f32[3*T] = [dt/NSUB | dt/(2*NSUB) | dt/(6*NSUB)];
        #          entry 0 of each section is the (unused) initial-condition slot.
        # y0_ref:  VMEM f32[tn, D]              initial state for this traj tile
        # w1/b1/w2/b2: VMEM MLP params          loop invariant
        # out_ref: VMEM f32[tn, time_chunk*D]   lane-dense resident output block
        # y_state: VMEM f32[tn, D]              state carried across time chunks
        c = pl.program_id(1)            # time-chunk index (sequential)
        tn = y0_ref.shape[0]
        H = w1_ref.shape[1]

        # Loop-invariant loads / broadcasts, hoisted out of the
        # time_chunk * NSUB * 4 ode_f calls.
        w1 = w1_ref[...]
        w2 = w2_ref[...]
        b1 = jnp.broadcast_to(b1_ref[...], (tn, H))
        b2 = jnp.broadcast_to(b2_ref[...], (tn, D))

        def ode_f(y):
            # Dot operands may be bf16 (when the wrapper casts the weights);
            # accumulation and everything else stays f32.
            h = jnp.tanh(
                jnp.dot(y.astype(w1.dtype), w1,
                        preferred_element_type=jnp.float32) + b1)
            return jnp.dot(h.astype(w2.dtype), w2,
                           preferred_element_type=jnp.float32) + b2

        def rk4_interval(y, t):
            # Scalar SMEM reads; splat each to a vector ONCE per interval
            # (JAX does not CSE broadcast_in_dim across uses).
            dt_v = jnp.full(y.shape, tab_ref[t], jnp.float32)
            dth_v = jnp.full(y.shape, tab_ref[T + t], jnp.float32)
            dt6_v = jnp.full(y.shape, tab_ref[2 * T + t], jnp.float32)

            def substep(_, yy):
                k1 = ode_f(yy)
                k2 = ode_f(yy + dth_v * k1)
                k3 = ode_f(yy + dth_v * k2)
                k4 = ode_f(yy + dt_v * k3)
                # (k + k) instead of 2.0 * k avoids re-splatting constants.
                return yy + dt6_v * (k1 + (k2 + k2) + (k3 + k3) + k4)

            return lax.fori_loop(0, n_sub, substep, y, unroll=True)

        # ---- chunk entry: establish the state at time index c*time_chunk ---
        @pl.when(c == 0)
        def _():
            # odeint returns the initial condition at time_steps[0].
            y_state[...] = y0_ref[...].astype(jnp.float32)

        @pl.when(c > 0)
        def _():
            # First interval of this chunk (state comes from the scratch).
            y_state[...] = rk4_interval(y_state[...], c * time_chunk)

        # ---- body: carry y in registers, store lane-dense column slices ----
        y = y_state[...]
        out_ref[:, pl.ds(0, D)] = y.astype(out_ref.dtype)
        for j in range(1, time_chunk):          # bounded static unroll
            y = rk4_interval(y, c * time_chunk + j)
            out_ref[:, pl.ds(j * D, D)] = y.astype(out_ref.dtype)
        y_state[...] = y                        # one writeback per chunk

    return kernel


def diffeq_solver(first_point, time_steps, w1, b1, w2, b2, method="rk4",
                  time_chunk=None, traj_tile=None, num_cores=1,
                  use_bf16_matmul=False):
    """Pallas implementation of DiffeqSolver.forward.

    first_point: f32[S, B, D], time_steps: f32[T]  ->  f32[S, B, T, D]
    """
    assert method == "rk4", "only fixed-step rk4 is implemented"
    S, B, D = first_point.shape
    T = time_steps.shape[0]
    N = S * B
    H = w1.shape[1]

    # ---- time chunking: bounded unroll + lane-dense output columns --------
    if time_chunk is None:
        # Largest divisor of T that is <= _MAX_UNROLL intervals and whose
        # column width (time_chunk*D) is a multiple of 128 lanes.  Fall back
        # to the full T (a full-extent block is always legal).
        time_chunk = T
        for cand in range(min(T, _MAX_UNROLL), 0, -1):
            if T % cand == 0 and (cand * D) % _LANE == 0:
                time_chunk = cand
                break
    assert T % time_chunk == 0
    assert time_chunk == T or (time_chunk * D) % _LANE == 0, \
        "chunk columns must be lane-dense (multiple of 128) or the full T*D"
    n_chunks = T // time_chunk

    # ---- trajectory tiling ("parallel" axis; pass num_cores=2 on v7x) -----
    if traj_tile is None:
        traj_tile = N
        if num_cores > 1 and N % num_cores == 0 and (N // num_cores) % _SUBLANE == 0:
            traj_tile = N // num_cores
    assert N % traj_tile == 0
    assert traj_tile == N or traj_tile % _SUBLANE == 0, "(8,128) rule on N axis"
    n_traj_blocks = N // traj_tile

    y0 = first_point.reshape(N, D).astype(jnp.float32)
    ts = time_steps.astype(jnp.float32)

    # dt tables (already divided by NSUB); entry 0 of each section is the
    # (unused) initial-condition slot.  Flat SMEM layout: [dt | dt/2 | dt/6].
    dt_sub = jnp.concatenate(
        [jnp.zeros((1,), jnp.float32), (ts[1:] - ts[:-1]) / float(NSUB)])
    tab = jnp.concatenate([dt_sub, 0.5 * dt_sub, dt_sub / 6.0])

    w_dtype = jnp.bfloat16 if use_bf16_matmul else jnp.float32
    w1c = w1.astype(w_dtype)
    w2c = w2.astype(w_dtype)
    b1r = b1.reshape(1, H).astype(jnp.float32)
    b2r = b2.reshape(1, D).astype(jnp.float32)

    # ---- VMEM budget (raise the 32 MiB scoped default only when needed) ---
    w_item = jnp.dtype(w_dtype).itemsize

    def _blk(rows, cols, item):
        return _ceil_to(rows, _SUBLANE) * _ceil_to(cols, _LANE) * item

    est = (2 * _blk(traj_tile, time_chunk * D, 4)                  # out (x2 buf)
           + 2 * _blk(traj_tile, D, 4)                             # y0
           + 2 * (_blk(D, H, w_item) + _blk(H, D, w_item)
                  + _blk(1, H, 4) + _blk(1, D, 4))                 # params
           + _blk(traj_tile, D, 4))                                # y_state
    vmem_limit = None
    if est > (28 << 20):
        vmem_limit = int(min(est + (8 << 20), 96 << 20))

    out = pl.pallas_call(
        _make_solver_kernel(time_chunk, NSUB, T, D),
        out_shape=jax.ShapeDtypeStruct((N, T * D), jnp.float32),
        grid_spec=pltpu.PrefetchScalarGridSpec(
            num_scalar_prefetch=0,
            grid=(n_traj_blocks, n_chunks),
            in_specs=[
                pl.BlockSpec(memory_space=pltpu.MemorySpace.SMEM),   # dt tables
                pl.BlockSpec((traj_tile, D), lambda n, c: (n, 0)),   # y0
                pl.BlockSpec((D, H), lambda n, c: (0, 0)),           # W1
                pl.BlockSpec((1, H), lambda n, c: (0, 0)),           # b1
                pl.BlockSpec((H, D), lambda n, c: (0, 0)),           # W2
                pl.BlockSpec((1, D), lambda n, c: (0, 0)),           # b2
            ],
            out_specs=pl.BlockSpec((traj_tile, time_chunk * D),
                                   lambda n, c: (n, c)),
            scratch_shapes=[pltpu.VMEM((traj_tile, D), jnp.float32)],
        ),
        compiler_params=pltpu.CompilerParams(
            # trajectory tiles are independent; time chunks carry y_state.
            dimension_semantics=("parallel", "arbitrary"),
            vmem_limit_bytes=vmem_limit,
        ),
    )(tab, y0, w1c, b1r, w2c, b2r)

    # (N, T*D) -> (S, B, T, D) is a free, contiguous reshape (no transpose).
    return out.reshape(S, B, T, D)


# ----------------------- pure-JAX reference ---------------------------------
def _ref_solver(first_point, time_steps, w1, b1, w2, b2):
    S, B, D = first_point.shape
    T = time_steps.shape[0]
    y = first_point.reshape(S * B, D).astype(jnp.float32)

    def f(y):
        return jnp.tanh(y @ w1 + b1) @ w2 + b2

    outs = [y]
    for i in range(1, T):
        dt = (time_steps[i] - time_steps[i - 1]) / NSUB
        dt_half = 0.5 * dt
        dt_sixth = dt / 6.0
        for _ in range(NSUB):
            k1 = f(y)
            k2 = f(y + dt_half * k1)
            k3 = f(y + dt_half * k2)
            k4 = f(y + dt * k3)
            y = y + dt_sixth * (k1 + 2.0 * k2 + 2.0 * k3 + k4)
        outs.append(y)
    sol = jnp.stack(outs, axis=0).reshape(T, S, B, D)
    return jnp.transpose(sol, (1, 2, 0, 3))


if __name__ == "__main__":
    key = jax.random.PRNGKey(0)
    kfp, kw1, kb1, kw2, kb2 = jax.random.split(key, 5)

    S, B, D, H, T = 2, 4, 16, 32, 8  # n_traj_samples, n_traj, latent, hidden, times

    first_point = jax.random.normal(kfp, (S, B, D), dtype=jnp.float32)
    time_steps = jnp.linspace(0.0, 1.0, T, dtype=jnp.float32)

    # Deterministic ode_func parameters (gradient-net MLP: D -> H -> D).
    w1 = 0.2 * jax.random.normal(kw1, (D, H), dtype=jnp.float32)
    b1 = 0.1 * jax.random.normal(kb1, (H,), dtype=jnp.float32)
    w2 = 0.2 * jax.random.normal(kw2, (H, D), dtype=jnp.float32)
    b2 = 0.1 * jax.random.normal(kb2, (D,), dtype=jnp.float32)

    ref = _ref_solver(first_point, time_steps, w1, b1, w2, b2)

    # Exact-f32 path.
    sol = diffeq_solver(first_point, time_steps, w1, b1, w2, b2, method="rk4")
    sol = jax.block_until_ready(sol)
    assert sol.shape == (S, B, T, D), sol.shape
    assert jnp.allclose(sol, ref, rtol=1e-4, atol=1e-4), (
        float(jnp.max(jnp.abs(sol - ref))))

    # bf16 MXU-operand path (f32 accumulation + f32 RK4 combine math);
    # compared against the f32 reference with a looser tolerance.
    sol_bf16 = diffeq_solver(first_point, time_steps, w1, b1, w2, b2,
                             method="rk4", use_bf16_matmul=True)
    sol_bf16 = jax.block_until_ready(sol_bf16)
    assert sol_bf16.shape == (S, B, T, D), sol_bf16.shape
    assert jnp.allclose(sol_bf16, ref, rtol=0.0, atol=5e-2), (
        float(jnp.max(jnp.abs(sol_bf16 - ref))))

    print("KERNEL_OK")
</pallas_src>

<mosaic_0001>
module attributes {stable_mosaic.version = 11 : i64} {
  func.func @kernel(%arg0: i32, %arg1: i32, %arg2: memref<24xf32, #tpu.memory_space<smem>>, %arg3: memref<8x16xf32, #tpu.memory_space<vmem>>, %arg4: memref<16x32xf32, #tpu.memory_space<vmem>>, %arg5: memref<1x32xf32, #tpu.memory_space<vmem>>, %arg6: memref<32x16xf32, #tpu.memory_space<vmem>>, %arg7: memref<1x16xf32, #tpu.memory_space<vmem>>, %arg8: memref<8x128xf32, #tpu.memory_space<vmem>>, %arg9: memref<8x16xf32, #tpu.memory_space<vmem>>) attributes {dimension_semantics = [#tpu.dimension_semantics<parallel>, #tpu.dimension_semantics<arbitrary>], iteration_bounds = array<i64: 1, 1>, scalar_prefetch = 0 : i64, scratch_operands = 1 : i64, tpu.core_type = #tpu.core_type<tc>, window_params = [{transform_indices = @transform_0, window_bounds = array<i64: 24>}, {transform_indices = @transform_1, window_bounds = array<i64: 8, 16>}, {pipeline_mode = #tpu.pipeline_mode<synchronous>, transform_indices = @transform_2, window_bounds = array<i64: 16, 32>}, {pipeline_mode = #tpu.pipeline_mode<synchronous>, transform_indices = @transform_3, window_bounds = array<i64: 1, 32>}, {pipeline_mode = #tpu.pipeline_mode<synchronous>, transform_indices = @transform_4, window_bounds = array<i64: 32, 16>}, {pipeline_mode = #tpu.pipeline_mode<synchronous>, transform_indices = @transform_5, window_bounds = array<i64: 1, 16>}, {transform_indices = @transform_6, window_bounds = array<i64: 8, 128>}]} {
    %c0 = arith.constant 0 : index
    %c0_0 = arith.constant 0 : index
    %0 = vector.load %arg4[%c0, %c0_0] : memref<16x32xf32, #tpu.memory_space<vmem>>, vector<16x32xf32>
    %c0_1 = arith.constant 0 : index
    %c0_2 = arith.constant 0 : index
    %1 = vector.load %arg6[%c0_1, %c0_2] : memref<32x16xf32, #tpu.memory_space<vmem>>, vector<32x16xf32>
    %c0_3 = arith.constant 0 : index
    %c0_4 = arith.constant 0 : index
    %2 = vector.load %arg5[%c0_3, %c0_4] : memref<1x32xf32, #tpu.memory_space<vmem>>, vector<1x32xf32>
    %3 = vector.shape_cast %2 : vector<1x32xf32> to vector<1x32xf32>
    %4 = vector.broadcast %3 : vector<1x32xf32> to vector<8x32xf32>
    %c0_5 = arith.constant 0 : index
    %c0_6 = arith.constant 0 : index
    %5 = vector.load %arg7[%c0_5, %c0_6] : memref<1x16xf32, #tpu.memory_space<vmem>>, vector<1x16xf32>
    %6 = vector.shape_cast %5 : vector<1x16xf32> to vector<1x16xf32>
    %7 = vector.broadcast %6 : vector<1x16xf32> to vector<8x16xf32>
    %c0_i32 = arith.constant 0 : i32
    %8 = arith.cmpi eq, %arg1, %c0_i32 : i32
    %9 = arith.extui %8 : i1 to i32
    %c0_i32_7 = arith.constant 0 : i32
    %10 = arith.cmpi ne, %9, %c0_i32_7 : i32
    scf.if %10 {
      %c0_293 = arith.constant 0 : index
      %c0_294 = arith.constant 0 : index
      %1039 = vector.load %arg3[%c0_293, %c0_294] : memref<8x16xf32, #tpu.memory_space<vmem>>, vector<8x16xf32>
      %c0_295 = arith.constant 0 : index
      %c0_296 = arith.constant 0 : index
      %1040 = vector.load %arg9[%c0_295, %c0_296] : memref<8x16xf32, #tpu.memory_space<vmem>>, vector<8x16xf32>
      tpu.vector_store %arg9[%c0_295, %c0_296], %1039 {strides = array<i32>} : memref<8x16xf32, #tpu.memory_space<vmem>>, vector<8x16xf32>,
    } else {
    }
    %c0_i32_8 = arith.constant 0 : i32
    %11 = arith.cmpi sgt, %arg1, %c0_i32_8 : i32
    %12 = arith.extui %11 : i1 to i32
    %c0_i32_9 = arith.constant 0 : i32
    %13 = arith.cmpi ne, %12, %c0_i32_9 : i32
    scf.if %13 {
      %c0_293 = arith.constant 0 : index
      %c0_294 = arith.constant 0 : index
      %1039 = vector.load %arg9[%c0_293, %c0_294] : memref<8x16xf32, #tpu.memory_space<vmem>>, vector<8x16xf32>
      %c8_i32_295 = arith.constant 8 : i32
      %1040 = arith.muli %arg1, %c8_i32_295 : i32
      %1041 = arith.index_cast %1040 : i32 to index
      %1042 = memref.load %arg2[%1041] : memref<24xf32, #tpu.memory_space<smem>>
      %1043 = vector.broadcast %1042 : f32 to vector<8x16xf32>
      %c8_i32_296 = arith.constant 8 : i32
      %1044 = arith.addi %c8_i32_296, %1040 : i32
      %1045 = arith.index_cast %1044 : i32 to index
      %1046 = memref.load %arg2[%1045] : memref<24xf32, #tpu.memory_space<smem>>
      %1047 = vector.broadcast %1046 : f32 to vector<8x16xf32>
      %c16_i32_297 = arith.constant 16 : i32
      %1048 = arith.addi %c16_i32_297, %1040 : i32
      %1049 = arith.index_cast %1048 : i32 to index
      %1050 = memref.load %arg2[%1049] : memref<24xf32, #tpu.memory_space<smem>>
      %1051 = vector.broadcast %1050 : f32 to vector<8x16xf32>
      %c0_i32_298 = arith.constant 0 : i32
      %cst_299 = arith.constant dense<0.000000e+00> : vector<8x32xf32>
      %1052 = tpu.matmul %1039, %0, %cst_299 {dimension_numbers = #tpu.dot_dimension_numbers<[1], [0], [0], [1], [0, 0, 1, 1], [], []>} : vector<8x16xf32>, vector<16x32xf32>, vector<8x32xf32> -> vector<8x32xf32>
      %1053 = arith.addf %1052, %4 : vector<8x32xf32>
      %1054 = math.tanh %1053 : vector<8x32xf32>
      %cst_300 = arith.constant dense<0.000000e+00> : vector<8x16xf32>
      %1055 = tpu.matmul %1054, %1, %cst_300 {dimension_numbers = #tpu.dot_dimension_numbers<[1], [0], [0], [1], [0, 0, 1, 1], [], []>} : vector<8x32xf32>, vector<32x16xf32>, vector<8x16xf32> -> vector<8x16xf32>
      %1056 = arith.addf %1055, %7 : vector<8x16xf32>
      %1057 = arith.mulf %1047, %1056 : vector<8x16xf32>
      %1058 = arith.addf %1039, %1057 : vector<8x16xf32>
      %cst_301 = arith.constant dense<0.000000e+00> : vector<8x32xf32>
      %1059 = tpu.matmul %1058, %0, %cst_301 {dimension_numbers = #tpu.dot_dimension_numbers<[1], [0], [0], [1], [0, 0, 1, 1], [], []>} : vector<8x16xf32>, vector<16x32xf32>, vector<8x32xf32> -> vector<8x32xf32>
      %1060 = arith.addf %1059, %4 : vector<8x32xf32>
      %1061 = math.tanh %1060 : vector<8x32xf32>
      %cst_302 = arith.constant dense<0.000000e+00> : vector<8x16xf32>
      %1062 = tpu.matmul %1061, %1, %cst_302 {dimension_numbers = #tpu.dot_dimension_numbers<[1], [0], [0], [1], [0, 0, 1, 1], [], []>} : vector<8x32xf32>, vector<32x16xf32>, vector<8x16xf32> -> vector<8x16xf32>
      %1063 = arith.addf %1062, %7 : vector<8x16xf32>
      %1064 = arith.mulf %1047, %1063 : vector<8x16xf32>
      %1065 = arith.addf %1039, %1064 : vector<8x16xf32>
      %cst_303 = arith.constant dense<0.000000e+00> : vector<8x32xf32>
      %1066 = tpu.matmul %1065, %0, %cst_303 {dimension_numbers = #tpu.dot_dimension_numbers<[1], [0], [0], [1], [0, 0, 1, 1], [], []>} : vector<8x16xf32>, vector<16x32xf32>, vector<8x32xf32> -> vector<8x32xf32>
      %1067 = arith.addf %1066, %4 : vector<8x32xf32>
      %1068 = math.tanh %1067 : vector<8x32xf32>
      %cst_304 = arith.constant dense<0.000000e+00> : vector<8x16xf32>
      %1069 = tpu.matmul %1068, %1, %cst_304 {dimension_numbers = #tpu.dot_dimension_numbers<[1], [0], [0], [1], [0, 0, 1, 1], [], []>} : vector<8x32xf32>, vector<32x16xf32>, vector<8x16xf32> -> vector<8x16xf32>
      %1070 = arith.addf %1069, %7 : vector<8x16xf32>
      %1071 = arith.mulf %1043, %1070 : vector<8x16xf32>
      %1072 = arith.addf %1039, %1071 : vector<8x16xf32>
      %cst_305 = arith.constant dense<0.000000e+00> : vector<8x32xf32>
      %1073 = tpu.matmul %1072, %0, %cst_305 {dimension_numbers = #tpu.dot_dimension_numbers<[1], [0], [0], [1], [0, 0, 1, 1], [], []>} : vector<8x16xf32>, vector<16x32xf32>, vector<8x32xf32> -> vector<8x32xf32>
      %1074 = arith.addf %1073, %4 : vector<8x32xf32>
      %1075 = math.tanh %1074 : vector<8x32xf32>
      %cst_306 = arith.constant dense<0.000000e+00> : vector<8x16xf32>
      %1076 = tpu.matmul %1075, %1, %cst_306 {dimension_numbers = #tpu.dot_dimension_numbers<[1], [0], [0], [1], [0, 0, 1, 1], [], []>} : vector<8x32xf32>, vector<32x16xf32>, vector<8x16xf32> -> vector<8x16xf32>
      %1077 = arith.addf %1076, %7 : vector<8x16xf32>
      %1078 = arith.addf %1063, %1063 : vector<8x16xf32>
      %1079 = arith.addf %1056, %1078 : vector<8x16xf32>
      %1080 = arith.addf %1070, %1070 : vector<8x16xf32>
      %1081 = arith.addf %1079, %1080 : vector<8x16xf32>
      %1082 = arith.addf %1081, %1077 : vector<8x16xf32>
      %1083 = arith.mulf %1051, %1082 : vector<8x16xf32>
      %1084 = arith.addf %1039, %1083 : vector<8x16xf32>
      %c1_i32_307 = arith.constant 1 : i32
      %cst_308 = arith.constant dense<0.000000e+00> : vector<8x32xf32>
      %1085 = tpu.matmul %1084, %0, %cst_308 {dimension_numbers = #tpu.dot_dimension_numbers<[1], [0], [0], [1], [0, 0, 1, 1], [], []>} : vector<8x16xf32>, vector<16x32xf32>, vector<8x32xf32> -> vector<8x32xf32>
      %1086 = arith.addf %1085, %4 : vector<8x32xf32>
      %1087 = math.tanh %1086 : vector<8x32xf32>
      %cst_309 = arith.constant dense<0.000000e+00> : vector<8x16xf32>
      %1088 = tpu.matmul %1087, %1, %cst_309 {dimension_numbers = #tpu.dot_dimension_numbers<[1], [0], [0], [1], [0, 0, 1, 1], [], []>} : vector<8x32xf32>, vector<32x16xf32>, vector<8x16xf32> -> vector<8x16xf32>
      %1089 = arith.addf %1088, %7 : vector<8x16xf32>
      %1090 = arith.mulf %1047, %1089 : vector<8x16xf32>
      %1091 = arith.addf %1084, %1090 : vector<8x16xf32>
      %cst_310 = arith.constant dense<0.000000e+00> : vector<8x32xf32>
      %1092 = tpu.matmul %1091, %0, %cst_310 {dimension_numbers = #tpu.dot_dimension_numbers<[1], [0], [0], [1], [0, 0, 1, 1], [], []>} : vector<8x16xf32>, vector<16x32xf32>, vector<8x32xf32> -> vector<8x32xf32>
      %1093 = arith.addf %1092, %4 : vector<8x32xf32>
      %1094 = math.tanh %1093 : vector<8x32xf32>
      %cst_311 = arith.constant dense<0.000000e+00> : vector<8x16xf32>
      %1095 = tpu.matmul %1094, %1, %cst_311 {dimension_numbers = #tpu.dot_dimension_numbers<[1], [0], [0], [1], [0, 0, 1, 1], [], []>} : vector<8x32xf32>, vector<32x16xf32>, vector<8x16xf32> -> vector<8x16xf32>
      %1096 = arith.addf %1095, %7 : vector<8x16xf32>
      %1097 = arith.mulf %1047, %1096 : vector<8x16xf32>
      %1098 = arith.addf %1084, %1097 : vector<8x16xf32>
      %cst_312 = arith.constant dense<0.000000e+00> : vector<8x32xf32>
      %1099 = tpu.matmul %1098, %0, %cst_312 {dimension_numbers = #tpu.dot_dimension_numbers<[1], [0], [0], [1], [0, 0, 1, 1], [], []>} : vector<8x16xf32>, vector<16x32xf32>, vector<8x32xf32> -> vector<8x32xf32>
      %1100 = arith.addf %1099, %4 : vector<8x32xf32>
      %1101 = math.tanh %1100 : vector<8x32xf32>
      %cst_313 = arith.constant dense<0.000000e+00> : vector<8x16xf32>
      %1102 = tpu.matmul %1101, %1, %cst_313 {dimension_numbers = #tpu.dot_dimension_numbers<[1], [0], [0], [1], [0, 0, 1, 1], [], []>} : vector<8x32xf32>, vector<32x16xf32>, vector<8x16xf32> -> vector<8x16xf32>
      %1103 = arith.addf %1102, %7 : vector<8x16xf32>
      %1104 = arith.mulf %1043, %1103 : vector<8x16xf32>
      %1105 = arith.addf %1084, %1104 : vector<8x16xf32>
      %cst_314 = arith.constant dense<0.000000e+00> : vector<8x32xf32>
      %1106 = tpu.matmul %1105, %0, %cst_314 {dimension_numbers = #tpu.dot_dimension_numbers<[1], [0], [0], [1], [0, 0, 1, 1], [], []>} : vector<8x16xf32>, vector<16x32xf32>, vector<8x32xf32> -> vector<8x32xf32>
      %1107 = arith.addf %1106, %4 : vector<8x32xf32>
      %1108 = math.tanh %1107 : vector<8x32xf32>
      %cst_315 = arith.constant dense<0.000000e+00> : vector<8x16xf32>
      %1109 = tpu.matmul %1108, %1, %cst_315 {dimension_numbers = #tpu.dot_dimension_numbers<[1], [0], [0], [1], [0, 0, 1, 1], [], []>} : vector<8x32xf32>, vector<32x16xf32>, vector<8x16xf32> -> vector<8x16xf32>
      %1110 = arith.addf %1109, %7 : vector<8x16xf32>
      %1111 = arith.addf %1096, %1096 : vector<8x16xf32>
      %1112 = arith.addf %1089, %1111 : vector<8x16xf32>
      %1113 = arith.addf %1103, %1103 : vector<8x16xf32>
      %1114 = arith.addf %1112, %1113 : vector<8x16xf32>
      %1115 = arith.addf %1114, %1110 : vector<8x16xf32>
      %1116 = arith.mulf %1051, %1115 : vector<8x16xf32>
      %1117 = arith.addf %1084, %1116 : vector<8x16xf32>
      %c2_i32_316 = arith.constant 2 : i32
      %cst_317 = arith.constant dense<0.000000e+00> : vector<8x32xf32>
      %1118 = tpu.matmul %1117, %0, %cst_317 {dimension_numbers = #tpu.dot_dimension_numbers<[1], [0], [0], [1], [0, 0, 1, 1], [], []>} : vector<8x16xf32>, vector<16x32xf32>, vector<8x32xf32> -> vector<8x32xf32>
      %1119 = arith.addf %1118, %4 : vector<8x32xf32>
      %1120 = math.tanh %1119 : vector<8x32xf32>
      %cst_318 = arith.constant dense<0.000000e+00> : vector<8x16xf32>
      %1121 = tpu.matmul %1120, %1, %cst_318 {dimension_numbers = #tpu.dot_dimension_numbers<[1], [0], [0], [1], [0, 0, 1, 1], [], []>} : vector<8x32xf32>, vector<32x16xf32>, vector<8x16xf32> -> vector<8x16xf32>
      %1122 = arith.addf %1121, %7 : vector<8x16xf32>
      %1123 = arith.mulf %1047, %1122 : vector<8x16xf32>
      %1124 = arith.addf %1117, %1123 : vector<8x16xf32>
      %cst_319 = arith.constant dense<0.000000e+00> : vector<8x32xf32>
      %1125 = tpu.matmul %1124, %0, %cst_319 {dimension_numbers = #tpu.dot_dimension_numbers<[1], [0], [0], [1], [0, 0, 1, 1], [], []>} : vector<8x16xf32>, vector<16x32xf32>, vector<8x32xf32> -> vector<8x32xf32>
      %1126 = arith.addf %1125, %4 : vector<8x32xf32>
      %1127 = math.tanh %1126 : vector<8x32xf32>
      %cst_320 = arith.constant dense<0.000000e+00> : vector<8x16xf32>
      %1128 = tpu.matmul %1127, %1, %cst_320 {dimension_numbers = #tpu.dot_dimension_numbers<[1], [0], [0], [1], [0, 0, 1, 1], [], []>} : vector<8x32xf32>, vector<32x16xf32>, vector<8x16xf32> -> vector<8x16xf32>
      %1129 = arith.addf %1128, %7 : vector<8x16xf32>
      %1130 = arith.mulf %1047, %1129 : vector<8x16xf32>
      %1131 = arith.addf %1117, %1130 : vector<8x16xf32>
      %cst_321 = arith.constant dense<0.000000e+00> : vector<8x32xf32>
      %1132 = tpu.matmul %1131, %0, %cst_321 {dimension_numbers = #tpu.dot_dimension_numbers<[1], [0], [0], [1], [0, 0, 1, 1], [], []>} : vector<8x16xf32>, vector<16x32xf32>, vector<8x32xf32> -> vector<8x32xf32>
      %1133 = arith.addf %1132, %4 : vector<8x32xf32>
      %1134 = math.tanh %1133 : vector<8x32xf32>
      %cst_322 = arith.constant dense<0.000000e+00> : vector<8x16xf32>
      %1135 = tpu.matmul %1134, %1, %cst_322 {dimension_numbers = #tpu.dot_dimension_numbers<[1], [0], [0], [1], [0, 0, 1, 1], [], []>} : vector<8x32xf32>, vector<32x16xf32>, vector<8x16xf32> -> vector<8x16xf32>
      %1136 = arith.addf %1135, %7 : vector<8x16xf32>
      %1137 = arith.mulf %1043, %1136 : vector<8x16xf32>
      %1138 = arith.addf %1117, %1137 : vector<8x16xf32>
      %cst_323 = arith.constant dense<0.000000e+00> : vector<8x32xf32>
      %1139 = tpu.matmul %1138, %0, %cst_323 {dimension_numbers = #tpu.dot_dimension_numbers<[1], [0], [0], [1], [0, 0, 1, 1], [], []>} : vector<8x16xf32>, vector<16x32xf32>, vector<8x32xf32> -> vector<8x32xf32>
      %1140 = arith.addf %1139, %4 : vector<8x32xf32>
      %1141 = math.tanh %1140 : vector<8x32xf32>
      %cst_324 = arith.constant dense<0.000000e+00> : vector<8x16xf32>
      %1142 = tpu.matmul %1141, %1, %cst_324 {dimension_numbers = #tpu.dot_dimension_numbers<[1], [0], [0], [1], [0, 0, 1, 1], [], []>} : vector<8x32xf32>, vector<32x16xf32>, vector<8x16xf32> -> vector<8x16xf32>
      %1143 = arith.addf %1142, %7 : vector<8x16xf32>
      %1144 = arith.addf %1129, %1129 : vector<8x16xf32>
      %1145 = arith.addf %1122, %1144 : vector<8x16xf32>
      %1146 = arith.addf %1136, %1136 : vector<8x16xf32>
      %1147 = arith.addf %1145, %1146 : vector<8x16xf32>
      %1148 = arith.addf %1147, %1143 : vector<8x16xf32>
      %1149 = arith.mulf %1051, %1148 : vector<8x16xf32>
      %1150 = arith.addf %1117, %1149 : vector<8x16xf32>
      %c3_i32_325 = arith.constant 3 : i32
      %cst_326 = arith.constant dense<0.000000e+00> : vector<8x32xf32>
      %1151 = tpu.matmul %1150, %0, %cst_326 {dimension_numbers = #tpu.dot_dimension_numbers<[1], [0], [0], [1], [0, 0, 1, 1], [], []>} : vector<8x16xf32>, vector<16x32xf32>, vector<8x32xf32> -> vector<8x32xf32>
      %1152 = arith.addf %1151, %4 : vector<8x32xf32>
      %1153 = math.tanh %1152 : vector<8x32xf32>
      %cst_327 = arith.constant dense<0.000000e+00> : vector<8x16xf32>
      %1154 = tpu.matmul %1153, %1, %cst_327 {dimension_numbers = #tpu.dot_dimension_numbers<[1], [0], [0], [1], [0, 0, 1, 1], [], []>} : vector<8x32xf32>, vector<32x16xf32>, vector<8x16xf32> -> vector<8x16xf32>
      %1155 = arith.addf %1154, %7 : vector<8x16xf32>
      %1156 = arith.mulf %1047, %1155 : vector<8x16xf32>
      %1157 = arith.addf %1150, %1156 : vector<8x16xf32>
      %cst_328 = arith.constant dense<0.000000e+00> : vector<8x32xf32>
      %1158 = tpu.matmul %1157, %0, %cst_328 {dimension_numbers = #tpu.dot_dimension_numbers<[1], [0], [0], [1], [0, 0, 1, 1], [], []>} : vector<8x16xf32>, vector<16x32xf32>, vector<8x32xf32> -> vector<8x32xf32>
      %1159 = arith.addf %1158, %4 : vector<8x32xf32>
      %1160 = math.tanh %1159 : vector<8x32xf32>
      %cst_329 = arith.constant dense<0.000000e+00> : vector<8x16xf32>
      %1161 = tpu.matmul %1160, %1, %cst_329 {dimension_numbers = #tpu.dot_dimension_numbers<[1], [0], [0], [1], [0, 0, 1, 1], [], []>} : vector<8x32xf32>, vector<32x16xf32>, vector<8x16xf32> -> vector<8x16xf32>
      %1162 = arith.addf %1161, %7 : vector<8x16xf32>
      %1163 = arith.mulf %1047, %1162 : vector<8x16xf32>
      %1164 = arith.addf %1150, %1163 : vector<8x16xf32>
      %cst_330 = arith.constant dense<0.000000e+00> : vector<8x32xf32>
      %1165 = tpu.matmul %1164, %0, %cst_330 {dimension_numbers = #tpu.dot_dimension_numbers<[1], [0], [0], [1], [0, 0, 1, 1], [], []>} : vector<8x16xf32>, vector<16x32xf32>, vector<8x32xf32> -> vector<8x32xf32>
      %1166 = arith.addf %1165, %4 : vector<8x32xf32>
      %1167 = math.tanh %1166 : vector<8x32xf32>
      %cst_331 = arith.constant dense<0.000000e+00> : vector<8x16xf32>
      %1168 = tpu.matmul %1167, %1, %cst_331 {dimension_numbers = #tpu.dot_dimension_numbers<[1], [0], [0], [1], [0, 0, 1, 1], [], []>} : vector<8x32xf32>, vector<32x16xf32>, vector<8x16xf32> -> vector<8x16xf32>
      %1169 = arith.addf %1168, %7 : vector<8x16xf32>
      %1170 = arith.mulf %1043, %1169 : vector<8x16xf32>
      %1171 = arith.addf %1150, %1170 : vector<8x16xf32>
      %cst_332 = arith.constant dense<0.000000e+00> : vector<8x32xf32>
      %1172 = tpu.matmul %1171, %0, %cst_332 {dimension_numbers = #tpu.dot_dimension_numbers<[1], [0], [0], [1], [0, 0, 1, 1], [], []>} : vector<8x16xf32>, vector<16x32xf32>, vector<8x32xf32> -> vector<8x32xf32>
      %1173 = arith.addf %1172, %4 : vector<8x32xf32>
      %1174 = math.tanh %1173 : vector<8x32xf32>
      %cst_333 = arith.constant dense<0.000000e+00> : vector<8x16xf32>
      %1175 = tpu.matmul %1174, %1, %cst_333 {dimension_numbers = #tpu.dot_dimension_numbers<[1], [0], [0], [1], [0, 0, 1, 1], [], []>} : vector<8x32xf32>, vector<32x16xf32>, vector<8x16xf32> -> vector<8x16xf32>
      %1176 = arith.addf %1175, %7 : vector<8x16xf32>
      %1177 = arith.addf %1162, %1162 : vector<8x16xf32>
      %1178 = arith.addf %1155, %1177 : vector<8x16xf32>
      %1179 = arith.addf %1169, %1169 : vector<8x16xf32>
      %1180 = arith.addf %1178, %1179 : vector<8x16xf32>
      %1181 = arith.addf %1180, %1176 : vector<8x16xf32>
      %1182 = arith.mulf %1051, %1181 : vector<8x16xf32>
      %1183 = arith.addf %1150, %1182 : vector<8x16xf32>
      %c0_334 = arith.constant 0 : index
      %c0_335 = arith.constant 0 : index
      %1184 = vector.load %arg9[%c0_334, %c0_335] : memref<8x16xf32, #tpu.memory_space<vmem>>, vector<8x16xf32>
      tpu.vector_store %arg9[%c0_334, %c0_335], %1183 {strides = array<i32>} : memref<8x16xf32, #tpu.memory_space<vmem>>, vector<8x16xf32>,
    } else {
    }
    %c0_10 = arith.constant 0 : index
    %c0_11 = arith.constant 0 : index
    %14 = vector.load %arg9[%c0_10, %c0_11] : memref<8x16xf32, #tpu.memory_space<vmem>>, vector<8x16xf32>
    %c0_12 = arith.constant 0 : index
    %c0_13 = arith.constant 0 : index
    %15 = vector.load %arg8[%c0_12, %c0_13] : memref<8x128xf32, #tpu.memory_space<vmem>>, vector<8x16xf32>
    tpu.vector_store %arg8[%c0_12, %c0_13], %14 {strides = array<i32>} : memref<8x128xf32, #tpu.memory_space<vmem>>, vector<8x16xf32>,
    %c8_i32 = arith.constant 8 : i32
    %16 = arith.muli %arg1, %c8_i32 : i32
    %c1_i32 = arith.constant 1 : i32
    %17 = arith.addi %16, %c1_i32 : i32
    %18 = arith.index_cast %17 : i32 to index
    %19 = memref.load %arg2[%18] : memref<24xf32, #tpu.memory_space<smem>>
    %20 = vector.broadcast %19 : f32 to vector<8x16xf32>
    %c8_i32_14 = arith.constant 8 : i32
    %21 = arith.addi %c8_i32_14, %17 : i32
    %22 = arith.index_cast %21 : i32 to index
    %23 = memref.load %arg2[%22] : memref<24xf32, #tpu.memory_space<smem>>
    %24 = vector.broadcast %23 : f32 to vector<8x16xf32>
    %c16_i32 = arith.constant 16 : i32
    %25 = arith.addi %c16_i32, %17 : i32
    %26 = arith.index_cast %25 : i32 to index
    %27 = memref.load %arg2[%26] : memref<24xf32, #tpu.memory_space<smem>>
    %28 = vector.broadcast %27 : f32 to vector<8x16xf32>
    %c0_i32_15 = arith.constant 0 : i32
    %cst = arith.constant dense<0.000000e+00> : vector<8x32xf32>
    %29 = tpu.matmul %14, %0, %cst {dimension_numbers = #tpu.dot_dimension_numbers<[1], [0], [0], [1], [0, 0, 1, 1], [], []>} : vector<8x16xf32>, vector<16x32xf32>, vector<8x32xf32> -> vector<8x32xf32>
    %30 = arith.addf %29, %4 : vector<8x32xf32>
    %31 = math.tanh %30 : vector<8x32xf32>
    %cst_16 = arith.constant dense<0.000000e+00> : vector<8x16xf32>
    %32 = tpu.matmul %31, %1, %cst_16 {dimension_numbers = #tpu.dot_dimension_numbers<[1], [0], [0], [1], [0, 0, 1, 1], [], []>} : vector<8x32xf32>, vector<32x16xf32>, vector<8x16xf32> -> vector<8x16xf32>
    %33 = arith.addf %32, %7 : vector<8x16xf32>
    %34 = arith.mulf %24, %33 : vector<8x16xf32>
    %35 = arith.addf %14, %34 : vector<8x16xf32>
    %cst_17 = arith.constant dense<0.000000e+00> : vector<8x32xf32>
    %36 = tpu.matmul %35, %0, %cst_17 {dimension_numbers = #tpu.dot_dimension_numbers<[1], [0], [0], [1], [0, 0, 1, 1], [], []>} : vector<8x16xf32>, vector<16x32xf32>, vector<8x32xf32> -> vector<8x32xf32>
    %37 = arith.addf %36, %4 : vector<8x32xf32>
    %38 = math.tanh %37 : vector<8x32xf32>
    %cst_18 = arith.constant dense<0.000000e+00> : vector<8x16xf32>
    %39 = tpu.matmul %38, %1, %cst_18 {dimension_numbers = #tpu.dot_dimension_numbers<[1], [0], [0], [1], [0, 0, 1, 1], [], []>} : vector<8x32xf32>, vector<32x16xf32>, vector<8x16xf32> -> vector<8x16xf32>
    %40 = arith.addf %39, %7 : vector<8x16xf32>
    %41 = arith.mulf %24, %40 : vector<8x16xf32>
    %42 = arith.addf %14, %41 : vector<8x16xf32>
    %cst_19 = arith.constant dense<0.000000e+00> : vector<8x32xf32>
    %43 = tpu.matmul %42, %0, %cst_19 {dimension_numbers = #tpu.dot_dimension_numbers<[1], [0], [0], [1], [0, 0, 1, 1], [], []>} : vector<8x16xf32>, vector<16x32xf32>, vector<8x32xf32> -> vector<8x32xf32>
    %44 = arith.addf %43, %4 : vector<8x32xf32>
    %45 = math.tanh %44 : vector<8x32xf32>
    %cst_20 = arith.constant dense<0.000000e+00> : vector<8x16xf32>
    %46 = tpu.matmul %45, %1, %cst_20 {dimension_numbers = #tpu.dot_dimension_numbers<[1], [0], [0], [1], [0, 0, 1, 1], [], []>} : vector<8x32xf32>, vector<32x16xf32>, vector<8x16xf32> -> vector<8x16xf32>
    %47 = arith.addf %46, %7 : vector<8x16xf32>
    %48 = arith.mulf %20, %47 : vector<8x16xf32>
    %49 = arith.addf %14, %48 : vector<8x16xf32>
    %cst_21 = arith.constant dense<0.000000e+00> : vector<8x32xf32>
    %50 = tpu.matmul %49, %0, %cst_21 {dimension_numbers = #tpu.dot_dimension_numbers<[1], [0], [0], [1], [0, 0, 1, 1], [], []>} : vector<8x16xf32>, vector<16x32xf32>, vector<8x32xf32> -> vector<8x32xf32>
    %51 = arith.addf %50, %4 : vector<8x32xf32>
    %52 = math.tanh %51 : vector<8x32xf32>
    %cst_22 = arith.constant dense<0.000000e+00> : vector<8x16xf32>
    %53 = tpu.matmul %52, %1, %cst_22 {dimension_numbers = #tpu.dot_dimension_numbers<[1], [0], [0], [1], [0, 0, 1, 1], [], []>} : vector<8x32xf32>, vector<32x16xf32>, vector<8x16xf32> -> vector<8x16xf32>
    %54 = arith.addf %53, %7 : vector<8x16xf32>
    %55 = arith.addf %40, %40 : vector<8x16xf32>
    %56 = arith.addf %33, %55 : vector<8x16xf32>
    %57 = arith.addf %47, %47 : vector<8x16xf32>
    %58 = arith.addf %56, %57 : vector<8x16xf32>
    %59 = arith.addf %58, %54 : vector<8x16xf32>
    %60 = arith.mulf %28, %59 : vector<8x16xf32>
    %61 = arith.addf %14, %60 : vector<8x16xf32>
    %c1_i32_23 = arith.constant 1 : i32
    %cst_24 = arith.constant dense<0.000000e+00> : vector<8x32xf32>
    %62 = tpu.matmul %61, %0, %cst_24 {dimension_numbers = #tpu.dot_dimension_numbers<[1], [0], [0], [1], [0, 0, 1, 1], [], []>} : vector<8x16xf32>, vector<16x32xf32>, vector<8x32xf32> -> vector<8x32xf32>
    %63 = arith.addf %62, %4 : vector<8x32xf32>
    %64 = math.tanh %63 : vector<8x32xf32>
    %cst_25 = arith.constant dense<0.000000e+00> : vector<8x16xf32>
    %65 = tpu.matmul %64, %1, %cst_25 {dimension_numbers = #tpu.dot_dimension_numbers<[1], [0], [0], [1], [0, 0, 1, 1], [], []>} : vector<8x32xf32>, vector<32x16xf32>, vector<8x16xf32> -> vector<8x16xf32>
    %66 = arith.addf %65, %7 : vector<8x16xf32>
    %67 = arith.mulf %24, %66 : vector<8x16xf32>
    %68 = arith.addf %61, %67 : vector<8x16xf32>
    %cst_26 = arith.constant dense<0.000000e+00> : vector<8x32xf32>
    %69 = tpu.matmul %68, %0, %cst_26 {dimension_numbers = #tpu.dot_dimension_numbers<[1], [0], [0], [1], [0, 0, 1, 1], [], []>} : vector<8x16xf32>, vector<16x32xf32>, vector<8x32xf32> -> vector<8x32xf32>
    %70 = arith.addf %69, %4 : vector<8x32xf32>
    %71 = math.tanh %70 : vector<8x32xf32>
    %cst_27 = arith.constant dense<0.000000e+00> : vector<8x16xf32>
    %72 = tpu.matmul %71, %1, %cst_27 {dimension_numbers = #tpu.dot_dimension_numbers<[1], [0], [0], [1], [0, 0, 1, 1], [], []>} : vector<8x32xf32>, vector<32x16xf32>, vector<8x16xf32> -> vector<8x16xf32>
    %73 = arith.addf %72, %7 : vector<8x16xf32>
    %74 = arith.mulf %24, %73 : vector<8x16xf32>
    %75 = arith.addf %61, %74 : vector<8x16xf32>
    %cst_28 = arith.constant dense<0.000000e+00> : vector<8x32xf32>
    %76 = tpu.matmul %75, %0, %cst_28 {dimension_numbers = #tpu.dot_dimension_numbers<[1], [0], [0], [1], [0, 0, 1, 1], [], []>} : vector<8x16xf32>, vector<16x32xf32>, vector<8x32xf32> -> vector<8x32xf32>
    %77 = arith.addf %76, %4 : vector<8x32xf32>
    %78 = math.tanh %77 : vector<8x32xf32>
    %cst_29 = arith.constant dense<0.000000e+00> : vector<8x16xf32>
    %79 = tpu.matmul %78, %1, %cst_29 {dimension_numbers = #tpu.dot_dimension_numbers<[1], [0], [0], [1], [0, 0, 1, 1], [], []>} : vector<8x32xf32>, vector<32x16xf32>, vector<8x16xf32> -> vector<8x16xf32>
    %80 = arith.addf %79, %7 : vector<8x16xf32>
    %81 = arith.mulf %20, %80 : vector<8x16xf32>
    %82 = arith.addf %61, %81 : vector<8x16xf32>
    %cst_30 = arith.constant dense<0.000000e+00> : vector<8x32xf32>
    %83 = tpu.matmul %82, %0, %cst_30 {dimension_numbers = #tpu.dot_dimension_numbers<[1], [0], [0], [1], [0, 0, 1, 1], [], []>} : vector<8x16xf32>, vector<16x32xf32>, vector<8x32xf32> -> vector<8x32xf32>
    %84 = arith.addf %83, %4 : vector<8x32xf32>
    %85 = math.tanh %84 : vector<8x32xf32>
    %cst_31 = arith.constant dense<0.000000e+00> : vector<8x16xf32>
    %86 = tpu.matmul %85, %1, %cst_31 {dimension_numbers = #tpu.dot_dimension_numbers<[1], [0], [0], [1], [0, 0, 1, 1], [], []>} : vector<8x32xf32>, vector<32x16xf32>, vector<8x16xf32> -> vector<8x16xf32>
    %87 = arith.addf %86, %7 : vector<8x16xf32>
    %88 = arith.addf %73, %73 : vector<8x16xf32>
    %89 = arith.addf %66, %88 : vector<8x16xf32>
    %90 = arith.addf %80, %80 : vector<8x16xf32>
    %91 = arith.addf %89, %90 : vector<8x16xf32>
    %92 = arith.addf %91, %87 : vector<8x16xf32>
    %93 = arith.mulf %28, %92 : vector<8x16xf32>
    %94 = arith.addf %61, %93 : vector<8x16xf32>
    %c2_i32 = arith.constant 2 : i32
    %cst_32 = arith.constant dense<0.000000e+00> : vector<8x32xf32>
    %95 = tpu.matmul %94, %0, %cst_32 {dimension_numbers = #tpu.dot_dimension_numbers<[1], [0], [0], [1], [0, 0, 1, 1], [], []>} : vector<8x16xf32>, vector<16x32xf32>, vector<8x32xf32> -> vector<8x32xf32>
    %96 = arith.addf %95, %4 : vector<8x32xf32>
    %97 = math.tanh %96 : vector<8x32xf32>
    %cst_33 = arith.constant dense<0.000000e+00> : vector<8x16xf32>
    %98 = tpu.matmul %97, %1, %cst_33 {dimension_numbers = #tpu.dot_dimension_numbers<[1], [0], [0], [1], [0, 0, 1, 1], [], []>} : vector<8x32xf32>, vector<32x16xf32>, vector<8x16xf32> -> vector<8x16xf32>
    %99 = arith.addf %98, %7 : vector<8x16xf32>
    %100 = arith.mulf %24, %99 : vector<8x16xf32>
    %101 = arith.addf %94, %100 : vector<8x16xf32>
    %cst_34 = arith.constant dense<0.000000e+00> : vector<8x32xf32>
    %102 = tpu.matmul %101, %0, %cst_34 {dimension_numbers = #tpu.dot_dimension_numbers<[1], [0], [0], [1], [0, 0, 1, 1], [], []>} : vector<8x16xf32>, vector<16x32xf32>, vector<8x32xf32> -> vector<8x32xf32>
    %103 = arith.addf %102, %4 : vector<8x32xf32>
    %104 = math.tanh %103 : vector<8x32xf32>
    %cst_35 = arith.constant dense<0.000000e+00> : vector<8x16xf32>
    %105 = tpu.matmul %104, %1, %cst_35 {dimension_numbers = #tpu.dot_dimension_numbers<[1], [0], [0], [1], [0, 0, 1, 1], [], []>} : vector<8x32xf32>, vector<32x16xf32>, vector<8x16xf32> -> vector<8x16xf32>
    %106 = arith.addf %105, %7 : vector<8x16xf32>
    %107 = arith.mulf %24, %106 : vector<8x16xf32>
    %108 = arith.addf %94, %107 : vector<8x16xf32>
    %cst_36 = arith.constant dense<0.000000e+00> : vector<8x32xf32>
    %109 = tpu.matmul %108, %0, %cst_36 {dimension_numbers = #tpu.dot_dimension_numbers<[1], [0], [0], [1], [0, 0, 1, 1], [], []>} : vector<8x16xf32>, vector<16x32xf32>, vector<8x32xf32> -> vector<8x32xf32>
    %110 = arith.addf %109, %4 : vector<8x32xf32>
    %111 = math.tanh %110 : vector<8x32xf32>
    %cst_37 = arith.constant dense<0.000000e+00> : vector<8x16xf32>
    %112 = tpu.matmul %111, %1, %cst_37 {dimension_numbers = #tpu.dot_dimension_numbers<[1], [0], [0], [1], [0, 0, 1, 1], [], []>} : vector<8x32xf32>, vector<32x16xf32>, vector<8x16xf32> -> vector<8x16xf32>
    %113 = arith.addf %112, %7 : vector<8x16xf32>
    %114 = arith.mulf %20, %113 : vector<8x16xf32>
    %115 = arith.addf %94, %114 : vector<8x16xf32>
    %cst_38 = arith.constant dense<0.000000e+00> : vector<8x32xf32>
    %116 = tpu.matmul %115, %0, %cst_38 {dimension_numbers = #tpu.dot_dimension_numbers<[1], [0], [0], [1], [0, 0, 1, 1], [], []>} : vector<8x16xf32>, vector<16x32xf32>, vector<8x32xf32> -> vector<8x32xf32>
    %117 = arith.addf %116, %4 : vector<8x32xf32>
    %118 = math.tanh %117 : vector<8x32xf32>
    %cst_39 = arith.constant dense<0.000000e+00> : vector<8x16xf32>
    %119 = tpu.matmul %118, %1, %cst_39 {dimension_numbers = #tpu.dot_dimension_numbers<[1], [0], [0], [1], [0, 0, 1, 1], [], []>} : vector<8x32xf32>, vector<32x16xf32>, vector<8x16xf32> -> vector<8x16xf32>
    %120 = arith.addf %119, %7 : vector<8x16xf32>
    %121 = arith.addf %106, %106 : vector<8x16xf32>
    %122 = arith.addf %99, %121 : vector<8x16xf32>
    %123 = arith.addf %113, %113 : vector<8x16xf32>
    %124 = arith.addf %122, %123 : vector<8x16xf32>
    %125 = arith.addf %124, %120 : vector<8x16xf32>
    %126 = arith.mulf %28, %125 : vector<8x16xf32>
    %127 = arith.addf %94, %126 : vector<8x16xf32>
    %c3_i32 = arith.constant 3 : i32
    %cst_40 = arith.constant dense<0.000000e+00> : vector<8x32xf32>
    %128 = tpu.matmul %127, %0, %cst_40 {dimension_numbers = #tpu.dot_dimension_numbers<[1], [0], [0], [1], [0, 0, 1, 1], [], []>} : vector<8x16xf32>, vector<16x32xf32>, vector<8x32xf32> -> vector<8x32xf32>
    %129 = arith.addf %128, %4 : vector<8x32xf32>
    %130 = math.tanh %129 : vector<8x32xf32>
    %cst_41 = arith.constant dense<0.000000e+00> : vector<8x16xf32>
    %131 = tpu.matmul %130, %1, %cst_41 {dimension_numbers = #tpu.dot_dimension_numbers<[1], [0], [0], [1], [0, 0, 1, 1], [], []>} : vector<8x32xf32>, vector<32x16xf32>, vector<8x16xf32> -> vector<8x16xf32>
    %132 = arith.addf %131, %7 : vector<8x16xf32>
    %133 = arith.mulf %24, %132 : vector<8x16xf32>
    %134 = arith.addf %127, %133 : vector<8x16xf32>
    %cst_42 = arith.constant dense<0.000000e+00> : vector<8x32xf32>
    %135 = tpu.matmul %134, %0, %cst_42 {dimension_numbers = #tpu.dot_dimension_numbers<[1], [0], [0], [1], [0, 0, 1, 1], [], []>} : vector<8x16xf32>, vector<16x32xf32>, vector<8x32xf32> -> vector<8x32xf32>
    %136 = arith.addf %135, %4 : vector<8x32xf32>
    %137 = math.tanh %136 : vector<8x32xf32>
    %cst_43 = arith.constant dense<0.000000e+00> : vector<8x16xf32>
    %138 = tpu.matmul %137, %1, %cst_43 {dimension_numbers = #tpu.dot_dimension_numbers<[1], [0], [0], [1], [0, 0, 1, 1], [], []>} : vector<8x32xf32>, vector<32x16xf32>, vector<8x16xf32> -> vector<8x16xf32>
    %139 = arith.addf %138, %7 : vector<8x16xf32>
    %140 = arith.mulf %24, %139 : vector<8x16xf32>
    %141 = arith.addf %127, %140 : vector<8x16xf32>
    %cst_44 = arith.constant dense<0.000000e+00> : vector<8x32xf32>
    %142 = tpu.matmul %141, %0, %cst_44 {dimension_numbers = #tpu.dot_dimension_numbers<[1], [0], [0], [1], [0, 0, 1, 1], [], []>} : vector<8x16xf32>, vector<16x32xf32>, vector<8x32xf32> -> vector<8x32xf32>
    %143 = arith.addf %142, %4 : vector<8x32xf32>
    %144 = math.tanh %143 : vector<8x32xf32>
    %cst_45 = arith.constant dense<0.000000e+00> : vector<8x16xf32>
    %145 = tpu.matmul %144, %1, %cst_45 {dimension_numbers = #tpu.dot_dimension_numbers<[1], [0], [0], [1], [0, 0, 1, 1], [], []>} : vector<8x32xf32>, vector<32x16xf32>, vector<8x16xf32> -> vector<8x16xf32>
    %146 = arith.addf %145, %7 : vector<8x16xf32>
    %147 = arith.mulf %20, %146 : vector<8x16xf32>
    %148 = arith.addf %127, %147 : vector<8x16xf32>
    %cst_46 = arith.constant dense<0.000000e+00> : vector<8x32xf32>
    %149 = tpu.matmul %148, %0, %cst_46 {dimension_numbers = #tpu.dot_dimension_numbers<[1], [0], [0], [1], [0, 0, 1, 1], [], []>} : vector<8x16xf32>, vector<16x32xf32>, vector<8x32xf32> -> vector<8x32xf32>
    %150 = arith.addf %149, %4 : vector<8x32xf32>
    %151 = math.tanh %150 : vector<8x32xf32>
    %cst_47 = arith.constant dense<0.000000e+00> : vector<8x16xf32>
    %152 = tpu.matmul %151, %1, %cst_47 {dimension_numbers = #tpu.dot_dimension_numbers<[1], [0], [0], [1], [0, 0, 1, 1], [], []>} : vector<8x32xf32>, vector<32x16xf32>, vector<8x16xf32> -> vector<8x16xf32>
    %153 = arith.addf %152, %7 : vector<8x16xf32>
    %154 = arith.addf %139, %139 : vector<8x16xf32>
    %155 = arith.addf %132, %154 : vector<8x16xf32>
    %156 = arith.addf %146, %146 : vector<8x16xf32>
    %157 = arith.addf %155, %156 : vector<8x16xf32>
    %158 = arith.addf %157, %153 : vector<8x16xf32>
    %159 = arith.mulf %28, %158 : vector<8x16xf32>
    %160 = arith.addf %127, %159 : vector<8x16xf32>
    %c0_48 = arith.constant 0 : index
    %c16 = arith.constant 16 : index
    %161 = vector.load %arg8[%c0_48, %c16] : memref<8x128xf32, #tpu.memory_space<vmem>>, vector<8x16xf32>
    tpu.vector_store %arg8[%c0_48, %c16], %160 {strides = array<i32>} : memref<8x128xf32, #tpu.memory_space<vmem>>, vector<8x16xf32>,
    %c8_i32_49 = arith.constant 8 : i32
    %162 = arith.muli %arg1, %c8_i32_49 : i32
    %c2_i32_50 = arith.constant 2 : i32
    %163 = arith.addi %162, %c2_i32_50 : i32
    %164 = arith.index_cast %163 : i32 to index
    %165 = memref.load %arg2[%164] : memref<24xf32, #tpu.memory_space<smem>>
    %166 = vector.broadcast %165 : f32 to vector<8x16xf32>
    %c8_i32_51 = arith.constant 8 : i32
    %167 = arith.addi %c8_i32_51, %163 : i32
    %168 = arith.index_cast %167 : i32 to index
    %169 = memref.load %arg2[%168] : memref<24xf32, #tpu.memory_space<smem>>
    %170 = vector.broadcast %169 : f32 to vector<8x16xf32>
    %c16_i32_52 = arith.constant 16 : i32
    %171 = arith.addi %c16_i32_52, %163 : i32
    %172 = arith.index_cast %171 : i32 to index
    %173 = memref.load %arg2[%172] : memref<24xf32, #tpu.memory_space<smem>>
    %174 = vector.broadcast %173 : f32 to vector<8x16xf32>
    %c0_i32_53 = arith.constant 0 : i32
    %cst_54 = arith.constant dense<0.000000e+00> : vector<8x32xf32>
    %175 = tpu.matmul %160, %0, %cst_54 {dimension_numbers = #tpu.dot_dimension_numbers<[1], [0], [0], [1], [0, 0, 1, 1], [], []>} : vector<8x16xf32>, vector<16x32xf32>, vector<8x32xf32> -> vector<8x32xf32>
    %176 = arith.addf %175, %4 : vector<8x32xf32>
    %177 = math.tanh %176 : vector<8x32xf32>
    %cst_55 = arith.constant dense<0.000000e+00> : vector<8x16xf32>
    %178 = tpu.matmul %177, %1, %cst_55 {dimension_numbers = #tpu.dot_dimension_numbers<[1], [0], [0], [1], [0, 0, 1, 1], [], []>} : vector<8x32xf32>, vector<32x16xf32>, vector<8x16xf32> -> vector<8x16xf32>
    %179 = arith.addf %178, %7 : vector<8x16xf32>
    %180 = arith.mulf %170, %179 : vector<8x16xf32>
    %181 = arith.addf %160, %180 : vector<8x16xf32>
    %cst_56 = arith.constant dense<0.000000e+00> : vector<8x32xf32>
    %182 = tpu.matmul %181, %0, %cst_56 {dimension_numbers = #tpu.dot_dimension_numbers<[1], [0], [0], [1], [0, 0, 1, 1], [], []>} : vector<8x16xf32>, vector<16x32xf32>, vector<8x32xf32> -> vector<8x32xf32>
    %183 = arith.addf %182, %4 : vector<8x32xf32>
    %184 = math.tanh %183 : vector<8x32xf32>
    %cst_57 = arith.constant dense<0.000000e+00> : vector<8x16xf32>
    %185 = tpu.matmul %184, %1, %cst_57 {dimension_numbers = #tpu.dot_dimension_numbers<[1], [0], [0], [1], [0, 0, 1, 1], [], []>} : vector<8x32xf32>, vector<32x16xf32>, vector<8x16xf32> -> vector<8x16xf32>
    %186 = arith.addf %185, %7 : vector<8x16xf32>
    %187 = arith.mulf %170, %186 : vector<8x16xf32>
    %188 = arith.addf %160, %187 : vector<8x16xf32>
    %cst_58 = arith.constant dense<0.000000e+00> : vector<8x32xf32>
    %189 = tpu.matmul %188, %0, %cst_58 {dimension_numbers = #tpu.dot_dimension_numbers<[1], [0], [0], [1], [0, 0, 1, 1], [], []>} : vector<8x16xf32>, vector<16x32xf32>, vector<8x32xf32> -> vector<8x32xf32>
    %190 = arith.addf %189, %4 : vector<8x32xf32>
    %191 = math.tanh %190 : vector<8x32xf32>
    %cst_59 = arith.constant dense<0.000000e+00> : vector<8x16xf32>
    %192 = tpu.matmul %191, %1, %cst_59 {dimension_numbers = #tpu.dot_dimension_numbers<[1], [0], [0], [1], [0, 0, 1, 1], [], []>} : vector<8x32xf32>, vector<32x16xf32>, vector<8x16xf32> -> vector<8x16xf32>
    %193 = arith.addf %192, %7 : vector<8x16xf32>
    %194 = arith.mulf %166, %193 : vector<8x16xf32>
    %195 = arith.addf %160, %194 : vector<8x16xf32>
    %cst_60 = arith.constant dense<0.000000e+00> : vector<8x32xf32>
    %196 = tpu.matmul %195, %0, %cst_60 {dimension_numbers = #tpu.dot_dimension_numbers<[1], [0], [0], [1], [0, 0, 1, 1], [], []>} : vector<8x16xf32>, vector<16x32xf32>, vector<8x32xf32> -> vector<8x32xf32>
    %197 = arith.addf %196, %4 : vector<8x32xf32>
    %198 = math.tanh %197 : vector<8x32xf32>
    %cst_61 = arith.constant dense<0.000000e+00> : vector<8x16xf32>
    %199 = tpu.matmul %198, %1, %cst_61 {dimension_numbers = #tpu.dot_dimension_numbers<[1], [0], [0], [1], [0, 0, 1, 1], [], []>} : vector<8x32xf32>, vector<32x16xf32>, vector<8x16xf32> -> vector<8x16xf32>
    %200 = arith.addf %199, %7 : vector<8x16xf32>
    %201 = arith.addf %186, %186 : vector<8x16xf32>
    %202 = arith.addf %179, %201 : vector<8x16xf32>
    %203 = arith.addf %193, %193 : vector<8x16xf32>
    %204 = arith.addf %202, %203 : vector<8x16xf32>
    %205 = arith.addf %204, %200 : vector<8x16xf32>
    %206 = arith.mulf %174, %205 : vector<8x16xf32>
    %207 = arith.addf %160, %206 : vector<8x16xf32>
    %c1_i32_62 = arith.constant 1 : i32
    %cst_63 = arith.constant dense<0.000000e+00> : vector<8x32xf32>
    %208 = tpu.matmul %207, %0, %cst_63 {dimension_numbers = #tpu.dot_dimension_numbers<[1], [0], [0], [1], [0, 0, 1, 1], [], []>} : vector<8x16xf32>, vector<16x32xf32>, vector<8x32xf32> -> vector<8x32xf32>
    %209 = arith.addf %208, %4 : vector<8x32xf32>
    %210 = math.tanh %209 : vector<8x32xf32>
    %cst_64 = arith.constant dense<0.000000e+00> : vector<8x16xf32>
    %211 = tpu.matmul %210, %1, %cst_64 {dimension_numbers = #tpu.dot_dimension_numbers<[1], [0], [0], [1], [0, 0, 1, 1], [], []>} : vector<8x32xf32>, vector<32x16xf32>, vector<8x16xf32> -> vector<8x16xf32>
    %212 = arith.addf %211, %7 : vector<8x16xf32>
    %213 = arith.mulf %170, %212 : vector<8x16xf32>
    %214 = arith.addf %207, %213 : vector<8x16xf32>
    %cst_65 = arith.constant dense<0.000000e+00> : vector<8x32xf32>
    %215 = tpu.matmul %214, %0, %cst_65 {dimension_numbers = #tpu.dot_dimension_numbers<[1], [0], [0], [1], [0, 0, 1, 1], [], []>} : vector<8x16xf32>, vector<16x32xf32>, vector<8x32xf32> -> vector<8x32xf32>
    %216 = arith.addf %215, %4 : vector<8x32xf32>
    %217 = math.tanh %216 : vector<8x32xf32>
    %cst_66 = arith.constant dense<0.000000e+00> : vector<8x16xf32>
    %218 = tpu.matmul %217, %1, %cst_66 {dimension_numbers = #tpu.dot_dimension_numbers<[1], [0], [0], [1], [0, 0, 1, 1], [], []>} : vector<8x32xf32>, vector<32x16xf32>, vector<8x16xf32> -> vector<8x16xf32>
    %219 = arith.addf %218, %7 : vector<8x16xf32>
    %220 = arith.mulf %170, %219 : vector<8x16xf32>
    %221 = arith.addf %207, %220 : vector<8x16xf32>
    %cst_67 = arith.constant dense<0.000000e+00> : vector<8x32xf32>
    %222 = tpu.matmul %221, %0, %cst_67 {dimension_numbers = #tpu.dot_dimension_numbers<[1], [0], [0], [1], [0, 0, 1, 1], [], []>} : vector<8x16xf32>, vector<16x32xf32>, vector<8x32xf32> -> vector<8x32xf32>
    %223 = arith.addf %222, %4 : vector<8x32xf32>
    %224 = math.tanh %223 : vector<8x32xf32>
    %cst_68 = arith.constant dense<0.000000e+00> : vector<8x16xf32>
    %225 = tpu.matmul %224, %1, %cst_68 {dimension_numbers = #tpu.dot_dimension_numbers<[1], [0], [0], [1], [0, 0, 1, 1], [], []>} : vector<8x32xf32>, vector<32x16xf32>, vector<8x16xf32> -> vector<8x16xf32>
    %226 = arith.addf %225, %7 : vector<8x16xf32>
    %227 = arith.mulf %166, %226 : vector<8x16xf32>
    %228 = arith.addf %207, %227 : vector<8x16xf32>
    %cst_69 = arith.constant dense<0.000000e+00> : vector<8x32xf32>
    %229 = tpu.matmul %228, %0, %cst_69 {dimension_numbers = #tpu.dot_dimension_numbers<[1], [0], [0], [1], [0, 0, 1, 1], [], []>} : vector<8x16xf32>, vector<16x32xf32>, vector<8x32xf32> -> vector<8x32xf32>
    %230 = arith.addf %229, %4 : vector<8x32xf32>
    %231 = math.tanh %230 : vector<8x32xf32>
    %cst_70 = arith.constant dense<0.000000e+00> : vector<8x16xf32>
    %232 = tpu.matmul %231, %1, %cst_70 {dimension_numbers = #tpu.dot_dimension_numbers<[1], [0], [0], [1], [0, 0, 1, 1], [], []>} : vector<8x32xf32>, vector<32x16xf32>, vector<8x16xf32> -> vector<8x16xf32>
    %233 = arith.addf %232, %7 : vector<8x16xf32>
    %234 = arith.addf %219, %219 : vector<8x16xf32>
    %235 = arith.addf %212, %234 : vector<8x16xf32>
    %236 = arith.addf %226, %226 : vector<8x16xf32>
    %237 = arith.addf %235, %236 : vector<8x16xf32>
    %238 = arith.addf %237, %233 : vector<8x16xf32>
    %239 = arith.mulf %174, %238 : vector<8x16xf32>
    %240 = arith.addf %207, %239 : vector<8x16xf32>
    %c2_i32_71 = arith.constant 2 : i32
    %cst_72 = arith.constant dense<0.000000e+00> : vector<8x32xf32>
    %241 = tpu.matmul %240, %0, %cst_72 {dimension_numbers = #tpu.dot_dimension_numbers<[1], [0], [0], [1], [0, 0, 1, 1], [], []>} : vector<8x16xf32>, vector<16x32xf32>, vector<8x32xf32> -> vector<8x32xf32>
    %242 = arith.addf %241, %4 : vector<8x32xf32>
    %243 = math.tanh %242 : vector<8x32xf32>
    %cst_73 = arith.constant dense<0.000000e+00> : vector<8x16xf32>
    %244 = tpu.matmul %243, %1, %cst_73 {dimension_numbers = #tpu.dot_dimension_numbers<[1], [0], [0], [1], [0, 0, 1, 1], [], []>} : vector<8x32xf32>, vector<32x16xf32>, vector<8x16xf32> -> vector<8x16xf32>
    %245 = arith.addf %244, %7 : vector<8x16xf32>
    %246 = arith.mulf %170, %245 : vector<8x16xf32>
    %247 = arith.addf %240, %246 : vector<8x16xf32>
    %cst_74 = arith.constant dense<0.000000e+00> : vector<8x32xf32>
    %248 = tpu.matmul %247, %0, %cst_74 {dimension_numbers = #tpu.dot_dimension_numbers<[1], [0], [0], [1], [0, 0, 1, 1], [], []>} : vector<8x16xf32>, vector<16x32xf32>, vector<8x32xf32> -> vector<8x32xf32>
    %249 = arith.addf %248, %4 : vector<8x32xf32>
    %250 = math.tanh %249 : vector<8x32xf32>
    %cst_75 = arith.constant dense<0.000000e+00> : vector<8x16xf32>
    %251 = tpu.matmul %250, %1, %cst_75 {dimension_numbers = #tpu.dot_dimension_numbers<[1], [0], [0], [1], [0, 0, 1, 1], [], []>} : vector<8x32xf32>, vector<32x16xf32>, vector<8x16xf32> -> vector<8x16xf32>
    %252 = arith.addf %251, %7 : vector<8x16xf32>
    %253 = arith.mulf %170, %252 : vector<8x16xf32>
    %254 = arith.addf %240, %253 : vector<8x16xf32>
    %cst_76 = arith.constant dense<0.000000e+00> : vector<8x32xf32>
    %255 = tpu.matmul %254, %0, %cst_76 {dimension_numbers = #tpu.dot_dimension_numbers<[1], [0], [0], [1], [0, 0, 1, 1], [], []>} : vector<8x16xf32>, vector<16x32xf32>, vector<8x32xf32> -> vector<8x32xf32>
    %256 = arith.addf %255, %4 : vector<8x32xf32>
    %257 = math.tanh %256 : vector<8x32xf32>
    %cst_77 = arith.constant dense<0.000000e+00> : vector<8x16xf32>
    %258 = tpu.matmul %257, %1, %cst_77 {dimension_numbers = #tpu.dot_dimension_numbers<[1], [0], [0], [1], [0, 0, 1, 1], [], []>} : vector<8x32xf32>, vector<32x16xf32>, vector<8x16xf32> -> vector<8x16xf32>
    %259 = arith.addf %258, %7 : vector<8x16xf32>
    %260 = arith.mulf %166, %259 : vector<8x16xf32>
    %261 = arith.addf %240, %260 : vector<8x16xf32>
    %cst_78 = arith.constant dense<0.000000e+00> : vector<8x32xf32>
    %262 = tpu.matmul %261, %0, %cst_78 {dimension_numbers = #tpu.dot_dimension_numbers<[1], [0], [0], [1], [0, 0, 1, 1], [], []>} : vector<8x16xf32>, vector<16x32xf32>, vector<8x32xf32> -> vector<8x32xf32>
    %263 = arith.addf %262, %4 : vector<8x32xf32>
    %264 = math.tanh %263 : vector<8x32xf32>
    %cst_79 = arith.constant dense<0.000000e+00> : vector<8x16xf32>
    %265 = tpu.matmul %264, %1, %cst_79 {dimension_numbers = #tpu.dot_dimension_numbers<[1], [0], [0], [1], [0, 0, 1, 1], [], []>} : vector<8x32xf32>, vector<32x16xf32>, vector<8x16xf32> -> vector<8x16xf32>
    %266 = arith.addf %265, %7 : vector<8x16xf32>
    %267 = arith.addf %252, %252 : vector<8x16xf32>
    %268 = arith.addf %245, %267 : vector<8x16xf32>
    %269 = arith.addf %259, %259 : vector<8x16xf32>
    %270 = arith.addf %268, %269 : vector<8x16xf32>
    %271 = arith.addf %270, %266 : vector<8x16xf32>
    %272 = arith.mulf %174, %271 : vector<8x16xf32>
    %273 = arith.addf %240, %272 : vector<8x16xf32>
    %c3_i32_80 = arith.constant 3 : i32
    %cst_81 = arith.constant dense<0.000000e+00> : vector<8x32xf32>
    %274 = tpu.matmul %273, %0, %cst_81 {dimension_numbers = #tpu.dot_dimension_numbers<[1], [0], [0], [1], [0, 0, 1, 1], [], []>} : vector<8x16xf32>, vector<16x32xf32>, vector<8x32xf32> -> vector<8x32xf32>
    %275 = arith.addf %274, %4 : vector<8x32xf32>
    %276 = math.tanh %275 : vector<8x32xf32>
    %cst_82 = arith.constant dense<0.000000e+00> : vector<8x16xf32>
    %277 = tpu.matmul %276, %1, %cst_82 {dimension_numbers = #tpu.dot_dimension_numbers<[1], [0], [0], [1], [0, 0, 1, 1], [], []>} : vector<8x32xf32>, vector<32x16xf32>, vector<8x16xf32> -> vector<8x16xf32>
    %278 = arith.addf %277, %7 : vector<8x16xf32>
    %279 = arith.mulf %170, %278 : vector<8x16xf32>
    %280 = arith.addf %273, %279 : vector<8x16xf32>
    %cst_83 = arith.constant dense<0.000000e+00> : vector<8x32xf32>
    %281 = tpu.matmul %280, %0, %cst_83 {dimension_numbers = #tpu.dot_dimension_numbers<[1], [0], [0], [1], [0, 0, 1, 1], [], []>} : vector<8x16xf32>, vector<16x32xf32>, vector<8x32xf32> -> vector<8x32xf32>
    %282 = arith.addf %281, %4 : vector<8x32xf32>
    %283 = math.tanh %282 : vector<8x32xf32>
    %cst_84 = arith.constant dense<0.000000e+00> : vector<8x16xf32>
    %284 = tpu.matmul %283, %1, %cst_84 {dimension_numbers = #tpu.dot_dimension_numbers<[1], [0], [0], [1], [0, 0, 1, 1], [], []>} : vector<8x32xf32>, vector<32x16xf32>, vector<8x16xf32> -> vector<8x16xf32>
    %285 = arith.addf %284, %7 : vector<8x16xf32>
    %286 = arith.mulf %170, %285 : vector<8x16xf32>
    %287 = arith.addf %273, %286 : vector<8x16xf32>
    %cst_85 = arith.constant dense<0.000000e+00> : vector<8x32xf32>
    %288 = tpu.matmul %287, %0, %cst_85 {dimension_numbers = #tpu.dot_dimension_numbers<[1], [0], [0], [1], [0, 0, 1, 1], [], []>} : vector<8x16xf32>, vector<16x32xf32>, vector<8x32xf32> -> vector<8x32xf32>
    %289 = arith.addf %288, %4 : vector<8x32xf32>
    %290 = math.tanh %289 : vector<8x32xf32>
    %cst_86 = arith.constant dense<0.000000e+00> : vector<8x16xf32>
    %291 = tpu.matmul %290, %1, %cst_86 {dimension_numbers = #tpu.dot_dimension_numbers<[1], [0], [0], [1], [0, 0, 1, 1], [], []>} : vector<8x32xf32>, vector<32x16xf32>, vector<8x16xf32> -> vector<8x16xf32>
    %292 = arith.addf %291, %7 : vector<8x16xf32>
    %293 = arith.mulf %166, %292 : vector<8x16xf32>
    %294 = arith.addf %273, %293 : vector<8x16xf32>
    %cst_87 = arith.constant dense<0.000000e+00> : vector<8x32xf32>
    %295 = tpu.matmul %294, %0, %cst_87 {dimension_numbers = #tpu.dot_dimension_numbers<[1], [0], [0], [1], [0, 0, 1, 1], [], []>} : vector<8x16xf32>, vector<16x32xf32>, vector<8x32xf32> -> vector<8x32xf32>
    %296 = arith.addf %295, %4 : vector<8x32xf32>
    %297 = math.tanh %296 : vector<8x32xf32>
    %cst_88 = arith.constant dense<0.000000e+00> : vector<8x16xf32>
    %298 = tpu.matmul %297, %1, %cst_88 {dimension_numbers = #tpu.dot_dimension_numbers<[1], [0], [0], [1], [0, 0, 1, 1], [], []>} : vector<8x32xf32>, vector<32x16xf32>, vector<8x16xf32> -> vector<8x16xf32>
    %299 = arith.addf %298, %7 : vector<8x16xf32>
    %300 = arith.addf %285, %285 : vector<8x16xf32>
    %301 = arith.addf %278, %300 : vector<8x16xf32>
    %302 = arith.addf %292, %292 : vector<8x16xf32>
    %303 = arith.addf %301, %302 : vector<8x16xf32>
    %304 = arith.addf %303, %299 : vector<8x16xf32>
    %305 = arith.mulf %174, %304 : vector<8x16xf32>
    %306 = arith.addf %273, %305 : vector<8x16xf32>
    %c0_89 = arith.constant 0 : index
    %c32 = arith.constant 32 : index
    %307 = vector.load %arg8[%c0_89, %c32] : memref<8x128xf32, #tpu.memory_space<vmem>>, vector<8x16xf32>
    tpu.vector_store %arg8[%c0_89, %c32], %306 {strides = array<i32>} : memref<8x128xf32, #tpu.memory_space<vmem>>, vector<8x16xf32>,
    %c8_i32_90 = arith.constant 8 : i32
    %308 = arith.muli %arg1, %c8_i32_90 : i32
    %c3_i32_91 = arith.constant 3 : i32
    %309 = arith.addi %308, %c3_i32_91 : i32
    %310 = arith.index_cast %309 : i32 to index
    %311 = memref.load %arg2[%310] : memref<24xf32, #tpu.memory_space<smem>>
    %312 = vector.broadcast %311 : f32 to vector<8x16xf32>
    %c8_i32_92 = arith.constant 8 : i32
    %313 = arith.addi %c8_i32_92, %309 : i32
    %314 = arith.index_cast %313 : i32 to index
    %315 = memref.load %arg2[%314] : memref<24xf32, #tpu.memory_space<smem>>
    %316 = vector.broadcast %315 : f32 to vector<8x16xf32>
    %c16_i32_93 = arith.constant 16 : i32
    %317 = arith.addi %c16_i32_93, %309 : i32
    %318 = arith.index_cast %317 : i32 to index
    %319 = memref.load %arg2[%318] : memref<24xf32, #tpu.memory_space<smem>>
    %320 = vector.broadcast %319 : f32 to vector<8x16xf32>
    %c0_i32_94 = arith.constant 0 : i32
    %cst_95 = arith.constant dense<0.000000e+00> : vector<8x32xf32>
    %321 = tpu.matmul %306, %0, %cst_95 {dimension_numbers = #tpu.dot_dimension_numbers<[1], [0], [0], [1], [0, 0, 1, 1], [], []>} : vector<8x16xf32>, vector<16x32xf32>, vector<8x32xf32> -> vector<8x32xf32>
    %322 = arith.addf %321, %4 : vector<8x32xf32>
    %323 = math.tanh %322 : vector<8x32xf32>
    %cst_96 = arith.constant dense<0.000000e+00> : vector<8x16xf32>
    %324 = tpu.matmul %323, %1, %cst_96 {dimension_numbers = #tpu.dot_dimension_numbers<[1], [0], [0], [1], [0, 0, 1, 1], [], []>} : vector<8x32xf32>, vector<32x16xf32>, vector<8x16xf32> -> vector<8x16xf32>
    %325 = arith.addf %324, %7 : vector<8x16xf32>
    %326 = arith.mulf %316, %325 : vector<8x16xf32>
    %327 = arith.addf %306, %326 : vector<8x16xf32>
    %cst_97 = arith.constant dense<0.000000e+00> : vector<8x32xf32>
    %328 = tpu.matmul %327, %0, %cst_97 {dimension_numbers = #tpu.dot_dimension_numbers<[1], [0], [0], [1], [0, 0, 1, 1], [], []>} : vector<8x16xf32>, vector<16x32xf32>, vector<8x32xf32> -> vector<8x32xf32>
    %329 = arith.addf %328, %4 : vector<8x32xf32>
    %330 = math.tanh %329 : vector<8x32xf32>
    %cst_98 = arith.constant dense<0.000000e+00> : vector<8x16xf32>
    %331 = tpu.matmul %330, %1, %cst_98 {dimension_numbers = #tpu.dot_dimension_numbers<[1], [0], [0], [1], [0, 0, 1, 1], [], []>} : vector<8x32xf32>, vector<32x16xf32>, vector<8x16xf32> -> vector<8x16xf32>
    %332 = arith.addf %331, %7 : vector<8x16xf32>
    %333 = arith.mulf %316, %332 : vector<8x16xf32>
    %334 = arith.addf %306, %333 : vector<8x16xf32>
    %cst_99 = arith.constant dense<0.000000e+00> : vector<8x32xf32>
    %335 = tpu.matmul %334, %0, %cst_99 {dimension_numbers = #tpu.dot_dimension_numbers<[1], [0], [0], [1], [0, 0, 1, 1], [], []>} : vector<8x16xf32>, vector<16x32xf32>, vector<8x32xf32> -> vector<8x32xf32>
    %336 = arith.addf %335, %4 : vector<8x32xf32>
    %337 = math.tanh %336 : vector<8x32xf32>
    %cst_100 = arith.constant dense<0.000000e+00> : vector<8x16xf32>
    %338 = tpu.matmul %337, %1, %cst_100 {dimension_numbers = #tpu.dot_dimension_numbers<[1], [0], [0], [1], [0, 0, 1, 1], [], []>} : vector<8x32xf32>, vector<32x16xf32>, vector<8x16xf32> -> vector<8x16xf32>
    %339 = arith.addf %338, %7 : vector<8x16xf32>
    %340 = arith.mulf %312, %339 : vector<8x16xf32>
    %341 = arith.addf %306, %340 : vector<8x16xf32>
    %cst_101 = arith.constant dense<0.000000e+00> : vector<8x32xf32>
    %342 = tpu.matmul %341, %0, %cst_101 {dimension_numbers = #tpu.dot_dimension_numbers<[1], [0], [0], [1], [0, 0, 1, 1], [], []>} : vector<8x16xf32>, vector<16x32xf32>, vector<8x32xf32> -> vector<8x32xf32>
    %343 = arith.addf %342, %4 : vector<8x32xf32>
    %344 = math.tanh %343 : vector<8x32xf32>
    %cst_102 = arith.constant dense<0.000000e+00> : vector<8x16xf32>
    %345 = tpu.matmul %344, %1, %cst_102 {dimension_numbers = #tpu.dot_dimension_numbers<[1], [0], [0], [1], [0, 0, 1, 1], [], []>} : vector<8x32xf32>, vector<32x16xf32>, vector<8x16xf32> -> vector<8x16xf32>
    %346 = arith.addf %345, %7 : vector<8x16xf32>
    %347 = arith.addf %332, %332 : vector<8x16xf32>
    %348 = arith.addf %325, %347 : vector<8x16xf32>
    %349 = arith.addf %339, %339 : vector<8x16xf32>
    %350 = arith.addf %348, %349 : vector<8x16xf32>
    %351 = arith.addf %350, %346 : vector<8x16xf32>
    %352 = arith.mulf %320, %351 : vector<8x16xf32>
    %353 = arith.addf %306, %352 : vector<8x16xf32>
    %c1_i32_103 = arith.constant 1 : i32
    %cst_104 = arith.constant dense<0.000000e+00> : vector<8x32xf32>
    %354 = tpu.matmul %353, %0, %cst_104 {dimension_numbers = #tpu.dot_dimension_numbers<[1], [0], [0], [1], [0, 0, 1, 1], [], []>} : vector<8x16xf32>, vector<16x32xf32>, vector<8x32xf32> -> vector<8x32xf32>
    %355 = arith.addf %354, %4 : vector<8x32xf32>
    %356 = math.tanh %355 : vector<8x32xf32>
    %cst_105 = arith.constant dense<0.000000e+00> : vector<8x16xf32>
    %357 = tpu.matmul %356, %1, %cst_105 {dimension_numbers = #tpu.dot_dimension_numbers<[1], [0], [0], [1], [0, 0, 1, 1], [], []>} : vector<8x32xf32>, vector<32x16xf32>, vector<8x16xf32> -> vector<8x16xf32>
    %358 = arith.addf %357, %7 : vector<8x16xf32>
    %359 = arith.mulf %316, %358 : vector<8x16xf32>
    %360 = arith.addf %353, %359 : vector<8x16xf32>
    %cst_106 = arith.constant dense<0.000000e+00> : vector<8x32xf32>
    %361 = tpu.matmul %360, %0, %cst_106 {dimension_numbers = #tpu.dot_dimension_numbers<[1], [0], [0], [1], [0, 0, 1, 1], [], []>} : vector<8x16xf32>, vector<16x32xf32>, vector<8x32xf32> -> vector<8x32xf32>
    %362 = arith.addf %361, %4 : vector<8x32xf32>
    %363 = math.tanh %362 : vector<8x32xf32>
    %cst_107 = arith.constant dense<0.000000e+00> : vector<8x16xf32>
    %364 = tpu.matmul %363, %1, %cst_107 {dimension_numbers = #tpu.dot_dimension_numbers<[1], [0], [0], [1], [0, 0, 1, 1], [], []>} : vector<8x32xf32>, vector<32x16xf32>, vector<8x16xf32> -> vector<8x16xf32>
    %365 = arith.addf %364, %7 : vector<8x16xf32>
    %366 = arith.mulf %316, %365 : vector<8x16xf32>
    %367 = arith.addf %353, %366 : vector<8x16xf32>
    %cst_108 = arith.constant dense<0.000000e+00> : vector<8x32xf32>
    %368 = tpu.matmul %367, %0, %cst_108 {dimension_numbers = #tpu.dot_dimension_numbers<[1], [0], [0], [1], [0, 0, 1, 1], [], []>} : vector<8x16xf32>, vector<16x32xf32>, vector<8x32xf32> -> vector<8x32xf32>
    %369 = arith.addf %368, %4 : vector<8x32xf32>
    %370 = math.tanh %369 : vector<8x32xf32>
    %cst_109 = arith.constant dense<0.000000e+00> : vector<8x16xf32>
    %371 = tpu.matmul %370, %1, %cst_109 {dimension_numbers = #tpu.dot_dimension_numbers<[1], [0], [0], [1], [0, 0, 1, 1], [], []>} : vector<8x32xf32>, vector<32x16xf32>, vector<8x16xf32> -> vector<8x16xf32>
    %372 = arith.addf %371, %7 : vector<8x16xf32>
    %373 = arith.mulf %312, %372 : vector<8x16xf32>
    %374 = arith.addf %353, %373 : vector<8x16xf32>
    %cst_110 = arith.constant dense<0.000000e+00> : vector<8x32xf32>
    %375 = tpu.matmul %374, %0, %cst_110 {dimension_numbers = #tpu.dot_dimension_numbers<[1], [0], [0], [1], [0, 0, 1, 1], [], []>} : vector<8x16xf32>, vector<16x32xf32>, vector<8x32xf32> -> vector<8x32xf32>
    %376 = arith.addf %375, %4 : vector<8x32xf32>
    %377 = math.tanh %376 : vector<8x32xf32>
    %cst_111 = arith.constant dense<0.000000e+00> : vector<8x16xf32>
    %378 = tpu.matmul %377, %1, %cst_111 {dimension_numbers = #tpu.dot_dimension_numbers<[1], [0], [0], [1], [0, 0, 1, 1], [], []>} : vector<8x32xf32>, vector<32x16xf32>, vector<8x16xf32> -> vector<8x16xf32>
    %379 = arith.addf %378, %7 : vector<8x16xf32>
    %380 = arith.addf %365, %365 : vector<8x16xf32>
    %381 = arith.addf %358, %380 : vector<8x16xf32>
    %382 = arith.addf %372, %372 : vector<8x16xf32>
    %383 = arith.addf %381, %382 : vector<8x16xf32>
    %384 = arith.addf %383, %379 : vector<8x16xf32>
    %385 = arith.mulf %320, %384 : vector<8x16xf32>
    %386 = arith.addf %353, %385 : vector<8x16xf32>
    %c2_i32_112 = arith.constant 2 : i32
    %cst_113 = arith.constant dense<0.000000e+00> : vector<8x32xf32>
    %387 = tpu.matmul %386, %0, %cst_113 {dimension_numbers = #tpu.dot_dimension_numbers<[1], [0], [0], [1], [0, 0, 1, 1], [], []>} : vector<8x16xf32>, vector<16x32xf32>, vector<8x32xf32> -> vector<8x32xf32>
    %388 = arith.addf %387, %4 : vector<8x32xf32>
    %389 = math.tanh %388 : vector<8x32xf32>
    %cst_114 = arith.constant dense<0.000000e+00> : vector<8x16xf32>
    %390 = tpu.matmul %389, %1, %cst_114 {dimension_numbers = #tpu.dot_dimension_numbers<[1], [0], [0], [1], [0, 0, 1, 1], [], []>} : vector<8x32xf32>, vector<32x16xf32>, vector<8x16xf32> -> vector<8x16xf32>
    %391 = arith.addf %390, %7 : vector<8x16xf32>
    %392 = arith.mulf %316, %391 : vector<8x16xf32>
    %393 = arith.addf %386, %392 : vector<8x16xf32>
    %cst_115 = arith.constant dense<0.000000e+00> : vector<8x32xf32>
    %394 = tpu.matmul %393, %0, %cst_115 {dimension_numbers = #tpu.dot_dimension_numbers<[1], [0], [0], [1], [0, 0, 1, 1], [], []>} : vector<8x16xf32>, vector<16x32xf32>, vector<8x32xf32> -> vector<8x32xf32>
    %395 = arith.addf %394, %4 : vector<8x32xf32>
    %396 = math.tanh %395 : vector<8x32xf32>
    %cst_116 = arith.constant dense<0.000000e+00> : vector<8x16xf32>
    %397 = tpu.matmul %396, %1, %cst_116 {dimension_numbers = #tpu.dot_dimension_numbers<[1], [0], [0], [1], [0, 0, 1, 1], [], []>} : vector<8x32xf32>, vector<32x16xf32>, vector<8x16xf32> -> vector<8x16xf32>
    %398 = arith.addf %397, %7 : vector<8x16xf32>
    %399 = arith.mulf %316, %398 : vector<8x16xf32>
    %400 = arith.addf %386, %399 : vector<8x16xf32>
    %cst_117 = arith.constant dense<0.000000e+00> : vector<8x32xf32>
    %401 = tpu.matmul %400, %0, %cst_117 {dimension_numbers = #tpu.dot_dimension_numbers<[1], [0], [0], [1], [0, 0, 1, 1], [], []>} : vector<8x16xf32>, vector<16x32xf32>, vector<8x32xf32> -> vector<8x32xf32>
    %402 = arith.addf %401, %4 : vector<8x32xf32>
    %403 = math.tanh %402 : vector<8x32xf32>
    %cst_118 = arith.constant dense<0.000000e+00> : vector<8x16xf32>
    %404 = tpu.matmul %403, %1, %cst_118 {dimension_numbers = #tpu.dot_dimension_numbers<[1], [0], [0], [1], [0, 0, 1, 1], [], []>} : vector<8x32xf32>, vector<32x16xf32>, vector<8x16xf32> -> vector<8x16xf32>
    %405 = arith.addf %404, %7 : vector<8x16xf32>
    %406 = arith.mulf %312, %405 : vector<8x16xf32>
    %407 = arith.addf %386, %406 : vector<8x16xf32>
    %cst_119 = arith.constant dense<0.000000e+00> : vector<8x32xf32>
    %408 = tpu.matmul %407, %0, %cst_119 {dimension_numbers = #tpu.dot_dimension_numbers<[1], [0], [0], [1], [0, 0, 1, 1], [], []>} : vector<8x16xf32>, vector<16x32xf32>, vector<8x32xf32> -> vector<8x32xf32>
    %409 = arith.addf %408, %4 : vector<8x32xf32>
    %410 = math.tanh %409 : vector<8x32xf32>
    %cst_120 = arith.constant dense<0.000000e+00> : vector<8x16xf32>
    %411 = tpu.matmul %410, %1, %cst_120 {dimension_numbers = #tpu.dot_dimension_numbers<[1], [0], [0], [1], [0, 0, 1, 1], [], []>} : vector<8x32xf32>, vector<32x16xf32>, vector<8x16xf32> -> vector<8x16xf32>
    %412 = arith.addf %411, %7 : vector<8x16xf32>
    %413 = arith.addf %398, %398 : vector<8x16xf32>
    %414 = arith.addf %391, %413 : vector<8x16xf32>
    %415 = arith.addf %405, %405 : vector<8x16xf32>
    %416 = arith.addf %414, %415 : vector<8x16xf32>
    %417 = arith.addf %416, %412 : vector<8x16xf32>
    %418 = arith.mulf %320, %417 : vector<8x16xf32>
    %419 = arith.addf %386, %418 : vector<8x16xf32>
    %c3_i32_121 = arith.constant 3 : i32
    %cst_122 = arith.constant dense<0.000000e+00> : vector<8x32xf32>
    %420 = tpu.matmul %419, %0, %cst_122 {dimension_numbers = #tpu.dot_dimension_numbers<[1], [0], [0], [1], [0, 0, 1, 1], [], []>} : vector<8x16xf32>, vector<16x32xf32>, vector<8x32xf32> -> vector<8x32xf32>
    %421 = arith.addf %420, %4 : vector<8x32xf32>
    %422 = math.tanh %421 : vector<8x32xf32>
    %cst_123 = arith.constant dense<0.000000e+00> : vector<8x16xf32>
    %423 = tpu.matmul %422, %1, %cst_123 {dimension_numbers = #tpu.dot_dimension_numbers<[1], [0], [0], [1], [0, 0, 1, 1], [], []>} : vector<8x32xf32>, vector<32x16xf32>, vector<8x16xf32> -> vector<8x16xf32>
    %424 = arith.addf %423, %7 : vector<8x16xf32>
    %425 = arith.mulf %316, %424 : vector<8x16xf32>
    %426 = arith.addf %419, %425 : vector<8x16xf32>
    %cst_124 = arith.constant dense<0.000000e+00> : vector<8x32xf32>
    %427 = tpu.matmul %426, %0, %cst_124 {dimension_numbers = #tpu.dot_dimension_numbers<[1], [0], [0], [1], [0, 0, 1, 1], [], []>} : vector<8x16xf32>, vector<16x32xf32>, vector<8x32xf32> -> vector<8x32xf32>
    %428 = arith.addf %427, %4 : vector<8x32xf32>
    %429 = math.tanh %428 : vector<8x32xf32>
    %cst_125 = arith.constant dense<0.000000e+00> : vector<8x16xf32>
    %430 = tpu.matmul %429, %1, %cst_125 {dimension_numbers = #tpu.dot_dimension_numbers<[1], [0], [0], [1], [0, 0, 1, 1], [], []>} : vector<8x32xf32>, vector<32x16xf32>, vector<8x16xf32> -> vector<8x16xf32>
    %431 = arith.addf %430, %7 : vector<8x16xf32>
    %432 = arith.mulf %316, %431 : vector<8x16xf32>
    %433 = arith.addf %419, %432 : vector<8x16xf32>
    %cst_126 = arith.constant dense<0.000000e+00> : vector<8x32xf32>
    %434 = tpu.matmul %433, %0, %cst_126 {dimension_numbers = #tpu.dot_dimension_numbers<[1], [0], [0], [1], [0, 0, 1, 1], [], []>} : vector<8x16xf32>, vector<16x32xf32>, vector<8x32xf32> -> vector<8x32xf32>
    %435 = arith.addf %434, %4 : vector<8x32xf32>
    %436 = math.tanh %435 : vector<8x32xf32>
    %cst_127 = arith.constant dense<0.000000e+00> : vector<8x16xf32>
    %437 = tpu.matmul %436, %1, %cst_127 {dimension_numbers = #tpu.dot_dimension_numbers<[1], [0], [0], [1], [0, 0, 1, 1], [], []>} : vector<8x32xf32>, vector<32x16xf32>, vector<8x16xf32> -> vector<8x16xf32>
    %438 = arith.addf %437, %7 : vector<8x16xf32>
    %439 = arith.mulf %312, %438 : vector<8x16xf32>
    %440 = arith.addf %419, %439 : vector<8x16xf32>
    %cst_128 = arith.constant dense<0.000000e+00> : vector<8x32xf32>
    %441 = tpu.matmul %440, %0, %cst_128 {dimension_numbers = #tpu.dot_dimension_numbers<[1], [0], [0], [1], [0, 0, 1, 1], [], []>} : vector<8x16xf32>, vector<16x32xf32>, vector<8x32xf32> -> vector<8x32xf32>
    %442 = arith.addf %441, %4 : vector<8x32xf32>
    %443 = math.tanh %442 : vector<8x32xf32>
    %cst_129 = arith.constant dense<0.000000e+00> : vector<8x16xf32>
    %444 = tpu.matmul %443, %1, %cst_129 {dimension_numbers = #tpu.dot_dimension_numbers<[1], [0], [0], [1], [0, 0, 1, 1], [], []>} : vector<8x32xf32>, vector<32x16xf32>, vector<8x16xf32> -> vector<8x16xf32>
    %445 = arith.addf %444, %7 : vector<8x16xf32>
    %446 = arith.addf %431, %431 : vector<8x16xf32>
    %447 = arith.addf %424, %446 : vector<8x16xf32>
    %448 = arith.addf %438, %438 : vector<8x16xf32>
    %449 = arith.addf %447, %448 : vector<8x16xf32>
    %450 = arith.addf %449, %445 : vector<8x16xf32>
    %451 = arith.mulf %320, %450 : vector<8x16xf32>
    %452 = arith.addf %419, %451 : vector<8x16xf32>
    %c0_130 = arith.constant 0 : index
    %c48 = arith.constant 48 : index
    %453 = vector.load %arg8[%c0_130, %c48] : memref<8x128xf32, #tpu.memory_space<vmem>>, vector<8x16xf32>
    tpu.vector_store %arg8[%c0_130, %c48], %452 {strides = array<i32>} : memref<8x128xf32, #tpu.memory_space<vmem>>, vector<8x16xf32>,
    %c8_i32_131 = arith.constant 8 : i32
    %454 = arith.muli %arg1, %c8_i32_131 : i32
    %c4_i32 = arith.constant 4 : i32
    %455 = arith.addi %454, %c4_i32 : i32
    %456 = arith.index_cast %455 : i32 to index
    %457 = memref.load %arg2[%456] : memref<24xf32, #tpu.memory_space<smem>>
    %458 = vector.broadcast %457 : f32 to vector<8x16xf32>
    %c8_i32_132 = arith.constant 8 : i32
    %459 = arith.addi %c8_i32_132, %455 : i32
    %460 = arith.index_cast %459 : i32 to index
    %461 = memref.load %arg2[%460] : memref<24xf32, #tpu.memory_space<smem>>
    %462 = vector.broadcast %461 : f32 to vector<8x16xf32>
    %c16_i32_133 = arith.constant 16 : i32
    %463 = arith.addi %c16_i32_133, %455 : i32
    %464 = arith.index_cast %463 : i32 to index
    %465 = memref.load %arg2[%464] : memref<24xf32, #tpu.memory_space<smem>>
    %466 = vector.broadcast %465 : f32 to vector<8x16xf32>
    %c0_i32_134 = arith.constant 0 : i32
    %cst_135 = arith.constant dense<0.000000e+00> : vector<8x32xf32>
    %467 = tpu.matmul %452, %0, %cst_135 {dimension_numbers = #tpu.dot_dimension_numbers<[1], [0], [0], [1], [0, 0, 1, 1], [], []>} : vector<8x16xf32>, vector<16x32xf32>, vector<8x32xf32> -> vector<8x32xf32>
    %468 = arith.addf %467, %4 : vector<8x32xf32>
    %469 = math.tanh %468 : vector<8x32xf32>
    %cst_136 = arith.constant dense<0.000000e+00> : vector<8x16xf32>
    %470 = tpu.matmul %469, %1, %cst_136 {dimension_numbers = #tpu.dot_dimension_numbers<[1], [0], [0], [1], [0, 0, 1, 1], [], []>} : vector<8x32xf32>, vector<32x16xf32>, vector<8x16xf32> -> vector<8x16xf32>
    %471 = arith.addf %470, %7 : vector<8x16xf32>
    %472 = arith.mulf %462, %471 : vector<8x16xf32>
    %473 = arith.addf %452, %472 : vector<8x16xf32>
    %cst_137 = arith.constant dense<0.000000e+00> : vector<8x32xf32>
    %474 = tpu.matmul %473, %0, %cst_137 {dimension_numbers = #tpu.dot_dimension_numbers<[1], [0], [0], [1], [0, 0, 1, 1], [], []>} : vector<8x16xf32>, vector<16x32xf32>, vector<8x32xf32> -> vector<8x32xf32>
    %475 = arith.addf %474, %4 : vector<8x32xf32>
    %476 = math.tanh %475 : vector<8x32xf32>
    %cst_138 = arith.constant dense<0.000000e+00> : vector<8x16xf32>
    %477 = tpu.matmul %476, %1, %cst_138 {dimension_numbers = #tpu.dot_dimension_numbers<[1], [0], [0], [1], [0, 0, 1, 1], [], []>} : vector<8x32xf32>, vector<32x16xf32>, vector<8x16xf32> -> vector<8x16xf32>
    %478 = arith.addf %477, %7 : vector<8x16xf32>
    %479 = arith.mulf %462, %478 : vector<8x16xf32>
    %480 = arith.addf %452, %479 : vector<8x16xf32>
    %cst_139 = arith.constant dense<0.000000e+00> : vector<8x32xf32>
    %481 = tpu.matmul %480, %0, %cst_139 {dimension_numbers = #tpu.dot_dimension_numbers<[1], [0], [0], [1], [0, 0, 1, 1], [], []>} : vector<8x16xf32>, vector<16x32xf32>, vector<8x32xf32> -> vector<8x32xf32>
    %482 = arith.addf %481, %4 : vector<8x32xf32>
    %483 = math.tanh %482 : vector<8x32xf32>
    %cst_140 = arith.constant dense<0.000000e+00> : vector<8x16xf32>
    %484 = tpu.matmul %483, %1, %cst_140 {dimension_numbers = #tpu.dot_dimension_numbers<[1], [0], [0], [1], [0, 0, 1, 1], [], []>} : vector<8x32xf32>, vector<32x16xf32>, vector<8x16xf32> -> vector<8x16xf32>
    %485 = arith.addf %484, %7 : vector<8x16xf32>
    %486 = arith.mulf %458, %485 : vector<8x16xf32>
    %487 = arith.addf %452, %486 : vector<8x16xf32>
    %cst_141 = arith.constant dense<0.000000e+00> : vector<8x32xf32>
    %488 = tpu.matmul %487, %0, %cst_141 {dimension_numbers = #tpu.dot_dimension_numbers<[1], [0], [0], [1], [0, 0, 1, 1], [], []>} : vector<8x16xf32>, vector<16x32xf32>, vector<8x32xf32> -> vector<8x32xf32>
    %489 = arith.addf %488, %4 : vector<8x32xf32>
    %490 = math.tanh %489 : vector<8x32xf32>
    %cst_142 = arith.constant dense<0.000000e+00> : vector<8x16xf32>
    %491 = tpu.matmul %490, %1, %cst_142 {dimension_numbers = #tpu.dot_dimension_numbers<[1], [0], [0], [1], [0, 0, 1, 1], [], []>} : vector<8x32xf32>, vector<32x16xf32>, vector<8x16xf32> -> vector<8x16xf32>
    %492 = arith.addf %491, %7 : vector<8x16xf32>
    %493 = arith.addf %478, %478 : vector<8x16xf32>
    %494 = arith.addf %471, %493 : vector<8x16xf32>
    %495 = arith.addf %485, %485 : vector<8x16xf32>
    %496 = arith.addf %494, %495 : vector<8x16xf32>
    %497 = arith.addf %496, %492 : vector<8x16xf32>
    %498 = arith.mulf %466, %497 : vector<8x16xf32>
    %499 = arith.addf %452, %498 : vector<8x16xf32>
    %c1_i32_143 = arith.constant 1 : i32
    %cst_144 = arith.constant dense<0.000000e+00> : vector<8x32xf32>
    %500 = tpu.matmul %499, %0, %cst_144 {dimension_numbers = #tpu.dot_dimension_numbers<[1], [0], [0], [1], [0, 0, 1, 1], [], []>} : vector<8x16xf32>, vector<16x32xf32>, vector<8x32xf32> -> vector<8x32xf32>
    %501 = arith.addf %500, %4 : vector<8x32xf32>
    %502 = math.tanh %501 : vector<8x32xf32>
    %cst_145 = arith.constant dense<0.000000e+00> : vector<8x16xf32>
    %503 = tpu.matmul %502, %1, %cst_145 {dimension_numbers = #tpu.dot_dimension_numbers<[1], [0], [0], [1], [0, 0, 1, 1], [], []>} : vector<8x32xf32>, vector<32x16xf32>, vector<8x16xf32> -> vector<8x16xf32>
    %504 = arith.addf %503, %7 : vector<8x16xf32>
    %505 = arith.mulf %462, %504 : vector<8x16xf32>
    %506 = arith.addf %499, %505 : vector<8x16xf32>
    %cst_146 = arith.constant dense<0.000000e+00> : vector<8x32xf32>
    %507 = tpu.matmul %506, %0, %cst_146 {dimension_numbers = #tpu.dot_dimension_numbers<[1], [0], [0], [1], [0, 0, 1, 1], [], []>} : vector<8x16xf32>, vector<16x32xf32>, vector<8x32xf32> -> vector<8x32xf32>
    %508 = arith.addf %507, %4 : vector<8x32xf32>
    %509 = math.tanh %508 : vector<8x32xf32>
    %cst_147 = arith.constant dense<0.000000e+00> : vector<8x16xf32>
    %510 = tpu.matmul %509, %1, %cst_147 {dimension_numbers = #tpu.dot_dimension_numbers<[1], [0], [0], [1], [0, 0, 1, 1], [], []>} : vector<8x32xf32>, vector<32x16xf32>, vector<8x16xf32> -> vector<8x16xf32>
    %511 = arith.addf %510, %7 : vector<8x16xf32>
    %512 = arith.mulf %462, %511 : vector<8x16xf32>
    %513 = arith.addf %499, %512 : vector<8x16xf32>
    %cst_148 = arith.constant dense<0.000000e+00> : vector<8x32xf32>
    %514 = tpu.matmul %513, %0, %cst_148 {dimension_numbers = #tpu.dot_dimension_numbers<[1], [0], [0], [1], [0, 0, 1, 1], [], []>} : vector<8x16xf32>, vector<16x32xf32>, vector<8x32xf32> -> vector<8x32xf32>
    %515 = arith.addf %514, %4 : vector<8x32xf32>
    %516 = math.tanh %515 : vector<8x32xf32>
    %cst_149 = arith.constant dense<0.000000e+00> : vector<8x16xf32>
    %517 = tpu.matmul %516, %1, %cst_149 {dimension_numbers = #tpu.dot_dimension_numbers<[1], [0], [0], [1], [0, 0, 1, 1], [], []>} : vector<8x32xf32>, vector<32x16xf32>, vector<8x16xf32> -> vector<8x16xf32>
    %518 = arith.addf %517, %7 : vector<8x16xf32>
    %519 = arith.mulf %458, %518 : vector<8x16xf32>
    %520 = arith.addf %499, %519 : vector<8x16xf32>
    %cst_150 = arith.constant dense<0.000000e+00> : vector<8x32xf32>
    %521 = tpu.matmul %520, %0, %cst_150 {dimension_numbers = #tpu.dot_dimension_numbers<[1], [0], [0], [1], [0, 0, 1, 1], [], []>} : vector<8x16xf32>, vector<16x32xf32>, vector<8x32xf32> -> vector<8x32xf32>
    %522 = arith.addf %521, %4 : vector<8x32xf32>
    %523 = math.tanh %522 : vector<8x32xf32>
    %cst_151 = arith.constant dense<0.000000e+00> : vector<8x16xf32>
    %524 = tpu.matmul %523, %1, %cst_151 {dimension_numbers = #tpu.dot_dimension_numbers<[1], [0], [0], [1], [0, 0, 1, 1], [], []>} : vector<8x32xf32>, vector<32x16xf32>, vector<8x16xf32> -> vector<8x16xf32>
    %525 = arith.addf %524, %7 : vector<8x16xf32>
    %526 = arith.addf %511, %511 : vector<8x16xf32>
    %527 = arith.addf %504, %526 : vector<8x16xf32>
    %528 = arith.addf %518, %518 : vector<8x16xf32>
    %529 = arith.addf %527, %528 : vector<8x16xf32>
    %530 = arith.addf %529, %525 : vector<8x16xf32>
    %531 = arith.mulf %466, %530 : vector<8x16xf32>
    %532 = arith.addf %499, %531 : vector<8x16xf32>
    %c2_i32_152 = arith.constant 2 : i32
    %cst_153 = arith.constant dense<0.000000e+00> : vector<8x32xf32>
    %533 = tpu.matmul %532, %0, %cst_153 {dimension_numbers = #tpu.dot_dimension_numbers<[1], [0], [0], [1], [0, 0, 1, 1], [], []>} : vector<8x16xf32>, vector<16x32xf32>, vector<8x32xf32> -> vector<8x32xf32>
    %534 = arith.addf %533, %4 : vector<8x32xf32>
    %535 = math.tanh %534 : vector<8x32xf32>
    %cst_154 = arith.constant dense<0.000000e+00> : vector<8x16xf32>
    %536 = tpu.matmul %535, %1, %cst_154 {dimension_numbers = #tpu.dot_dimension_numbers<[1], [0], [0], [1], [0, 0, 1, 1], [], []>} : vector<8x32xf32>, vector<32x16xf32>, vector<8x16xf32> -> vector<8x16xf32>
    %537 = arith.addf %536, %7 : vector<8x16xf32>
    %538 = arith.mulf %462, %537 : vector<8x16xf32>
    %539 = arith.addf %532, %538 : vector<8x16xf32>
    %cst_155 = arith.constant dense<0.000000e+00> : vector<8x32xf32>
    %540 = tpu.matmul %539, %0, %cst_155 {dimension_numbers = #tpu.dot_dimension_numbers<[1], [0], [0], [1], [0, 0, 1, 1], [], []>} : vector<8x16xf32>, vector<16x32xf32>, vector<8x32xf32> -> vector<8x32xf32>
    %541 = arith.addf %540, %4 : vector<8x32xf32>
    %542 = math.tanh %541 : vector<8x32xf32>
    %cst_156 = arith.constant dense<0.000000e+00> : vector<8x16xf32>
    %543 = tpu.matmul %542, %1, %cst_156 {dimension_numbers = #tpu.dot_dimension_numbers<[1], [0], [0], [1], [0, 0, 1, 1], [], []>} : vector<8x32xf32>, vector<32x16xf32>, vector<8x16xf32> -> vector<8x16xf32>
    %544 = arith.addf %543, %7 : vector<8x16xf32>
    %545 = arith.mulf %462, %544 : vector<8x16xf32>
    %546 = arith.addf %532, %545 : vector<8x16xf32>
    %cst_157 = arith.constant dense<0.000000e+00> : vector<8x32xf32>
    %547 = tpu.matmul %546, %0, %cst_157 {dimension_numbers = #tpu.dot_dimension_numbers<[1], [0], [0], [1], [0, 0, 1, 1], [], []>} : vector<8x16xf32>, vector<16x32xf32>, vector<8x32xf32> -> vector<8x32xf32>
    %548 = arith.addf %547, %4 : vector<8x32xf32>
    %549 = math.tanh %548 : vector<8x32xf32>
    %cst_158 = arith.constant dense<0.000000e+00> : vector<8x16xf32>
    %550 = tpu.matmul %549, %1, %cst_158 {dimension_numbers = #tpu.dot_dimension_numbers<[1], [0], [0], [1], [0, 0, 1, 1], [], []>} : vector<8x32xf32>, vector<32x16xf32>, vector<8x16xf32> -> vector<8x16xf32>
    %551 = arith.addf %550, %7 : vector<8x16xf32>
    %552 = arith.mulf %458, %551 : vector<8x16xf32>
    %553 = arith.addf %532, %552 : vector<8x16xf32>
    %cst_159 = arith.constant dense<0.000000e+00> : vector<8x32xf32>
    %554 = tpu.matmul %553, %0, %cst_159 {dimension_numbers = #tpu.dot_dimension_numbers<[1], [0], [0], [1], [0, 0, 1, 1], [], []>} : vector<8x16xf32>, vector<16x32xf32>, vector<8x32xf32> -> vector<8x32xf32>
    %555 = arith.addf %554, %4 : vector<8x32xf32>
    %556 = math.tanh %555 : vector<8x32xf32>
    %cst_160 = arith.constant dense<0.000000e+00> : vector<8x16xf32>
    %557 = tpu.matmul %556, %1, %cst_160 {dimension_numbers = #tpu.dot_dimension_numbers<[1], [0], [0], [1], [0, 0, 1, 1], [], []>} : vector<8x32xf32>, vector<32x16xf32>, vector<8x16xf32> -> vector<8x16xf32>
    %558 = arith.addf %557, %7 : vector<8x16xf32>
    %559 = arith.addf %544, %544 : vector<8x16xf32>
    %560 = arith.addf %537, %559 : vector<8x16xf32>
    %561 = arith.addf %551, %551 : vector<8x16xf32>
    %562 = arith.addf %560, %561 : vector<8x16xf32>
    %563 = arith.addf %562, %558 : vector<8x16xf32>
    %564 = arith.mulf %466, %563 : vector<8x16xf32>
    %565 = arith.addf %532, %564 : vector<8x16xf32>
    %c3_i32_161 = arith.constant 3 : i32
    %cst_162 = arith.constant dense<0.000000e+00> : vector<8x32xf32>
    %566 = tpu.matmul %565, %0, %cst_162 {dimension_numbers = #tpu.dot_dimension_numbers<[1], [0], [0], [1], [0, 0, 1, 1], [], []>} : vector<8x16xf32>, vector<16x32xf32>, vector<8x32xf32> -> vector<8x32xf32>
    %567 = arith.addf %566, %4 : vector<8x32xf32>
    %568 = math.tanh %567 : vector<8x32xf32>
    %cst_163 = arith.constant dense<0.000000e+00> : vector<8x16xf32>
    %569 = tpu.matmul %568, %1, %cst_163 {dimension_numbers = #tpu.dot_dimension_numbers<[1], [0], [0], [1], [0, 0, 1, 1], [], []>} : vector<8x32xf32>, vector<32x16xf32>, vector<8x16xf32> -> vector<8x16xf32>
    %570 = arith.addf %569, %7 : vector<8x16xf32>
    %571 = arith.mulf %462, %570 : vector<8x16xf32>
    %572 = arith.addf %565, %571 : vector<8x16xf32>
    %cst_164 = arith.constant dense<0.000000e+00> : vector<8x32xf32>
    %573 = tpu.matmul %572, %0, %cst_164 {dimension_numbers = #tpu.dot_dimension_numbers<[1], [0], [0], [1], [0, 0, 1, 1], [], []>} : vector<8x16xf32>, vector<16x32xf32>, vector<8x32xf32> -> vector<8x32xf32>
    %574 = arith.addf %573, %4 : vector<8x32xf32>
    %575 = math.tanh %574 : vector<8x32xf32>
    %cst_165 = arith.constant dense<0.000000e+00> : vector<8x16xf32>
    %576 = tpu.matmul %575, %1, %cst_165 {dimension_numbers = #tpu.dot_dimension_numbers<[1], [0], [0], [1], [0, 0, 1, 1], [], []>} : vector<8x32xf32>, vector<32x16xf32>, vector<8x16xf32> -> vector<8x16xf32>
    %577 = arith.addf %576, %7 : vector<8x16xf32>
    %578 = arith.mulf %462, %577 : vector<8x16xf32>
    %579 = arith.addf %565, %578 : vector<8x16xf32>
    %cst_166 = arith.constant dense<0.000000e+00> : vector<8x32xf32>
    %580 = tpu.matmul %579, %0, %cst_166 {dimension_numbers = #tpu.dot_dimension_numbers<[1], [0], [0], [1], [0, 0, 1, 1], [], []>} : vector<8x16xf32>, vector<16x32xf32>, vector<8x32xf32> -> vector<8x32xf32>
    %581 = arith.addf %580, %4 : vector<8x32xf32>
    %582 = math.tanh %581 : vector<8x32xf32>
    %cst_167 = arith.constant dense<0.000000e+00> : vector<8x16xf32>
    %583 = tpu.matmul %582, %1, %cst_167 {dimension_numbers = #tpu.dot_dimension_numbers<[1], [0], [0], [1], [0, 0, 1, 1], [], []>} : vector<8x32xf32>, vector<32x16xf32>, vector<8x16xf32> -> vector<8x16xf32>
    %584 = arith.addf %583, %7 : vector<8x16xf32>
    %585 = arith.mulf %458, %584 : vector<8x16xf32>
    %586 = arith.addf %565, %585 : vector<8x16xf32>
    %cst_168 = arith.constant dense<0.000000e+00> : vector<8x32xf32>
    %587 = tpu.matmul %586, %0, %cst_168 {dimension_numbers = #tpu.dot_dimension_numbers<[1], [0], [0], [1], [0, 0, 1, 1], [], []>} : vector<8x16xf32>, vector<16x32xf32>, vector<8x32xf32> -> vector<8x32xf32>
    %588 = arith.addf %587, %4 : vector<8x32xf32>
    %589 = math.tanh %588 : vector<8x32xf32>
    %cst_169 = arith.constant dense<0.000000e+00> : vector<8x16xf32>
    %590 = tpu.matmul %589, %1, %cst_169 {dimension_numbers = #tpu.dot_dimension_numbers<[1], [0], [0], [1], [0, 0, 1, 1], [], []>} : vector<8x32xf32>, vector<32x16xf32>, vector<8x16xf32> -> vector<8x16xf32>
    %591 = arith.addf %590, %7 : vector<8x16xf32>
    %592 = arith.addf %577, %577 : vector<8x16xf32>
    %593 = arith.addf %570, %592 : vector<8x16xf32>
    %594 = arith.addf %584, %584 : vector<8x16xf32>
    %595 = arith.addf %593, %594 : vector<8x16xf32>
    %596 = arith.addf %595, %591 : vector<8x16xf32>
    %597 = arith.mulf %466, %596 : vector<8x16xf32>
    %598 = arith.addf %565, %597 : vector<8x16xf32>
    %c0_170 = arith.constant 0 : index
    %c64 = arith.constant 64 : index
    %599 = vector.load %arg8[%c0_170, %c64] : memref<8x128xf32, #tpu.memory_space<vmem>>, vector<8x16xf32>
    tpu.vector_store %arg8[%c0_170, %c64], %598 {strides = array<i32>} : memref<8x128xf32, #tpu.memory_space<vmem>>, vector<8x16xf32>,
    %c8_i32_171 = arith.constant 8 : i32
    %600 = arith.muli %arg1, %c8_i32_171 : i32
    %c5_i32 = arith.constant 5 : i32
    %601 = arith.addi %600, %c5_i32 : i32
    %602 = arith.index_cast %601 : i32 to index
    %603 = memref.load %arg2[%602] : memref<24xf32, #tpu.memory_space<smem>>
    %604 = vector.broadcast %603 : f32 to vector<8x16xf32>
    %c8_i32_172 = arith.constant 8 : i32
    %605 = arith.addi %c8_i32_172, %601 : i32
    %606 = arith.index_cast %605 : i32 to index
    %607 = memref.load %arg2[%606] : memref<24xf32, #tpu.memory_space<smem>>
    %608 = vector.broadcast %607 : f32 to vector<8x16xf32>
    %c16_i32_173 = arith.constant 16 : i32
    %609 = arith.addi %c16_i32_173, %601 : i32
    %610 = arith.index_cast %609 : i32 to index
    %611 = memref.load %arg2[%610] : memref<24xf32, #tpu.memory_space<smem>>
    %612 = vector.broadcast %611 : f32 to vector<8x16xf32>
    %c0_i32_174 = arith.constant 0 : i32
    %cst_175 = arith.constant dense<0.000000e+00> : vector<8x32xf32>
    %613 = tpu.matmul %598, %0, %cst_175 {dimension_numbers = #tpu.dot_dimension_numbers<[1], [0], [0], [1], [0, 0, 1, 1], [], []>} : vector<8x16xf32>, vector<16x32xf32>, vector<8x32xf32> -> vector<8x32xf32>
    %614 = arith.addf %613, %4 : vector<8x32xf32>
    %615 = math.tanh %614 : vector<8x32xf32>
    %cst_176 = arith.constant dense<0.000000e+00> : vector<8x16xf32>
    %616 = tpu.matmul %615, %1, %cst_176 {dimension_numbers = #tpu.dot_dimension_numbers<[1], [0], [0], [1], [0, 0, 1, 1], [], []>} : vector<8x32xf32>, vector<32x16xf32>, vector<8x16xf32> -> vector<8x16xf32>
    %617 = arith.addf %616, %7 : vector<8x16xf32>
    %618 = arith.mulf %608, %617 : vector<8x16xf32>
    %619 = arith.addf %598, %618 : vector<8x16xf32>
    %cst_177 = arith.constant dense<0.000000e+00> : vector<8x32xf32>
    %620 = tpu.matmul %619, %0, %cst_177 {dimension_numbers = #tpu.dot_dimension_numbers<[1], [0], [0], [1], [0, 0, 1, 1], [], []>} : vector<8x16xf32>, vector<16x32xf32>, vector<8x32xf32> -> vector<8x32xf32>
    %621 = arith.addf %620, %4 : vector<8x32xf32>
    %622 = math.tanh %621 : vector<8x32xf32>
    %cst_178 = arith.constant dense<0.000000e+00> : vector<8x16xf32>
    %623 = tpu.matmul %622, %1, %cst_178 {dimension_numbers = #tpu.dot_dimension_numbers<[1], [0], [0], [1], [0, 0, 1, 1], [], []>} : vector<8x32xf32>, vector<32x16xf32>, vector<8x16xf32> -> vector<8x16xf32>
    %624 = arith.addf %623, %7 : vector<8x16xf32>
    %625 = arith.mulf %608, %624 : vector<8x16xf32>
    %626 = arith.addf %598, %625 : vector<8x16xf32>
    %cst_179 = arith.constant dense<0.000000e+00> : vector<8x32xf32>
    %627 = tpu.matmul %626, %0, %cst_179 {dimension_numbers = #tpu.dot_dimension_numbers<[1], [0], [0], [1], [0, 0, 1, 1], [], []>} : vector<8x16xf32>, vector<16x32xf32>, vector<8x32xf32> -> vector<8x32xf32>
    %628 = arith.addf %627, %4 : vector<8x32xf32>
    %629 = math.tanh %628 : vector<8x32xf32>
    %cst_180 = arith.constant dense<0.000000e+00> : vector<8x16xf32>
    %630 = tpu.matmul %629, %1, %cst_180 {dimension_numbers = #tpu.dot_dimension_numbers<[1], [0], [0], [1], [0, 0, 1, 1], [], []>} : vector<8x32xf32>, vector<32x16xf32>, vector<8x16xf32> -> vector<8x16xf32>
    %631 = arith.addf %630, %7 : vector<8x16xf32>
    %632 = arith.mulf %604, %631 : vector<8x16xf32>
    %633 = arith.addf %598, %632 : vector<8x16xf32>
    %cst_181 = arith.constant dense<0.000000e+00> : vector<8x32xf32>
    %634 = tpu.matmul %633, %0, %cst_181 {dimension_numbers = #tpu.dot_dimension_numbers<[1], [0], [0], [1], [0, 0, 1, 1], [], []>} : vector<8x16xf32>, vector<16x32xf32>, vector<8x32xf32> -> vector<8x32xf32>
    %635 = arith.addf %634, %4 : vector<8x32xf32>
    %636 = math.tanh %635 : vector<8x32xf32>
    %cst_182 = arith.constant dense<0.000000e+00> : vector<8x16xf32>
    %637 = tpu.matmul %636, %1, %cst_182 {dimension_numbers = #tpu.dot_dimension_numbers<[1], [0], [0], [1], [0, 0, 1, 1], [], []>} : vector<8x32xf32>, vector<32x16xf32>, vector<8x16xf32> -> vector<8x16xf32>
    %638 = arith.addf %637, %7 : vector<8x16xf32>
    %639 = arith.addf %624, %624 : vector<8x16xf32>
    %640 = arith.addf %617, %639 : vector<8x16xf32>
    %641 = arith.addf %631, %631 : vector<8x16xf32>
    %642 = arith.addf %640, %641 : vector<8x16xf32>
    %643 = arith.addf %642, %638 : vector<8x16xf32>
    %644 = arith.mulf %612, %643 : vector<8x16xf32>
    %645 = arith.addf %598, %644 : vector<8x16xf32>
    %c1_i32_183 = arith.constant 1 : i32
    %cst_184 = arith.constant dense<0.000000e+00> : vector<8x32xf32>
    %646 = tpu.matmul %645, %0, %cst_184 {dimension_numbers = #tpu.dot_dimension_numbers<[1], [0], [0], [1], [0, 0, 1, 1], [], []>} : vector<8x16xf32>, vector<16x32xf32>, vector<8x32xf32> -> vector<8x32xf32>
    %647 = arith.addf %646, %4 : vector<8x32xf32>
    %648 = math.tanh %647 : vector<8x32xf32>
    %cst_185 = arith.constant dense<0.000000e+00> : vector<8x16xf32>
    %649 = tpu.matmul %648, %1, %cst_185 {dimension_numbers = #tpu.dot_dimension_numbers<[1], [0], [0], [1], [0, 0, 1, 1], [], []>} : vector<8x32xf32>, vector<32x16xf32>, vector<8x16xf32> -> vector<8x16xf32>
    %650 = arith.addf %649, %7 : vector<8x16xf32>
    %651 = arith.mulf %608, %650 : vector<8x16xf32>
    %652 = arith.addf %645, %651 : vector<8x16xf32>
    %cst_186 = arith.constant dense<0.000000e+00> : vector<8x32xf32>
    %653 = tpu.matmul %652, %0, %cst_186 {dimension_numbers = #tpu.dot_dimension_numbers<[1], [0], [0], [1], [0, 0, 1, 1], [], []>} : vector<8x16xf32>, vector<16x32xf32>, vector<8x32xf32> -> vector<8x32xf32>
    %654 = arith.addf %653, %4 : vector<8x32xf32>
    %655 = math.tanh %654 : vector<8x32xf32>
    %cst_187 = arith.constant dense<0.000000e+00> : vector<8x16xf32>
    %656 = tpu.matmul %655, %1, %cst_187 {dimension_numbers = #tpu.dot_dimension_numbers<[1], [0], [0], [1], [0, 0, 1, 1], [], []>} : vector<8x32xf32>, vector<32x16xf32>, vector<8x16xf32> -> vector<8x16xf32>
    %657 = arith.addf %656, %7 : vector<8x16xf32>
    %658 = arith.mulf %608, %657 : vector<8x16xf32>
    %659 = arith.addf %645, %658 : vector<8x16xf32>
    %cst_188 = arith.constant dense<0.000000e+00> : vector<8x32xf32>
    %660 = tpu.matmul %659, %0, %cst_188 {dimension_numbers = #tpu.dot_dimension_numbers<[1], [0], [0], [1], [0, 0, 1, 1], [], []>} : vector<8x16xf32>, vector<16x32xf32>, vector<8x32xf32> -> vector<8x32xf32>
    %661 = arith.addf %660, %4 : vector<8x32xf32>
    %662 = math.tanh %661 : vector<8x32xf32>
    %cst_189 = arith.constant dense<0.000000e+00> : vector<8x16xf32>
    %663 = tpu.matmul %662, %1, %cst_189 {dimension_numbers = #tpu.dot_dimension_numbers<[1], [0], [0], [1], [0, 0, 1, 1], [], []>} : vector<8x32xf32>, vector<32x16xf32>, vector<8x16xf32> -> vector<8x16xf32>
    %664 = arith.addf %663, %7 : vector<8x16xf32>
    %665 = arith.mulf %604, %664 : vector<8x16xf32>
    %666 = arith.addf %645, %665 : vector<8x16xf32>
    %cst_190 = arith.constant dense<0.000000e+00> : vector<8x32xf32>
    %667 = tpu.matmul %666, %0, %cst_190 {dimension_numbers = #tpu.dot_dimension_numbers<[1], [0], [0], [1], [0, 0, 1, 1], [], []>} : vector<8x16xf32>, vector<16x32xf32>, vector<8x32xf32> -> vector<8x32xf32>
    %668 = arith.addf %667, %4 : vector<8x32xf32>
    %669 = math.tanh %668 : vector<8x32xf32>
    %cst_191 = arith.constant dense<0.000000e+00> : vector<8x16xf32>
    %670 = tpu.matmul %669, %1, %cst_191 {dimension_numbers = #tpu.dot_dimension_numbers<[1], [0], [0], [1], [0, 0, 1, 1], [], []>} : vector<8x32xf32>, vector<32x16xf32>, vector<8x16xf32> -> vector<8x16xf32>
    %671 = arith.addf %670, %7 : vector<8x16xf32>
    %672 = arith.addf %657, %657 : vector<8x16xf32>
    %673 = arith.addf %650, %672 : vector<8x16xf32>
    %674 = arith.addf %664, %664 : vector<8x16xf32>
    %675 = arith.addf %673, %674 : vector<8x16xf32>
    %676 = arith.addf %675, %671 : vector<8x16xf32>
    %677 = arith.mulf %612, %676 : vector<8x16xf32>
    %678 = arith.addf %645, %677 : vector<8x16xf32>
    %c2_i32_192 = arith.constant 2 : i32
    %cst_193 = arith.constant dense<0.000000e+00> : vector<8x32xf32>
    %679 = tpu.matmul %678, %0, %cst_193 {dimension_numbers = #tpu.dot_dimension_numbers<[1], [0], [0], [1], [0, 0, 1, 1], [], []>} : vector<8x16xf32>, vector<16x32xf32>, vector<8x32xf32> -> vector<8x32xf32>
    %680 = arith.addf %679, %4 : vector<8x32xf32>
    %681 = math.tanh %680 : vector<8x32xf32>
    %cst_194 = arith.constant dense<0.000000e+00> : vector<8x16xf32>
    %682 = tpu.matmul %681, %1, %cst_194 {dimension_numbers = #tpu.dot_dimension_numbers<[1], [0], [0], [1], [0, 0, 1, 1], [], []>} : vector<8x32xf32>, vector<32x16xf32>, vector<8x16xf32> -> vector<8x16xf32>
    %683 = arith.addf %682, %7 : vector<8x16xf32>
    %684 = arith.mulf %608, %683 : vector<8x16xf32>
    %685 = arith.addf %678, %684 : vector<8x16xf32>
    %cst_195 = arith.constant dense<0.000000e+00> : vector<8x32xf32>
    %686 = tpu.matmul %685, %0, %cst_195 {dimension_numbers = #tpu.dot_dimension_numbers<[1], [0], [0], [1], [0, 0, 1, 1], [], []>} : vector<8x16xf32>, vector<16x32xf32>, vector<8x32xf32> -> vector<8x32xf32>
    %687 = arith.addf %686, %4 : vector<8x32xf32>
    %688 = math.tanh %687 : vector<8x32xf32>
    %cst_196 = arith.constant dense<0.000000e+00> : vector<8x16xf32>
    %689 = tpu.matmul %688, %1, %cst_196 {dimension_numbers = #tpu.dot_dimension_numbers<[1], [0], [0], [1], [0, 0, 1, 1], [], []>} : vector<8x32xf32>, vector<32x16xf32>, vector<8x16xf32> -> vector<8x16xf32>
    %690 = arith.addf %689, %7 : vector<8x16xf32>
    %691 = arith.mulf %608, %690 : vector<8x16xf32>
    %692 = arith.addf %678, %691 : vector<8x16xf32>
    %cst_197 = arith.constant dense<0.000000e+00> : vector<8x32xf32>
    %693 = tpu.matmul %692, %0, %cst_197 {dimension_numbers = #tpu.dot_dimension_numbers<[1], [0], [0], [1], [0, 0, 1, 1], [], []>} : vector<8x16xf32>, vector<16x32xf32>, vector<8x32xf32> -> vector<8x32xf32>
    %694 = arith.addf %693, %4 : vector<8x32xf32>
    %695 = math.tanh %694 : vector<8x32xf32>
    %cst_198 = arith.constant dense<0.000000e+00> : vector<8x16xf32>
    %696 = tpu.matmul %695, %1, %cst_198 {dimension_numbers = #tpu.dot_dimension_numbers<[1], [0], [0], [1], [0, 0, 1, 1], [], []>} : vector<8x32xf32>, vector<32x16xf32>, vector<8x16xf32> -> vector<8x16xf32>
    %697 = arith.addf %696, %7 : vector<8x16xf32>
    %698 = arith.mulf %604, %697 : vector<8x16xf32>
    %699 = arith.addf %678, %698 : vector<8x16xf32>
    %cst_199 = arith.constant dense<0.000000e+00> : vector<8x32xf32>
    %700 = tpu.matmul %699, %0, %cst_199 {dimension_numbers = #tpu.dot_dimension_numbers<[1], [0], [0], [1], [0, 0, 1, 1], [], []>} : vector<8x16xf32>, vector<16x32xf32>, vector<8x32xf32> -> vector<8x32xf32>
    %701 = arith.addf %700, %4 : vector<8x32xf32>
    %702 = math.tanh %701 : vector<8x32xf32>
    %cst_200 = arith.constant dense<0.000000e+00> : vector<8x16xf32>
    %703 = tpu.matmul %702, %1, %cst_200 {dimension_numbers = #tpu.dot_dimension_numbers<[1], [0], [0], [1], [0, 0, 1, 1], [], []>} : vector<8x32xf32>, vector<32x16xf32>, vector<8x16xf32> -> vector<8x16xf32>
    %704 = arith.addf %703, %7 : vector<8x16xf32>
    %705 = arith.addf %690, %690 : vector<8x16xf32>
    %706 = arith.addf %683, %705 : vector<8x16xf32>
    %707 = arith.addf %697, %697 : vector<8x16xf32>
    %708 = arith.addf %706, %707 : vector<8x16xf32>
    %709 = arith.addf %708, %704 : vector<8x16xf32>
    %710 = arith.mulf %612, %709 : vector<8x16xf32>
    %711 = arith.addf %678, %710 : vector<8x16xf32>
    %c3_i32_201 = arith.constant 3 : i32
    %cst_202 = arith.constant dense<0.000000e+00> : vector<8x32xf32>
    %712 = tpu.matmul %711, %0, %cst_202 {dimension_numbers = #tpu.dot_dimension_numbers<[1], [0], [0], [1], [0, 0, 1, 1], [], []>} : vector<8x16xf32>, vector<16x32xf32>, vector<8x32xf32> -> vector<8x32xf32>
    %713 = arith.addf %712, %4 : vector<8x32xf32>
    %714 = math.tanh %713 : vector<8x32xf32>
    %cst_203 = arith.constant dense<0.000000e+00> : vector<8x16xf32>
    %715 = tpu.matmul %714, %1, %cst_203 {dimension_numbers = #tpu.dot_dimension_numbers<[1], [0], [0], [1], [0, 0, 1, 1], [], []>} : vector<8x32xf32>, vector<32x16xf32>, vector<8x16xf32> -> vector<8x16xf32>
    %716 = arith.addf %715, %7 : vector<8x16xf32>
    %717 = arith.mulf %608, %716 : vector<8x16xf32>
    %718 = arith.addf %711, %717 : vector<8x16xf32>
    %cst_204 = arith.constant dense<0.000000e+00> : vector<8x32xf32>
    %719 = tpu.matmul %718, %0, %cst_204 {dimension_numbers = #tpu.dot_dimension_numbers<[1], [0], [0], [1], [0, 0, 1, 1], [], []>} : vector<8x16xf32>, vector<16x32xf32>, vector<8x32xf32> -> vector<8x32xf32>
    %720 = arith.addf %719, %4 : vector<8x32xf32>
    %721 = math.tanh %720 : vector<8x32xf32>
    %cst_205 = arith.constant dense<0.000000e+00> : vector<8x16xf32>
    %722 = tpu.matmul %721, %1, %cst_205 {dimension_numbers = #tpu.dot_dimension_numbers<[1], [0], [0], [1], [0, 0, 1, 1], [], []>} : vector<8x32xf32>, vector<32x16xf32>, vector<8x16xf32> -> vector<8x16xf32>
    %723 = arith.addf %722, %7 : vector<8x16xf32>
    %724 = arith.mulf %608, %723 : vector<8x16xf32>
    %725 = arith.addf %711, %724 : vector<8x16xf32>
    %cst_206 = arith.constant dense<0.000000e+00> : vector<8x32xf32>
    %726 = tpu.matmul %725, %0, %cst_206 {dimension_numbers = #tpu.dot_dimension_numbers<[1], [0], [0], [1], [0, 0, 1, 1], [], []>} : vector<8x16xf32>, vector<16x32xf32>, vector<8x32xf32> -> vector<8x32xf32>
    %727 = arith.addf %726, %4 : vector<8x32xf32>
    %728 = math.tanh %727 : vector<8x32xf32>
    %cst_207 = arith.constant dense<0.000000e+00> : vector<8x16xf32>
    %729 = tpu.matmul %728, %1, %cst_207 {dimension_numbers = #tpu.dot_dimension_numbers<[1], [0], [0], [1], [0, 0, 1, 1], [], []>} : vector<8x32xf32>, vector<32x16xf32>, vector<8x16xf32> -> vector<8x16xf32>
    %730 = arith.addf %729, %7 : vector<8x16xf32>
    %731 = arith.mulf %604, %730 : vector<8x16xf32>
    %732 = arith.addf %711, %731 : vector<8x16xf32>
    %cst_208 = arith.constant dense<0.000000e+00> : vector<8x32xf32>
    %733 = tpu.matmul %732, %0, %cst_208 {dimension_numbers = #tpu.dot_dimension_numbers<[1], [0], [0], [1], [0, 0, 1, 1], [], []>} : vector<8x16xf32>, vector<16x32xf32>, vector<8x32xf32> -> vector<8x32xf32>
    %734 = arith.addf %733, %4 : vector<8x32xf32>
    %735 = math.tanh %734 : vector<8x32xf32>
    %cst_209 = arith.constant dense<0.000000e+00> : vector<8x16xf32>
    %736 = tpu.matmul %735, %1, %cst_209 {dimension_numbers = #tpu.dot_dimension_numbers<[1], [0], [0], [1], [0, 0, 1, 1], [], []>} : vector<8x32xf32>, vector<32x16xf32>, vector<8x16xf32> -> vector<8x16xf32>
    %737 = arith.addf %736, %7 : vector<8x16xf32>
    %738 = arith.addf %723, %723 : vector<8x16xf32>
    %739 = arith.addf %716, %738 : vector<8x16xf32>
    %740 = arith.addf %730, %730 : vector<8x16xf32>
    %741 = arith.addf %739, %740 : vector<8x16xf32>
    %742 = arith.addf %741, %737 : vector<8x16xf32>
    %743 = arith.mulf %612, %742 : vector<8x16xf32>
    %744 = arith.addf %711, %743 : vector<8x16xf32>
    %c0_210 = arith.constant 0 : index
    %c80 = arith.constant 80 : index
    %745 = vector.load %arg8[%c0_210, %c80] : memref<8x128xf32, #tpu.memory_space<vmem>>, vector<8x16xf32>
    tpu.vector_store %arg8[%c0_210, %c80], %744 {strides = array<i32>} : memref<8x128xf32, #tpu.memory_space<vmem>>, vector<8x16xf32>,
    %c8_i32_211 = arith.constant 8 : i32
    %746 = arith.muli %arg1, %c8_i32_211 : i32
    %c6_i32 = arith.constant 6 : i32
    %747 = arith.addi %746, %c6_i32 : i32
    %748 = arith.index_cast %747 : i32 to index
    %749 = memref.load %arg2[%748] : memref<24xf32, #tpu.memory_space<smem>>
    %750 = vector.broadcast %749 : f32 to vector<8x16xf32>
    %c8_i32_212 = arith.constant 8 : i32
    %751 = arith.addi %c8_i32_212, %747 : i32
    %752 = arith.index_cast %751 : i32 to index
    %753 = memref.load %arg2[%752] : memref<24xf32, #tpu.memory_space<smem>>
    %754 = vector.broadcast %753 : f32 to vector<8x16xf32>
    %c16_i32_213 = arith.constant 16 : i32
    %755 = arith.addi %c16_i32_213, %747 : i32
    %756 = arith.index_cast %755 : i32 to index
    %757 = memref.load %arg2[%756] : memref<24xf32, #tpu.memory_space<smem>>
    %758 = vector.broadcast %757 : f32 to vector<8x16xf32>
    %c0_i32_214 = arith.constant 0 : i32
    %cst_215 = arith.constant dense<0.000000e+00> : vector<8x32xf32>
    %759 = tpu.matmul %744, %0, %cst_215 {dimension_numbers = #tpu.dot_dimension_numbers<[1], [0], [0], [1], [0, 0, 1, 1], [], []>} : vector<8x16xf32>, vector<16x32xf32>, vector<8x32xf32> -> vector<8x32xf32>
    %760 = arith.addf %759, %4 : vector<8x32xf32>
    %761 = math.tanh %760 : vector<8x32xf32>
    %cst_216 = arith.constant dense<0.000000e+00> : vector<8x16xf32>
    %762 = tpu.matmul %761, %1, %cst_216 {dimension_numbers = #tpu.dot_dimension_numbers<[1], [0], [0], [1], [0, 0, 1, 1], [], []>} : vector<8x32xf32>, vector<32x16xf32>, vector<8x16xf32> -> vector<8x16xf32>
    %763 = arith.addf %762, %7 : vector<8x16xf32>
    %764 = arith.mulf %754, %763 : vector<8x16xf32>
    %765 = arith.addf %744, %764 : vector<8x16xf32>
    %cst_217 = arith.constant dense<0.000000e+00> : vector<8x32xf32>
    %766 = tpu.matmul %765, %0, %cst_217 {dimension_numbers = #tpu.dot_dimension_numbers<[1], [0], [0], [1], [0, 0, 1, 1], [], []>} : vector<8x16xf32>, vector<16x32xf32>, vector<8x32xf32> -> vector<8x32xf32>
    %767 = arith.addf %766, %4 : vector<8x32xf32>
    %768 = math.tanh %767 : vector<8x32xf32>
    %cst_218 = arith.constant dense<0.000000e+00> : vector<8x16xf32>
    %769 = tpu.matmul %768, %1, %cst_218 {dimension_numbers = #tpu.dot_dimension_numbers<[1], [0], [0], [1], [0, 0, 1, 1], [], []>} : vector<8x32xf32>, vector<32x16xf32>, vector<8x16xf32> -> vector<8x16xf32>
    %770 = arith.addf %769, %7 : vector<8x16xf32>
    %771 = arith.mulf %754, %770 : vector<8x16xf32>
    %772 = arith.addf %744, %771 : vector<8x16xf32>
    %cst_219 = arith.constant dense<0.000000e+00> : vector<8x32xf32>
    %773 = tpu.matmul %772, %0, %cst_219 {dimension_numbers = #tpu.dot_dimension_numbers<[1], [0], [0], [1], [0, 0, 1, 1], [], []>} : vector<8x16xf32>, vector<16x32xf32>, vector<8x32xf32> -> vector<8x32xf32>
    %774 = arith.addf %773, %4 : vector<8x32xf32>
    %775 = math.tanh %774 : vector<8x32xf32>
    %cst_220 = arith.constant dense<0.000000e+00> : vector<8x16xf32>
    %776 = tpu.matmul %775, %1, %cst_220 {dimension_numbers = #tpu.dot_dimension_numbers<[1], [0], [0], [1], [0, 0, 1, 1], [], []>} : vector<8x32xf32>, vector<32x16xf32>, vector<8x16xf32> -> vector<8x16xf32>
    %777 = arith.addf %776, %7 : vector<8x16xf32>
    %778 = arith.mulf %750, %777 : vector<8x16xf32>
    %779 = arith.addf %744, %778 : vector<8x16xf32>
    %cst_221 = arith.constant dense<0.000000e+00> : vector<8x32xf32>
    %780 = tpu.matmul %779, %0, %cst_221 {dimension_numbers = #tpu.dot_dimension_numbers<[1], [0], [0], [1], [0, 0, 1, 1], [], []>} : vector<8x16xf32>, vector<16x32xf32>, vector<8x32xf32> -> vector<8x32xf32>
    %781 = arith.addf %780, %4 : vector<8x32xf32>
    %782 = math.tanh %781 : vector<8x32xf32>
    %cst_222 = arith.constant dense<0.000000e+00> : vector<8x16xf32>
    %783 = tpu.matmul %782, %1, %cst_222 {dimension_numbers = #tpu.dot_dimension_numbers<[1], [0], [0], [1], [0, 0, 1, 1], [], []>} : vector<8x32xf32>, vector<32x16xf32>, vector<8x16xf32> -> vector<8x16xf32>
    %784 = arith.addf %783, %7 : vector<8x16xf32>
    %785 = arith.addf %770, %770 : vector<8x16xf32>
    %786 = arith.addf %763, %785 : vector<8x16xf32>
    %787 = arith.addf %777, %777 : vector<8x16xf32>
    %788 = arith.addf %786, %787 : vector<8x16xf32>
    %789 = arith.addf %788, %784 : vector<8x16xf32>
    %790 = arith.mulf %758, %789 : vector<8x16xf32>
    %791 = arith.addf %744, %790 : vector<8x16xf32>
    %c1_i32_223 = arith.constant 1 : i32
    %cst_224 = arith.constant dense<0.000000e+00> : vector<8x32xf32>
    %792 = tpu.matmul %791, %0, %cst_224 {dimension_numbers = #tpu.dot_dimension_numbers<[1], [0], [0], [1], [0, 0, 1, 1], [], []>} : vector<8x16xf32>, vector<16x32xf32>, vector<8x32xf32> -> vector<8x32xf32>
    %793 = arith.addf %792, %4 : vector<8x32xf32>
    %794 = math.tanh %793 : vector<8x32xf32>
    %cst_225 = arith.constant dense<0.000000e+00> : vector<8x16xf32>
    %795 = tpu.matmul %794, %1, %cst_225 {dimension_numbers = #tpu.dot_dimension_numbers<[1], [0], [0], [1], [0, 0, 1, 1], [], []>} : vector<8x32xf32>, vector<32x16xf32>, vector<8x16xf32> -> vector<8x16xf32>
    %796 = arith.addf %795, %7 : vector<8x16xf32>
    %797 = arith.mulf %754, %796 : vector<8x16xf32>
    %798 = arith.addf %791, %797 : vector<8x16xf32>
    %cst_226 = arith.constant dense<0.000000e+00> : vector<8x32xf32>
    %799 = tpu.matmul %798, %0, %cst_226 {dimension_numbers = #tpu.dot_dimension_numbers<[1], [0], [0], [1], [0, 0, 1, 1], [], []>} : vector<8x16xf32>, vector<16x32xf32>, vector<8x32xf32> -> vector<8x32xf32>
    %800 = arith.addf %799, %4 : vector<8x32xf32>
    %801 = math.tanh %800 : vector<8x32xf32>
    %cst_227 = arith.constant dense<0.000000e+00> : vector<8x16xf32>
    %802 = tpu.matmul %801, %1, %cst_227 {dimension_numbers = #tpu.dot_dimension_numbers<[1], [0], [0], [1], [0, 0, 1, 1], [], []>} : vector<8x32xf32>, vector<32x16xf32>, vector<8x16xf32> -> vector<8x16xf32>
    %803 = arith.addf %802, %7 : vector<8x16xf32>
    %804 = arith.mulf %754, %803 : vector<8x16xf32>
    %805 = arith.addf %791, %804 : vector<8x16xf32>
    %cst_228 = arith.constant dense<0.000000e+00> : vector<8x32xf32>
    %806 = tpu.matmul %805, %0, %cst_228 {dimension_numbers = #tpu.dot_dimension_numbers<[1], [0], [0], [1], [0, 0, 1, 1], [], []>} : vector<8x16xf32>, vector<16x32xf32>, vector<8x32xf32> -> vector<8x32xf32>
    %807 = arith.addf %806, %4 : vector<8x32xf32>
    %808 = math.tanh %807 : vector<8x32xf32>
    %cst_229 = arith.constant dense<0.000000e+00> : vector<8x16xf32>
    %809 = tpu.matmul %808, %1, %cst_229 {dimension_numbers = #tpu.dot_dimension_numbers<[1], [0], [0], [1], [0, 0, 1, 1], [], []>} : vector<8x32xf32>, vector<32x16xf32>, vector<8x16xf32> -> vector<8x16xf32>
    %810 = arith.addf %809, %7 : vector<8x16xf32>
    %811 = arith.mulf %750, %810 : vector<8x16xf32>
    %812 = arith.addf %791, %811 : vector<8x16xf32>
    %cst_230 = arith.constant dense<0.000000e+00> : vector<8x32xf32>
    %813 = tpu.matmul %812, %0, %cst_230 {dimension_numbers = #tpu.dot_dimension_numbers<[1], [0], [0], [1], [0, 0, 1, 1], [], []>} : vector<8x16xf32>, vector<16x32xf32>, vector<8x32xf32> -> vector<8x32xf32>
    %814 = arith.addf %813, %4 : vector<8x32xf32>
    %815 = math.tanh %814 : vector<8x32xf32>
    %cst_231 = arith.constant dense<0.000000e+00> : vector<8x16xf32>
    %816 = tpu.matmul %815, %1, %cst_231 {dimension_numbers = #tpu.dot_dimension_numbers<[1], [0], [0], [1], [0, 0, 1, 1], [], []>} : vector<8x32xf32>, vector<32x16xf32>, vector<8x16xf32> -> vector<8x16xf32>
    %817 = arith.addf %816, %7 : vector<8x16xf32>
    %818 = arith.addf %803, %803 : vector<8x16xf32>
    %819 = arith.addf %796, %818 : vector<8x16xf32>
    %820 = arith.addf %810, %810 : vector<8x16xf32>
    %821 = arith.addf %819, %820 : vector<8x16xf32>
    %822 = arith.addf %821, %817 : vector<8x16xf32>
    %823 = arith.mulf %758, %822 : vector<8x16xf32>
    %824 = arith.addf %791, %823 : vector<8x16xf32>
    %c2_i32_232 = arith.constant 2 : i32
    %cst_233 = arith.constant dense<0.000000e+00> : vector<8x32xf32>
    %825 = tpu.matmul %824, %0, %cst_233 {dimension_numbers = #tpu.dot_dimension_numbers<[1], [0], [0], [1], [0, 0, 1, 1], [], []>} : vector<8x16xf32>, vector<16x32xf32>, vector<8x32xf32> -> vector<8x32xf32>
    %826 = arith.addf %825, %4 : vector<8x32xf32>
    %827 = math.tanh %826 : vector<8x32xf32>
    %cst_234 = arith.constant dense<0.000000e+00> : vector<8x16xf32>
    %828 = tpu.matmul %827, %1, %cst_234 {dimension_numbers = #tpu.dot_dimension_numbers<[1], [0], [0], [1], [0, 0, 1, 1], [], []>} : vector<8x32xf32>, vector<32x16xf32>, vector<8x16xf32> -> vector<8x16xf32>
    %829 = arith.addf %828, %7 : vector<8x16xf32>
    %830 = arith.mulf %754, %829 : vector<8x16xf32>
    %831 = arith.addf %824, %830 : vector<8x16xf32>
    %cst_235 = arith.constant dense<0.000000e+00> : vector<8x32xf32>
    %832 = tpu.matmul %831, %0, %cst_235 {dimension_numbers = #tpu.dot_dimension_numbers<[1], [0], [0], [1], [0, 0, 1, 1], [], []>} : vector<8x16xf32>, vector<16x32xf32>, vector<8x32xf32> -> vector<8x32xf32>
    %833 = arith.addf %832, %4 : vector<8x32xf32>
    %834 = math.tanh %833 : vector<8x32xf32>
    %cst_236 = arith.constant dense<0.000000e+00> : vector<8x16xf32>
    %835 = tpu.matmul %834, %1, %cst_236 {dimension_numbers = #tpu.dot_dimension_numbers<[1], [0], [0], [1], [0, 0, 1, 1], [], []>} : vector<8x32xf32>, vector<32x16xf32>, vector<8x16xf32> -> vector<8x16xf32>
    %836 = arith.addf %835, %7 : vector<8x16xf32>
    %837 = arith.mulf %754, %836 : vector<8x16xf32>
    %838 = arith.addf %824, %837 : vector<8x16xf32>
    %cst_237 = arith.constant dense<0.000000e+00> : vector<8x32xf32>
    %839 = tpu.matmul %838, %0, %cst_237 {dimension_numbers = #tpu.dot_dimension_numbers<[1], [0], [0], [1], [0, 0, 1, 1], [], []>} : vector<8x16xf32>, vector<16x32xf32>, vector<8x32xf32> -> vector<8x32xf32>
    %840 = arith.addf %839, %4 : vector<8x32xf32>
    %841 = math.tanh %840 : vector<8x32xf32>
    %cst_238 = arith.constant dense<0.000000e+00> : vector<8x16xf32>
    %842 = tpu.matmul %841, %1, %cst_238 {dimension_numbers = #tpu.dot_dimension_numbers<[1], [0], [0], [1], [0, 0, 1, 1], [], []>} : vector<8x32xf32>, vector<32x16xf32>, vector<8x16xf32> -> vector<8x16xf32>
    %843 = arith.addf %842, %7 : vector<8x16xf32>
    %844 = arith.mulf %750, %843 : vector<8x16xf32>
    %845 = arith.addf %824, %844 : vector<8x16xf32>
    %cst_239 = arith.constant dense<0.000000e+00> : vector<8x32xf32>
    %846 = tpu.matmul %845, %0, %cst_239 {dimension_numbers = #tpu.dot_dimension_numbers<[1], [0], [0], [1], [0, 0, 1, 1], [], []>} : vector<8x16xf32>, vector<16x32xf32>, vector<8x32xf32> -> vector<8x32xf32>
    %847 = arith.addf %846, %4 : vector<8x32xf32>
    %848 = math.tanh %847 : vector<8x32xf32>
    %cst_240 = arith.constant dense<0.000000e+00> : vector<8x16xf32>
    %849 = tpu.matmul %848, %1, %cst_240 {dimension_numbers = #tpu.dot_dimension_numbers<[1], [0], [0], [1], [0, 0, 1, 1], [], []>} : vector<8x32xf32>, vector<32x16xf32>, vector<8x16xf32> -> vector<8x16xf32>
    %850 = arith.addf %849, %7 : vector<8x16xf32>
    %851 = arith.addf %836, %836 : vector<8x16xf32>
    %852 = arith.addf %829, %851 : vector<8x16xf32>
    %853 = arith.addf %843, %843 : vector<8x16xf32>
    %854 = arith.addf %852, %853 : vector<8x16xf32>
    %855 = arith.addf %854, %850 : vector<8x16xf32>
    %856 = arith.mulf %758, %855 : vector<8x16xf32>
    %857 = arith.addf %824, %856 : vector<8x16xf32>
    %c3_i32_241 = arith.constant 3 : i32
    %cst_242 = arith.constant dense<0.000000e+00> : vector<8x32xf32>
    %858 = tpu.matmul %857, %0, %cst_242 {dimension_numbers = #tpu.dot_dimension_numbers<[1], [0], [0], [1], [0, 0, 1, 1], [], []>} : vector<8x16xf32>, vector<16x32xf32>, vector<8x32xf32> -> vector<8x32xf32>
    %859 = arith.addf %858, %4 : vector<8x32xf32>
    %860 = math.tanh %859 : vector<8x32xf32>
    %cst_243 = arith.constant dense<0.000000e+00> : vector<8x16xf32>
    %861 = tpu.matmul %860, %1, %cst_243 {dimension_numbers = #tpu.dot_dimension_numbers<[1], [0], [0], [1], [0, 0, 1, 1], [], []>} : vector<8x32xf32>, vector<32x16xf32>, vector<8x16xf32> -> vector<8x16xf32>
    %862 = arith.addf %861, %7 : vector<8x16xf32>
    %863 = arith.mulf %754, %862 : vector<8x16xf32>
    %864 = arith.addf %857, %863 : vector<8x16xf32>
    %cst_244 = arith.constant dense<0.000000e+00> : vector<8x32xf32>
    %865 = tpu.matmul %864, %0, %cst_244 {dimension_numbers = #tpu.dot_dimension_numbers<[1], [0], [0], [1], [0, 0, 1, 1], [], []>} : vector<8x16xf32>, vector<16x32xf32>, vector<8x32xf32> -> vector<8x32xf32>
    %866 = arith.addf %865, %4 : vector<8x32xf32>
    %867 = math.tanh %866 : vector<8x32xf32>
    %cst_245 = arith.constant dense<0.000000e+00> : vector<8x16xf32>
    %868 = tpu.matmul %867, %1, %cst_245 {dimension_numbers = #tpu.dot_dimension_numbers<[1], [0], [0], [1], [0, 0, 1, 1], [], []>} : vector<8x32xf32>, vector<32x16xf32>, vector<8x16xf32> -> vector<8x16xf32>
    %869 = arith.addf %868, %7 : vector<8x16xf32>
    %870 = arith.mulf %754, %869 : vector<8x16xf32>
    %871 = arith.addf %857, %870 : vector<8x16xf32>
    %cst_246 = arith.constant dense<0.000000e+00> : vector<8x32xf32>
    %872 = tpu.matmul %871, %0, %cst_246 {dimension_numbers = #tpu.dot_dimension_numbers<[1], [0], [0], [1], [0, 0, 1, 1], [], []>} : vector<8x16xf32>, vector<16x32xf32>, vector<8x32xf32> -> vector<8x32xf32>
    %873 = arith.addf %872, %4 : vector<8x32xf32>
    %874 = math.tanh %873 : vector<8x32xf32>
    %cst_247 = arith.constant dense<0.000000e+00> : vector<8x16xf32>
    %875 = tpu.matmul %874, %1, %cst_247 {dimension_numbers = #tpu.dot_dimension_numbers<[1], [0], [0], [1], [0, 0, 1, 1], [], []>} : vector<8x32xf32>, vector<32x16xf32>, vector<8x16xf32> -> vector<8x16xf32>
    %876 = arith.addf %875, %7 : vector<8x16xf32>
    %877 = arith.mulf %750, %876 : vector<8x16xf32>
    %878 = arith.addf %857, %877 : vector<8x16xf32>
    %cst_248 = arith.constant dense<0.000000e+00> : vector<8x32xf32>
    %879 = tpu.matmul %878, %0, %cst_248 {dimension_numbers = #tpu.dot_dimension_numbers<[1], [0], [0], [1], [0, 0, 1, 1], [], []>} : vector<8x16xf32>, vector<16x32xf32>, vector<8x32xf32> -> vector<8x32xf32>
    %880 = arith.addf %879, %4 : vector<8x32xf32>
    %881 = math.tanh %880 : vector<8x32xf32>
    %cst_249 = arith.constant dense<0.000000e+00> : vector<8x16xf32>
    %882 = tpu.matmul %881, %1, %cst_249 {dimension_numbers = #tpu.dot_dimension_numbers<[1], [0], [0], [1], [0, 0, 1, 1], [], []>} : vector<8x32xf32>, vector<32x16xf32>, vector<8x16xf32> -> vector<8x16xf32>
    %883 = arith.addf %882, %7 : vector<8x16xf32>
    %884 = arith.addf %869, %869 : vector<8x16xf32>
    %885 = arith.addf %862, %884 : vector<8x16xf32>
    %886 = arith.addf %876, %876 : vector<8x16xf32>
    %887 = arith.addf %885, %886 : vector<8x16xf32>
    %888 = arith.addf %887, %883 : vector<8x16xf32>
    %889 = arith.mulf %758, %888 : vector<8x16xf32>
    %890 = arith.addf %857, %889 : vector<8x16xf32>
    %c0_250 = arith.constant 0 : index
    %c96 = arith.constant 96 : index
    %891 = vector.load %arg8[%c0_250, %c96] : memref<8x128xf32, #tpu.memory_space<vmem>>, vector<8x16xf32>
    tpu.vector_store %arg8[%c0_250, %c96], %890 {strides = array<i32>} : memref<8x128xf32, #tpu.memory_space<vmem>>, vector<8x16xf32>,
    %c8_i32_251 = arith.constant 8 : i32
    %892 = arith.muli %arg1, %c8_i32_251 : i32
    %c7_i32 = arith.constant 7 : i32
    %893 = arith.addi %892, %c7_i32 : i32
    %894 = arith.index_cast %893 : i32 to index
    %895 = memref.load %arg2[%894] : memref<24xf32, #tpu.memory_space<smem>>
    %896 = vector.broadcast %895 : f32 to vector<8x16xf32>
    %c8_i32_252 = arith.constant 8 : i32
    %897 = arith.addi %c8_i32_252, %893 : i32
    %898 = arith.index_cast %897 : i32 to index
    %899 = memref.load %arg2[%898] : memref<24xf32, #tpu.memory_space<smem>>
    %900 = vector.broadcast %899 : f32 to vector<8x16xf32>
    %c16_i32_253 = arith.constant 16 : i32
    %901 = arith.addi %c16_i32_253, %893 : i32
    %902 = arith.index_cast %901 : i32 to index
    %903 = memref.load %arg2[%902] : memref<24xf32, #tpu.memory_space<smem>>
    %904 = vector.broadcast %903 : f32 to vector<8x16xf32>
    %c0_i32_254 = arith.constant 0 : i32
    %cst_255 = arith.constant dense<0.000000e+00> : vector<8x32xf32>
    %905 = tpu.matmul %890, %0, %cst_255 {dimension_numbers = #tpu.dot_dimension_numbers<[1], [0], [0], [1], [0, 0, 1, 1], [], []>} : vector<8x16xf32>, vector<16x32xf32>, vector<8x32xf32> -> vector<8x32xf32>
    %906 = arith.addf %905, %4 : vector<8x32xf32>
    %907 = math.tanh %906 : vector<8x32xf32>
    %cst_256 = arith.constant dense<0.000000e+00> : vector<8x16xf32>
    %908 = tpu.matmul %907, %1, %cst_256 {dimension_numbers = #tpu.dot_dimension_numbers<[1], [0], [0], [1], [0, 0, 1, 1], [], []>} : vector<8x32xf32>, vector<32x16xf32>, vector<8x16xf32> -> vector<8x16xf32>
    %909 = arith.addf %908, %7 : vector<8x16xf32>
    %910 = arith.mulf %900, %909 : vector<8x16xf32>
    %911 = arith.addf %890, %910 : vector<8x16xf32>
    %cst_257 = arith.constant dense<0.000000e+00> : vector<8x32xf32>
    %912 = tpu.matmul %911, %0, %cst_257 {dimension_numbers = #tpu.dot_dimension_numbers<[1], [0], [0], [1], [0, 0, 1, 1], [], []>} : vector<8x16xf32>, vector<16x32xf32>, vector<8x32xf32> -> vector<8x32xf32>
    %913 = arith.addf %912, %4 : vector<8x32xf32>
    %914 = math.tanh %913 : vector<8x32xf32>
    %cst_258 = arith.constant dense<0.000000e+00> : vector<8x16xf32>
    %915 = tpu.matmul %914, %1, %cst_258 {dimension_numbers = #tpu.dot_dimension_numbers<[1], [0], [0], [1], [0, 0, 1, 1], [], []>} : vector<8x32xf32>, vector<32x16xf32>, vector<8x16xf32> -> vector<8x16xf32>
    %916 = arith.addf %915, %7 : vector<8x16xf32>
    %917 = arith.mulf %900, %916 : vector<8x16xf32>
    %918 = arith.addf %890, %917 : vector<8x16xf32>
    %cst_259 = arith.constant dense<0.000000e+00> : vector<8x32xf32>
    %919 = tpu.matmul %918, %0, %cst_259 {dimension_numbers = #tpu.dot_dimension_numbers<[1], [0], [0], [1], [0, 0, 1, 1], [], []>} : vector<8x16xf32>, vector<16x32xf32>, vector<8x32xf32> -> vector<8x32xf32>
    %920 = arith.addf %919, %4 : vector<8x32xf32>
    %921 = math.tanh %920 : vector<8x32xf32>
    %cst_260 = arith.constant dense<0.000000e+00> : vector<8x16xf32>
    %922 = tpu.matmul %921, %1, %cst_260 {dimension_numbers = #tpu.dot_dimension_numbers<[1], [0], [0], [1], [0, 0, 1, 1], [], []>} : vector<8x32xf32>, vector<32x16xf32>, vector<8x16xf32> -> vector<8x16xf32>
    %923 = arith.addf %922, %7 : vector<8x16xf32>
    %924 = arith.mulf %896, %923 : vector<8x16xf32>
    %925 = arith.addf %890, %924 : vector<8x16xf32>
    %cst_261 = arith.constant dense<0.000000e+00> : vector<8x32xf32>
    %926 = tpu.matmul %925, %0, %cst_261 {dimension_numbers = #tpu.dot_dimension_numbers<[1], [0], [0], [1], [0, 0, 1, 1], [], []>} : vector<8x16xf32>, vector<16x32xf32>, vector<8x32xf32> -> vector<8x32xf32>
    %927 = arith.addf %926, %4 : vector<8x32xf32>
    %928 = math.tanh %927 : vector<8x32xf32>
    %cst_262 = arith.constant dense<0.000000e+00> : vector<8x16xf32>
    %929 = tpu.matmul %928, %1, %cst_262 {dimension_numbers = #tpu.dot_dimension_numbers<[1], [0], [0], [1], [0, 0, 1, 1], [], []>} : vector<8x32xf32>, vector<32x16xf32>, vector<8x16xf32> -> vector<8x16xf32>
    %930 = arith.addf %929, %7 : vector<8x16xf32>
    %931 = arith.addf %916, %916 : vector<8x16xf32>
    %932 = arith.addf %909, %931 : vector<8x16xf32>
    %933 = arith.addf %923, %923 : vector<8x16xf32>
    %934 = arith.addf %932, %933 : vector<8x16xf32>
    %935 = arith.addf %934, %930 : vector<8x16xf32>
    %936 = arith.mulf %904, %935 : vector<8x16xf32>
    %937 = arith.addf %890, %936 : vector<8x16xf32>
    %c1_i32_263 = arith.constant 1 : i32
    %cst_264 = arith.constant dense<0.000000e+00> : vector<8x32xf32>
    %938 = tpu.matmul %937, %0, %cst_264 {dimension_numbers = #tpu.dot_dimension_numbers<[1], [0], [0], [1], [0, 0, 1, 1], [], []>} : vector<8x16xf32>, vector<16x32xf32>, vector<8x32xf32> -> vector<8x32xf32>
    %939 = arith.addf %938, %4 : vector<8x32xf32>
    %940 = math.tanh %939 : vector<8x32xf32>
    %cst_265 = arith.constant dense<0.000000e+00> : vector<8x16xf32>
    %941 = tpu.matmul %940, %1, %cst_265 {dimension_numbers = #tpu.dot_dimension_numbers<[1], [0], [0], [1], [0, 0, 1, 1], [], []>} : vector<8x32xf32>, vector<32x16xf32>, vector<8x16xf32> -> vector<8x16xf32>
    %942 = arith.addf %941, %7 : vector<8x16xf32>
    %943 = arith.mulf %900, %942 : vector<8x16xf32>
    %944 = arith.addf %937, %943 : vector<8x16xf32>
    %cst_266 = arith.constant dense<0.000000e+00> : vector<8x32xf32>
    %945 = tpu.matmul %944, %0, %cst_266 {dimension_numbers = #tpu.dot_dimension_numbers<[1], [0], [0], [1], [0, 0, 1, 1], [], []>} : vector<8x16xf32>, vector<16x32xf32>, vector<8x32xf32> -> vector<8x32xf32>
    %946 = arith.addf %945, %4 : vector<8x32xf32>
    %947 = math.tanh %946 : vector<8x32xf32>
    %cst_267 = arith.constant dense<0.000000e+00> : vector<8x16xf32>
    %948 = tpu.matmul %947, %1, %cst_267 {dimension_numbers = #tpu.dot_dimension_numbers<[1], [0], [0], [1], [0, 0, 1, 1], [], []>} : vector<8x32xf32>, vector<32x16xf32>, vector<8x16xf32> -> vector<8x16xf32>
    %949 = arith.addf %948, %7 : vector<8x16xf32>
    %950 = arith.mulf %900, %949 : vector<8x16xf32>
    %951 = arith.addf %937, %950 : vector<8x16xf32>
    %cst_268 = arith.constant dense<0.000000e+00> : vector<8x32xf32>
    %952 = tpu.matmul %951, %0, %cst_268 {dimension_numbers = #tpu.dot_dimension_numbers<[1], [0], [0], [1], [0, 0, 1, 1], [], []>} : vector<8x16xf32>, vector<16x32xf32>, vector<8x32xf32> -> vector<8x32xf32>
    %953 = arith.addf %952, %4 : vector<8x32xf32>
    %954 = math.tanh %953 : vector<8x32xf32>
    %cst_269 = arith.constant dense<0.000000e+00> : vector<8x16xf32>
    %955 = tpu.matmul %954, %1, %cst_269 {dimension_numbers = #tpu.dot_dimension_numbers<[1], [0], [0], [1], [0, 0, 1, 1], [], []>} : vector<8x32xf32>, vector<32x16xf32>, vector<8x16xf32> -> vector<8x16xf32>
    %956 = arith.addf %955, %7 : vector<8x16xf32>
    %957 = arith.mulf %896, %956 : vector<8x16xf32>
    %958 = arith.addf %937, %957 : vector<8x16xf32>
    %cst_270 = arith.constant dense<0.000000e+00> : vector<8x32xf32>
    %959 = tpu.matmul %958, %0, %cst_270 {dimension_numbers = #tpu.dot_dimension_numbers<[1], [0], [0], [1], [0, 0, 1, 1], [], []>} : vector<8x16xf32>, vector<16x32xf32>, vector<8x32xf32> -> vector<8x32xf32>
    %960 = arith.addf %959, %4 : vector<8x32xf32>
    %961 = math.tanh %960 : vector<8x32xf32>
    %cst_271 = arith.constant dense<0.000000e+00> : vector<8x16xf32>
    %962 = tpu.matmul %961, %1, %cst_271 {dimension_numbers = #tpu.dot_dimension_numbers<[1], [0], [0], [1], [0, 0, 1, 1], [], []>} : vector<8x32xf32>, vector<32x16xf32>, vector<8x16xf32> -> vector<8x16xf32>
    %963 = arith.addf %962, %7 : vector<8x16xf32>
    %964 = arith.addf %949, %949 : vector<8x16xf32>
    %965 = arith.addf %942, %964 : vector<8x16xf32>
    %966 = arith.addf %956, %956 : vector<8x16xf32>
    %967 = arith.addf %965, %966 : vector<8x16xf32>
    %968 = arith.addf %967, %963 : vector<8x16xf32>
    %969 = arith.mulf %904, %968 : vector<8x16xf32>
    %970 = arith.addf %937, %969 : vector<8x16xf32>
    %c2_i32_272 = arith.constant 2 : i32
    %cst_273 = arith.constant dense<0.000000e+00> : vector<8x32xf32>
    %971 = tpu.matmul %970, %0, %cst_273 {dimension_numbers = #tpu.dot_dimension_numbers<[1], [0], [0], [1], [0, 0, 1, 1], [], []>} : vector<8x16xf32>, vector<16x32xf32>, vector<8x32xf32> -> vector<8x32xf32>
    %972 = arith.addf %971, %4 : vector<8x32xf32>
    %973 = math.tanh %972 : vector<8x32xf32>
    %cst_274 = arith.constant dense<0.000000e+00> : vector<8x16xf32>
    %974 = tpu.matmul %973, %1, %cst_274 {dimension_numbers = #tpu.dot_dimension_numbers<[1], [0], [0], [1], [0, 0, 1, 1], [], []>} : vector<8x32xf32>, vector<32x16xf32>, vector<8x16xf32> -> vector<8x16xf32>
    %975 = arith.addf %974, %7 : vector<8x16xf32>
    %976 = arith.mulf %900, %975 : vector<8x16xf32>
    %977 = arith.addf %970, %976 : vector<8x16xf32>
    %cst_275 = arith.constant dense<0.000000e+00> : vector<8x32xf32>
    %978 = tpu.matmul %977, %0, %cst_275 {dimension_numbers = #tpu.dot_dimension_numbers<[1], [0], [0], [1], [0, 0, 1, 1], [], []>} : vector<8x16xf32>, vector<16x32xf32>, vector<8x32xf32> -> vector<8x32xf32>
    %979 = arith.addf %978, %4 : vector<8x32xf32>
    %980 = math.tanh %979 : vector<8x32xf32>
    %cst_276 = arith.constant dense<0.000000e+00> : vector<8x16xf32>
    %981 = tpu.matmul %980, %1, %cst_276 {dimension_numbers = #tpu.dot_dimension_numbers<[1], [0], [0], [1], [0, 0, 1, 1], [], []>} : vector<8x32xf32>, vector<32x16xf32>, vector<8x16xf32> -> vector<8x16xf32>
    %982 = arith.addf %981, %7 : vector<8x16xf32>
    %983 = arith.mulf %900, %982 : vector<8x16xf32>
    %984 = arith.addf %970, %983 : vector<8x16xf32>
    %cst_277 = arith.constant dense<0.000000e+00> : vector<8x32xf32>
    %985 = tpu.matmul %984, %0, %cst_277 {dimension_numbers = #tpu.dot_dimension_numbers<[1], [0], [0], [1], [0, 0, 1, 1], [], []>} : vector<8x16xf32>, vector<16x32xf32>, vector<8x32xf32> -> vector<8x32xf32>
    %986 = arith.addf %985, %4 : vector<8x32xf32>
    %987 = math.tanh %986 : vector<8x32xf32>
    %cst_278 = arith.constant dense<0.000000e+00> : vector<8x16xf32>
    %988 = tpu.matmul %987, %1, %cst_278 {dimension_numbers = #tpu.dot_dimension_numbers<[1], [0], [0], [1], [0, 0, 1, 1], [], []>} : vector<8x32xf32>, vector<32x16xf32>, vector<8x16xf32> -> vector<8x16xf32>
    %989 = arith.addf %988, %7 : vector<8x16xf32>
    %990 = arith.mulf %896, %989 : vector<8x16xf32>
    %991 = arith.addf %970, %990 : vector<8x16xf32>
    %cst_279 = arith.constant dense<0.000000e+00> : vector<8x32xf32>
    %992 = tpu.matmul %991, %0, %cst_279 {dimension_numbers = #tpu.dot_dimension_numbers<[1], [0], [0], [1], [0, 0, 1, 1], [], []>} : vector<8x16xf32>, vector<16x32xf32>, vector<8x32xf32> -> vector<8x32xf32>
    %993 = arith.addf %992, %4 : vector<8x32xf32>
    %994 = math.tanh %993 : vector<8x32xf32>
    %cst_280 = arith.constant dense<0.000000e+00> : vector<8x16xf32>
    %995 = tpu.matmul %994, %1, %cst_280 {dimension_numbers = #tpu.dot_dimension_numbers<[1], [0], [0], [1], [0, 0, 1, 1], [], []>} : vector<8x32xf32>, vector<32x16xf32>, vector<8x16xf32> -> vector<8x16xf32>
    %996 = arith.addf %995, %7 : vector<8x16xf32>
    %997 = arith.addf %982, %982 : vector<8x16xf32>
    %998 = arith.addf %975, %997 : vector<8x16xf32>
    %999 = arith.addf %989, %989 : vector<8x16xf32>
    %1000 = arith.addf %998, %999 : vector<8x16xf32>
    %1001 = arith.addf %1000, %996 : vector<8x16xf32>
    %1002 = arith.mulf %904, %1001 : vector<8x16xf32>
    %1003 = arith.addf %970, %1002 : vector<8x16xf32>
    %c3_i32_281 = arith.constant 3 : i32
    %cst_282 = arith.constant dense<0.000000e+00> : vector<8x32xf32>
    %1004 = tpu.matmul %1003, %0, %cst_282 {dimension_numbers = #tpu.dot_dimension_numbers<[1], [0], [0], [1], [0, 0, 1, 1], [], []>} : vector<8x16xf32>, vector<16x32xf32>, vector<8x32xf32> -> vector<8x32xf32>
    %1005 = arith.addf %1004, %4 : vector<8x32xf32>
    %1006 = math.tanh %1005 : vector<8x32xf32>
    %cst_283 = arith.constant dense<0.000000e+00> : vector<8x16xf32>
    %1007 = tpu.matmul %1006, %1, %cst_283 {dimension_numbers = #tpu.dot_dimension_numbers<[1], [0], [0], [1], [0, 0, 1, 1], [], []>} : vector<8x32xf32>, vector<32x16xf32>, vector<8x16xf32> -> vector<8x16xf32>
    %1008 = arith.addf %1007, %7 : vector<8x16xf32>
    %1009 = arith.mulf %900, %1008 : vector<8x16xf32>
    %1010 = arith.addf %1003, %1009 : vector<8x16xf32>
    %cst_284 = arith.constant dense<0.000000e+00> : vector<8x32xf32>
    %1011 = tpu.matmul %1010, %0, %cst_284 {dimension_numbers = #tpu.dot_dimension_numbers<[1], [0], [0], [1], [0, 0, 1, 1], [], []>} : vector<8x16xf32>, vector<16x32xf32>, vector<8x32xf32> -> vector<8x32xf32>
    %1012 = arith.addf %1011, %4 : vector<8x32xf32>
    %1013 = math.tanh %1012 : vector<8x32xf32>
    %cst_285 = arith.constant dense<0.000000e+00> : vector<8x16xf32>
    %1014 = tpu.matmul %1013, %1, %cst_285 {dimension_numbers = #tpu.dot_dimension_numbers<[1], [0], [0], [1], [0, 0, 1, 1], [], []>} : vector<8x32xf32>, vector<32x16xf32>, vector<8x16xf32> -> vector<8x16xf32>
    %1015 = arith.addf %1014, %7 : vector<8x16xf32>
    %1016 = arith.mulf %900, %1015 : vector<8x16xf32>
    %1017 = arith.addf %1003, %1016 : vector<8x16xf32>
    %cst_286 = arith.constant dense<0.000000e+00> : vector<8x32xf32>
    %1018 = tpu.matmul %1017, %0, %cst_286 {dimension_numbers = #tpu.dot_dimension_numbers<[1], [0], [0], [1], [0, 0, 1, 1], [], []>} : vector<8x16xf32>, vector<16x32xf32>, vector<8x32xf32> -> vector<8x32xf32>
    %1019 = arith.addf %1018, %4 : vector<8x32xf32>
    %1020 = math.tanh %1019 : vector<8x32xf32>
    %cst_287 = arith.constant dense<0.000000e+00> : vector<8x16xf32>
    %1021 = tpu.matmul %1020, %1, %cst_287 {dimension_numbers = #tpu.dot_dimension_numbers<[1], [0], [0], [1], [0, 0, 1, 1], [], []>} : vector<8x32xf32>, vector<32x16xf32>, vector<8x16xf32> -> vector<8x16xf32>
    %1022 = arith.addf %1021, %7 : vector<8x16xf32>
    %1023 = arith.mulf %896, %1022 : vector<8x16xf32>
    %1024 = arith.addf %1003, %1023 : vector<8x16xf32>
    %cst_288 = arith.constant dense<0.000000e+00> : vector<8x32xf32>
    %1025 = tpu.matmul %1024, %0, %cst_288 {dimension_numbers = #tpu.dot_dimension_numbers<[1], [0], [0], [1], [0, 0, 1, 1], [], []>} : vector<8x16xf32>, vector<16x32xf32>, vector<8x32xf32> -> vector<8x32xf32>
    %1026 = arith.addf %1025, %4 : vector<8x32xf32>
    %1027 = math.tanh %1026 : vector<8x32xf32>
    %cst_289 = arith.constant dense<0.000000e+00> : vector<8x16xf32>
    %1028 = tpu.matmul %1027, %1, %cst_289 {dimension_numbers = #tpu.dot_dimension_numbers<[1], [0], [0], [1], [0, 0, 1, 1], [], []>} : vector<8x32xf32>, vector<32x16xf32>, vector<8x16xf32> -> vector<8x16xf32>
    %1029 = arith.addf %1028, %7 : vector<8x16xf32>
    %1030 = arith.addf %1015, %1015 : vector<8x16xf32>
    %1031 = arith.addf %1008, %1030 : vector<8x16xf32>
    %1032 = arith.addf %1022, %1022 : vector<8x16xf32>
    %1033 = arith.addf %1031, %1032 : vector<8x16xf32>
    %1034 = arith.addf %1033, %1029 : vector<8x16xf32>
    %1035 = arith.mulf %904, %1034 : vector<8x16xf32>
    %1036 = arith.addf %1003, %1035 : vector<8x16xf32>
    %c0_290 = arith.constant 0 : index
    %c112 = arith.constant 112 : index
    %1037 = vector.load %arg8[%c0_290, %c112] : memref<8x128xf32, #tpu.memory_space<vmem>>, vector<8x16xf32>
    tpu.vector_store %arg8[%c0_290, %c112], %1036 {strides = array<i32>} : memref<8x128xf32, #tpu.memory_space<vmem>>, vector<8x16xf32>,
    %c0_291 = arith.constant 0 : index
    %c0_292 = arith.constant 0 : index
    %1038 = vector.load %arg9[%c0_291, %c0_292] : memref<8x16xf32, #tpu.memory_space<vmem>>, vector<8x16xf32>
    tpu.vector_store %arg9[%c0_291, %c0_292], %1036 {strides = array<i32>} : memref<8x16xf32, #tpu.memory_space<vmem>>, vector<8x16xf32>,
    return
  }
  func.func @transform_0(%arg0: i32, %arg1: i32) -> i32 {
    %c0_i32 = arith.constant 0 : i32
    %c0_i32_0 = arith.constant 0 : i32
    return %c0_i32 : i32
  }
  func.func @transform_1(%arg0: i32, %arg1: i32) -> (i32, i32) {
    %c0_i32 = arith.constant 0 : i32
    %c0_i32_0 = arith.constant 0 : i32
    return %arg0, %c0_i32 : i32, i32
  }
  func.func @transform_2(%arg0: i32, %arg1: i32) -> (i32, i32) {
    %c0_i32 = arith.constant 0 : i32
    %c0_i32_0 = arith.constant 0 : i32
    %c0_i32_1 = arith.constant 0 : i32
    return %c0_i32, %c0_i32_0 : i32, i32
  }
  func.func @transform_3(%arg0: i32, %arg1: i32) -> (i32, i32) {
    %c0_i32 = arith.constant 0 : i32
    %c0_i32_0 = arith.constant 0 : i32
    %c0_i32_1 = arith.constant 0 : i32
    return %c0_i32, %c0_i32_0 : i32, i32
  }
  func.func @transform_4(%arg0: i32, %arg1: i32) -> (i32, i32) {
    %c0_i32 = arith.constant 0 : i32
    %c0_i32_0 = arith.constant 0 : i32
    %c0_i32_1 = arith.constant 0 : i32
    return %c0_i32, %c0_i32_0 : i32, i32
  }
  func.func @transform_5(%arg0: i32, %arg1: i32) -> (i32, i32) {
    %c0_i32 = arith.constant 0 : i32
    %c0_i32_0 = arith.constant 0 : i32
    %c0_i32_1 = arith.constant 0 : i32
    return %c0_i32, %c0_i32_0 : i32, i32
  }
  func.func @transform_6(%arg0: i32, %arg1: i32) -> (i32, i32) {
    %c0_i32 = arith.constant 0 : i32
    return %arg0, %arg1 : i32, i32
  }
}

</mosaic_0001>

<bundles_post_ra>
// kernel: tpu_custom_call.1
= control target key start
LH: loop header
LB: loop body
LE: loop exit
PB: predicated region body
PF: predicated region fallthrough
CT: control target
= control target key end

     0   :  { %11 = vsyncpa [#allocation5], 0  ;;  %s8893_s0 = inlined_call_operand.vmem [shape: f32[24], index: 0, kind: input, shape index: {}]   ;;  %s8894_s1 = inlined_call_operand.vmem [shape: f32[8,16], index: 1, kind: input, shape index: {}]   ;;  %s8895_s2 = inlined_call_operand.vmem [shape: f32[16,32], index: 2, kind: input, shape index: {}]   ;;  %s8896_s3 = inlined_call_operand.vmem [shape: f32[1,32], index: 3, kind: input, shape index: {}]   ;;  %s8897_s4 = inlined_call_operand.vmem [shape: f32[32,16], index: 4, kind: input, shape index: {}]   ;;  %s8898_s5 = inlined_call_operand.vmem [shape: f32[1,16], index: 5, kind: input, shape index: {}]   ;;  %s8899_s6 = inlined_call_operand.hbm [shape: f32[8,128], index: 6, kind: output, shape index: {}]  }
   0x1   :  { %12 = vsyncpa [#allocation4], 0  ;;  %s18_s23 = sshll.u32 %s8893_s0, 4  ;;  %s7207_s24 = smov [#allocation3]   ;;  %s19_s23 = int_to_ptr.vmem [resolvable:$true] %s18_s23 }
   0x2   :  { %21 = dma.vmem_to_smem %s19_s23, 16, %s7207_s24, [#allocation5]  }
   0x3   :  { %7203 = dma.done.wait [#allocation5], 16  }
   0x4   :  { %7204 = vsyncadd [#allocation5], 4294967280 }
   0x5   :  { %36 = sfence }
   0x6   :  { %v7257_v0 = vld [vmem:[%s8895_s2 + $0x8] sm:$0xff]  ;;  %v7262_v1 = vld [vmem:[%s8895_s2] sm:$0xff]  ;;  %vm56_vm0 = vcmask 130048   ;;  %v7285_v4 = vld [vmem:[%s8897_s4 + $0x18] sm:$0xff]  ;;  %vm916_vm1 = vcmask 261120   ;;  %s6664_s15 = sld [smem:[#allocation3 + $0x9]] }
   0x7   :  { %v55_v2 = vld [vmem:[%s8894_s1] sm:$0xff]  ;;  %909 = vmatpush.msra.mxu0 %v7257_v0  ;;  %959 = vmatpush.msra.mxu2 %v7257_v0  ;;  %v7291_v5 = vld [vmem:[%s8897_s4 + $0x10] sm:$0xff]  ;;  %v7297_v6 = vld [vmem:[%s8897_s4 + $0x8] sm:$0xff]  ;;  %s6663_s18 = sld [smem:[#allocation3 + $0x1]]  ;;  %s7208_s20 = smov 16   ;;  %vm1701_vm2 = vcmask 261248  }
   0x8   :  { %57 = vst.msk [vmem:[#allocation2] sm:$0xff] %vm56_vm0, %v55_v2  ;;  %932 = vmatpush.msra.mxu1 %v7285_v4  ;;  %981 = vmatpush.msra.mxu3 %v7285_v4  ;;  %v7305_v7 = vld [vmem:[%s8897_s4] sm:$0xff]  ;;  %s6665_s19 = sld [smem:[#allocation3 + $0x11]]  ;;  %s7209_s14 = smov 32   ;;  %vm2519_vm3 = vcmask 392448   ;;  %vm3337_vm4 = vcmask 523648  }
   0x9   :  { %910 = vmatpush.msra.mxu0 %v7262_v1  ;;  %960 = vmatpush.msra.mxu2 %v7262_v1  ;;  %v7323_v8 = vld [vmem:[%s8896_s3] ss:$0 sm:$0xff]  ;;  %s6699_s21 = sld [smem:[#allocation3 + $0xa]]  ;;  %s7211_s12 = smov 64   ;;  %vm4155_vm5 = vcmask 654848   ;;  %vm4973_vm6 = vcmask 786048  }
   0xa   :  { %933 = vmatpush.msra.mxu1 %v7291_v5  ;;  %982 = vmatpush.msra.mxu3 %v7291_v5  ;;  %v7332_v12 = vld [vmem:[%s8898_s5] ss:$0 sm:$0xff]  ;;  %s6698_s22 = sld [smem:[#allocation3 + $0x2]]  ;;  %vm5791_vm7 = vcmask 917248   ;;  %s7214_s10 = smov 112   ;;  %vm6609_vm8 = vcmask 1048448  }
   0xb   :  { %1008 = vmatpush.msrb.mxu0 %v7257_v0  ;;  %1030 = vmatpush.msrb.mxu2 %v7285_v4  ;;  %s6700_s23 = sld [smem:[#allocation3 + $0x12]]  ;;  %s7215_s11 = smov [#allocation6]  }
   0xc   :  { %934 = vmatpush.msra.mxu1 %v7297_v6  ;;  %983 = vmatpush.msra.mxu3 %v7297_v6  ;;  %v7334_v13 = vstv %s6664_s15  ;;  %s6734_s15 = sld [smem:[#allocation3 + $0xb]] }
   0xd   :  { %1009 = vmatpush.msrb.mxu0 %v7262_v1  ;;  %1031 = vmatpush.msrb.mxu2 %v7291_v5  ;;  %v7362_v29 = vstv %s6663_s18  ;;  %s6733_s16 = sld [smem:[#allocation3 + $0x3]]  ;;  %s7210_s18 = smov 48  }
   0xe   :  { %935 = vmatpush.msra.mxu1 %v7305_v7  ;;  %984 = vmatpush.msra.mxu3 %v7305_v7  ;;  %v7377_v42 = vstv %s6665_s19  ;;  %s6735_s17 = sld [smem:[#allocation3 + $0x13]] }
   0xf   :  { %v7274_v3 = vld [vmem:[#allocation2] sm:$0xff]  ;;  %1032 = vmatpush.msrb.mxu2 %v7297_v6  ;;  %s6769_s19 = sld [smem:[#allocation3 + $0xc]] }
  0x10   :  { %6666 = vmatmul.msk.f32.vlgmr.msra.gmra.mxu0 %vm56_vm0, %v7274_v3  ;;  %881 = vst.msk [vmem:[#allocation6] sm:$0xff] %vm56_vm0, %v7274_v3  ;;  %1057 = vmatpush.msrb.mxu1 %v7257_v0  ;;  %s6804_s13 = sld [smem:[#allocation3 + $0xd]] }
  0x11   :  { %1111 = vmatpush.msra.mxu0 %v7257_v0  ;;  %1033 = vmatpush.msrb.mxu2 %v7305_v7  ;;  %s6873_s8 = sld [smem:[#allocation3 + $0x7]] }
  0x12   :  { %1079 = vmatpush.msrb.mxu3 %v7285_v4  ;;  %1058 = vmatpush.msrb.mxu1 %v7262_v1  ;;  %s6875_s9 = sld [smem:[#allocation3 + $0x17]] }
  0x13   :  { %1112 = vmatpush.msra.mxu0 %v7262_v1 }
  0x14   :  { %1080 = vmatpush.msrb.mxu3 %v7291_v5 }
  0x16   :  { %1081 = vmatpush.msrb.mxu3 %v7297_v6 }
  0x18   :  { %1082 = vmatpush.msrb.mxu3 %v7305_v7 }
  0x8d   :  { %v912_v9 = vpop.f32.mrf.mxu0 }
  0x8e   :  { %v913_v10 = vadd.f32 %v7323_v8, %v912_v9 }
  0x90   :  { %6919 = vtanh.f32 %v913_v10 }
  0x96   :  { %v6920_v11 = vpop.eup %6919 }
  0x97   :  { %6667 = vmatmul.msk.f32.vlgmr.msra.gmra.mxu1 %vm916_vm1, %v6920_v11 }
  0x98   :  { %1160 = vmatpush.msra.mxu1 %v7257_v0 }
  0x9a   :  { %1161 = vmatpush.msra.mxu1 %v7262_v1 }
 0x114   :  { %v937_v14 = vpop.f32.mrf.mxu1 }
 0x115   :  { %v938_v15 = vadd.f32 %v7332_v12, %v937_v14 }
 0x117   :  { %v940_v16 = vmul.f32 %v938_v15, %v7334_v13 }
 0x119   :  { %v941_v17 = vadd.f32 %v940_v16, %v7274_v3 }
 0x11b   :  { %6668 = vmatmul.msk.f32.vlgmr.msra.gmra.mxu2 %vm56_vm0, %v941_v17 }
 0x11c   :  { %1133 = vmatpush.msra.mxu2 %v7285_v4 }
 0x11e   :  { %1134 = vmatpush.msra.mxu2 %v7291_v5 }
 0x120   :  { %1135 = vmatpush.msra.mxu2 %v7297_v6 }
 0x122   :  { %1136 = vmatpush.msra.mxu2 %v7305_v7 }
 0x19e   :  { %v962_v18 = vpop.f32.mrf.mxu2 }
 0x19f   :  { %v963_v19 = vadd.f32 %v7323_v8, %v962_v18 }
 0x1a1   :  { %6921 = vtanh.f32 %v963_v19 }
 0x1a7   :  { %v6922_v20 = vpop.eup %6921 }
 0x1a8   :  { %6669 = vmatmul.msk.f32.vlgmr.msra.gmra.mxu3 %vm916_vm1, %v6922_v20 }
 0x1a9   :  { %1182 = vmatpush.msra.mxu3 %v7285_v4 }
 0x1ab   :  { %1183 = vmatpush.msra.mxu3 %v7291_v5 }
 0x1ad   :  { %1184 = vmatpush.msra.mxu3 %v7297_v6 }
 0x1af   :  { %1185 = vmatpush.msra.mxu3 %v7305_v7 }
 0x22b   :  { %v986_v21 = vpop.f32.mrf.mxu3 }
 0x22c   :  { %v987_v22 = vadd.f32 %v7332_v12, %v986_v21 }
 0x22e   :  { %v989_v23 = vmul.f32 %v987_v22, %v7334_v13  ;;  %v1087_v28 = vadd.f32 %v987_v22, %v987_v22 }
 0x230   :  { %v990_v24 = vadd.f32 %v989_v23, %v7274_v3  ;;  %v1088_v32 = vadd.f32 %v1087_v28, %v938_v15 }
 0x232   :  { %6670 = vmatmul.msk.f32.vlgmr.msrb.gmra.mxu0 %vm56_vm0, %v990_v24 }
 0x233   :  { %1209 = vmatpush.msrb.mxu0 %v7257_v0 }
 0x235   :  { %1210 = vmatpush.msrb.mxu0 %v7262_v1 }
 0x2af   :  { %v1011_v25 = vpop.f32.mrf.mxu0 }
 0x2b0   :  { %v1012_v26 = vadd.f32 %v7323_v8, %v1011_v25 }
 0x2b2   :  { %6923 = vtanh.f32 %v1012_v26 }
 0x2b8   :  { %v6924_v27 = vpop.eup %6923 }
 0x2b9   :  { %6671 = vmatmul.msk.f32.vlgmr.msrb.gmra.mxu2 %vm916_vm1, %v6924_v27 }
 0x2ba   :  { %1231 = vmatpush.msrb.mxu2 %v7285_v4 }
 0x2bc   :  { %1232 = vmatpush.msrb.mxu2 %v7291_v5 }
 0x2be   :  { %1233 = vmatpush.msrb.mxu2 %v7297_v6 }
 0x2c0   :  { %1234 = vmatpush.msrb.mxu2 %v7305_v7 }
 0x33c   :  { %v1035_v30 = vpop.f32.mrf.mxu2 }
 0x33d   :  { %v1036_v31 = vadd.f32 %v7332_v12, %v1035_v30 }
 0x33f   :  { %v1038_v33 = vmul.f32 %v1036_v31, %v7362_v29  ;;  %v1089_v34 = vadd.f32 %v1036_v31, %v1036_v31 }
 0x341   :  { %v1039_v35 = vadd.f32 %v1038_v33, %v7274_v3  ;;  %v1090_v36 = vadd.f32 %v1089_v34, %v1088_v32 }
 0x343   :  { %6672 = vmatmul.msk.f32.vlgmr.msrb.gmra.mxu1 %vm56_vm0, %v1039_v35 }
 0x344   :  { %1258 = vmatpush.msrb.mxu1 %v7257_v0 }
 0x346   :  { %1259 = vmatpush.msrb.mxu1 %v7262_v1 }
 0x3c0   :  { %v1060_v37 = vpop.f32.mrf.mxu1 }
 0x3c1   :  { %v1061_v38 = vadd.f32 %v7323_v8, %v1060_v37 }
 0x3c3   :  { %6925 = vtanh.f32 %v1061_v38 }
 0x3c9   :  { %v6926_v39 = vpop.eup %6925 }
 0x3ca   :  { %6673 = vmatmul.msk.f32.vlgmr.msrb.gmra.mxu3 %vm916_vm1, %v6926_v39 }
 0x3cb   :  { %1280 = vmatpush.msrb.mxu3 %v7285_v4 }
 0x3cd   :  { %1281 = vmatpush.msrb.mxu3 %v7291_v5 }
 0x3cf   :  { %1282 = vmatpush.msrb.mxu3 %v7297_v6 }
 0x3d1   :  { %1283 = vmatpush.msrb.mxu3 %v7305_v7 }
 0x44d   :  { %v1084_v40 = vpop.f32.mrf.mxu3 }
 0x44e   :  { %v1085_v41 = vadd.f32 %v7332_v12, %v1084_v40 }
 0x450   :  { %v1091_v43 = vadd.f32 %v1090_v36, %v1085_v41 }
 0x452   :  { %v1092_v44 = vmul.f32 %v1091_v43, %v7377_v42 }
 0x454   :  { %v7381_v45 = vadd.f32 %v1092_v44, %v7274_v3 }
 0x456   :  { %6674 = vmatmul.msk.f32.vlgmr.msra.gmra.mxu0 %vm56_vm0, %v7381_v45 }
 0x457   :  { %1312 = vmatpush.msra.mxu0 %v7257_v0 }
 0x459   :  { %1313 = vmatpush.msra.mxu0 %v7262_v1 }
 0x4d3   :  { %v1114_v46 = vpop.f32.mrf.mxu0 }
 0x4d4   :  { %v1115_v47 = vadd.f32 %v7323_v8, %v1114_v46 }
 0x4d6   :  { %6927 = vtanh.f32 %v1115_v47 }
 0x4dc   :  { %v6928_v48 = vpop.eup %6927 }
 0x4dd   :  { %6675 = vmatmul.msk.f32.vlgmr.msra.gmra.mxu2 %vm916_vm1, %v6928_v48 }
 0x4de   :  { %1334 = vmatpush.msra.mxu2 %v7285_v4 }
 0x4e0   :  { %1335 = vmatpush.msra.mxu2 %v7291_v5 }
 0x4e2   :  { %1336 = vmatpush.msra.mxu2 %v7297_v6 }
 0x4e4   :  { %1337 = vmatpush.msra.mxu2 %v7305_v7 }
 0x560   :  { %v1138_v49 = vpop.f32.mrf.mxu2 }
 0x561   :  { %v1139_v50 = vadd.f32 %v7332_v12, %v1138_v49 }
 0x563   :  { %v1141_v51 = vmul.f32 %v1139_v50, %v7334_v13 }
 0x565   :  { %v1142_v52 = vadd.f32 %v1141_v51, %v7381_v45 }
 0x567   :  { %6676 = vmatmul.msk.f32.vlgmr.msra.gmra.mxu1 %vm56_vm0, %v1142_v52 }
 0x568   :  { %1361 = vmatpush.msra.mxu1 %v7257_v0 }
 0x56a   :  { %1362 = vmatpush.msra.mxu1 %v7262_v1 }
 0x5e4   :  { %v1163_v53 = vpop.f32.mrf.mxu1 }
 0x5e5   :  { %v1164_v54 = vadd.f32 %v7323_v8, %v1163_v53 }
 0x5e7   :  { %6929 = vtanh.f32 %v1164_v54 }
 0x5ed   :  { %v6930_v55 = vpop.eup %6929 }
 0x5ee   :  { %6677 = vmatmul.msk.f32.vlgmr.msra.gmra.mxu3 %vm916_vm1, %v6930_v55 }
 0x5ef   :  { %1383 = vmatpush.msra.mxu3 %v7285_v4 }
 0x5f1   :  { %1384 = vmatpush.msra.mxu3 %v7291_v5 }
 0x5f3   :  { %1385 = vmatpush.msra.mxu3 %v7297_v6 }
 0x5f5   :  { %1386 = vmatpush.msra.mxu3 %v7305_v7 }
 0x671   :  { %v1187_v56 = vpop.f32.mrf.mxu3 }
 0x672   :  { %v1188_v57 = vadd.f32 %v7332_v12, %v1187_v56 }
 0x674   :  { %v1190_v58 = vmul.f32 %v1188_v57, %v7334_v13  ;;  %v1288_v63 = vadd.f32 %v1188_v57, %v1188_v57 }
 0x676   :  { %v1191_v59 = vadd.f32 %v1190_v58, %v7381_v45  ;;  %v1289_v9 = vadd.f32 %v1288_v63, %v1139_v50 }
 0x678   :  { %6678 = vmatmul.msk.f32.vlgmr.msrb.gmra.mxu0 %vm56_vm0, %v1191_v59 }
 0x679   :  { %1410 = vmatpush.msrb.mxu0 %v7257_v0 }
 0x67b   :  { %1411 = vmatpush.msrb.mxu0 %v7262_v1 }
 0x6f5   :  { %v1212_v60 = vpop.f32.mrf.mxu0 }
 0x6f6   :  { %v1213_v61 = vadd.f32 %v7323_v8, %v1212_v60 }
 0x6f8   :  { %6931 = vtanh.f32 %v1213_v61 }
 0x6fe   :  { %v6932_v62 = vpop.eup %6931 }
 0x6ff   :  { %6679 = vmatmul.msk.f32.vlgmr.msrb.gmra.mxu2 %vm916_vm1, %v6932_v62 }
 0x700   :  { %1432 = vmatpush.msrb.mxu2 %v7285_v4 }
 0x702   :  { %1433 = vmatpush.msrb.mxu2 %v7291_v5 }
 0x704   :  { %1434 = vmatpush.msrb.mxu2 %v7297_v6 }
 0x706   :  { %1435 = vmatpush.msrb.mxu2 %v7305_v7 }
 0x782   :  { %v1236_v2 = vpop.f32.mrf.mxu2 }
 0x783   :  { %v1237_v3 = vadd.f32 %v7332_v12, %v1236_v2 }
 0x785   :  { %v1239_v10 = vmul.f32 %v1237_v3, %v7362_v29  ;;  %v1290_v11 = vadd.f32 %v1237_v3, %v1237_v3 }
 0x787   :  { %v1240_v14 = vadd.f32 %v1239_v10, %v7381_v45  ;;  %v1291_v15 = vadd.f32 %v1290_v11, %v1289_v9 }
 0x789   :  { %6680 = vmatmul.msk.f32.vlgmr.msrb.gmra.mxu1 %vm56_vm0, %v1240_v14 }
 0x78a   :  { %1459 = vmatpush.msrb.mxu1 %v7257_v0 }
 0x78c   :  { %1460 = vmatpush.msrb.mxu1 %v7262_v1 }
 0x806   :  { %v1261_v16 = vpop.f32.mrf.mxu1 }
 0x807   :  { %v1262_v17 = vadd.f32 %v7323_v8, %v1261_v16 }
 0x809   :  { %6933 = vtanh.f32 %v1262_v17 }
 0x80f   :  { %v6934_v18 = vpop.eup %6933 }
 0x810   :  { %6681 = vmatmul.msk.f32.vlgmr.msrb.gmra.mxu3 %vm916_vm1, %v6934_v18 }
 0x811   :  { %1481 = vmatpush.msrb.mxu3 %v7285_v4 }
 0x813   :  { %1482 = vmatpush.msrb.mxu3 %v7291_v5 }
 0x815   :  { %1483 = vmatpush.msrb.mxu3 %v7297_v6 }
 0x817   :  { %1484 = vmatpush.msrb.mxu3 %v7305_v7 }
 0x893   :  { %v1285_v19 = vpop.f32.mrf.mxu3 }
 0x894   :  { %v1286_v20 = vadd.f32 %v7332_v12, %v1285_v19 }
 0x896   :  { %v1292_v21 = vadd.f32 %v1291_v15, %v1286_v20 }
 0x898   :  { %v1293_v22 = vmul.f32 %v1292_v21, %v7377_v42 }
 0x89a   :  { %v7432_v23 = vadd.f32 %v1293_v22, %v7381_v45 }
 0x89c   :  { %6682 = vmatmul.msk.f32.vlgmr.msra.gmra.mxu0 %vm56_vm0, %v7432_v23 }
 0x89d   :  { %1513 = vmatpush.msra.mxu0 %v7257_v0 }
 0x89f   :  { %1514 = vmatpush.msra.mxu0 %v7262_v1 }
 0x919   :  { %v1315_v24 = vpop.f32.mrf.mxu0 }
 0x91a   :  { %v1316_v25 = vadd.f32 %v7323_v8, %v1315_v24 }
 0x91c   :  { %6935 = vtanh.f32 %v1316_v25 }
 0x922   :  { %v6936_v26 = vpop.eup %6935 }
 0x923   :  { %6683 = vmatmul.msk.f32.vlgmr.msra.gmra.mxu2 %vm916_vm1, %v6936_v26 }
 0x924   :  { %1535 = vmatpush.msra.mxu2 %v7285_v4 }
 0x926   :  { %1536 = vmatpush.msra.mxu2 %v7291_v5 }
 0x928   :  { %1537 = vmatpush.msra.mxu2 %v7297_v6 }
 0x92a   :  { %1538 = vmatpush.msra.mxu2 %v7305_v7 }
 0x9a6   :  { %v1339_v27 = vpop.f32.mrf.mxu2 }
 0x9a7   :  { %v1340_v28 = vadd.f32 %v7332_v12, %v1339_v27 }
 0x9a9   :  { %v1342_v30 = vmul.f32 %v1340_v28, %v7334_v13 }
 0x9ab   :  { %v1343_v31 = vadd.f32 %v1342_v30, %v7432_v23 }
 0x9ad   :  { %6684 = vmatmul.msk.f32.vlgmr.msra.gmra.mxu1 %vm56_vm0, %v1343_v31 }
 0x9ae   :  { %1562 = vmatpush.msra.mxu1 %v7257_v0 }
 0x9b0   :  { %1563 = vmatpush.msra.mxu1 %v7262_v1 }
 0xa2a   :  { %v1364_v32 = vpop.f32.mrf.mxu1 }
 0xa2b   :  { %v1365_v33 = vadd.f32 %v7323_v8, %v1364_v32 }
 0xa2d   :  { %6937 = vtanh.f32 %v1365_v33 }
 0xa33   :  { %v6938_v34 = vpop.eup %6937 }
 0xa34   :  { %6685 = vmatmul.msk.f32.vlgmr.msra.gmra.mxu3 %vm916_vm1, %v6938_v34 }
 0xa35   :  { %1584 = vmatpush.msra.mxu3 %v7285_v4 }
 0xa37   :  { %1585 = vmatpush.msra.mxu3 %v7291_v5 }
 0xa39   :  { %1586 = vmatpush.msra.mxu3 %v7297_v6 }
 0xa3b   :  { %1587 = vmatpush.msra.mxu3 %v7305_v7 }
 0xab7   :  { %v1388_v35 = vpop.f32.mrf.mxu3 }
 0xab8   :  { %v1389_v36 = vadd.f32 %v7332_v12, %v1388_v35 }
 0xaba   :  { %v1391_v37 = vmul.f32 %v1389_v36, %v7334_v13  ;;  %v1489_v43 = vadd.f32 %v1389_v36, %v1389_v36 }
 0xabc   :  { %v1392_v38 = vadd.f32 %v1391_v37, %v7432_v23  ;;  %v1490_v46 = vadd.f32 %v1489_v43, %v1340_v28 }
 0xabe   :  { %6686 = vmatmul.msk.f32.vlgmr.msrb.gmra.mxu0 %vm56_vm0, %v1392_v38 }
 0xabf   :  { %1611 = vmatpush.msrb.mxu0 %v7257_v0 }
 0xac1   :  { %1612 = vmatpush.msrb.mxu0 %v7262_v1 }
 0xb3b   :  { %v1413_v39 = vpop.f32.mrf.mxu0 }
 0xb3c   :  { %v1414_v40 = vadd.f32 %v7323_v8, %v1413_v39  ;;  %v7547_v39 = vstv %s6699_s21  ;;  %s6770_s21 = sld [smem:[#allocation3 + $0x14]] }
 0xb3e   :  { %6939 = vtanh.f32 %v1414_v40 }
 0xb44   :  { %v6940_v41 = vpop.eup %6939 }
 0xb45   :  { %6687 = vmatmul.msk.f32.vlgmr.msrb.gmra.mxu2 %vm916_vm1, %v6940_v41 }
 0xb46   :  { %1633 = vmatpush.msrb.mxu2 %v7285_v4 }
 0xb48   :  { %1634 = vmatpush.msrb.mxu2 %v7291_v5 }
 0xb4a   :  { %1635 = vmatpush.msrb.mxu2 %v7297_v6 }
 0xb4c   :  { %1636 = vmatpush.msrb.mxu2 %v7305_v7 }
 0xbc8   :  { %v1437_v44 = vpop.f32.mrf.mxu2 }
 0xbc9   :  { %v1438_v45 = vadd.f32 %v7332_v12, %v1437_v44 }
 0xbcb   :  { %v1440_v47 = vmul.f32 %v1438_v45, %v7362_v29  ;;  %v1491_v48 = vadd.f32 %v1438_v45, %v1438_v45 }
 0xbcd   :  { %v1441_v49 = vadd.f32 %v1440_v47, %v7432_v23  ;;  %v1492_v50 = vadd.f32 %v1491_v48, %v1490_v46 }
 0xbcf   :  { %6688 = vmatmul.msk.f32.vlgmr.msrb.gmra.mxu1 %vm56_vm0, %v1441_v49 }
 0xbd0   :  { %1660 = vmatpush.msrb.mxu1 %v7257_v0 }
 0xbd2   :  { %1661 = vmatpush.msrb.mxu1 %v7262_v1 }
 0xc4c   :  { %v1462_v51 = vpop.f32.mrf.mxu1 }
 0xc4d   :  { %v1463_v52 = vadd.f32 %v7323_v8, %v1462_v51 }
 0xc4f   :  { %6941 = vtanh.f32 %v1463_v52 }
 0xc55   :  { %v6942_v53 = vpop.eup %6941 }
 0xc56   :  { %6689 = vmatmul.msk.f32.vlgmr.msrb.gmra.mxu3 %vm916_vm1, %v6942_v53 }
 0xc57   :  { %1682 = vmatpush.msrb.mxu3 %v7285_v4 }
 0xc59   :  { %1683 = vmatpush.msrb.mxu3 %v7291_v5 }
 0xc5b   :  { %1684 = vmatpush.msrb.mxu3 %v7297_v6 }
 0xc5d   :  { %1685 = vmatpush.msrb.mxu3 %v7305_v7 }
 0xcd9   :  { %v1486_v54 = vpop.f32.mrf.mxu3 }
 0xcda   :  { %v1487_v55 = vadd.f32 %v7332_v12, %v1486_v54 }
 0xcdc   :  { %v1493_v56 = vadd.f32 %v1492_v50, %v1487_v55 }
 0xcde   :  { %v1494_v57 = vmul.f32 %v1493_v56, %v7377_v42  ;;  %v7573_v56 = vstv %s6698_s22 }
 0xce0   :  { %v7483_v58 = vadd.f32 %v1494_v57, %v7432_v23 }
 0xce2   :  { %6690 = vmatmul.msk.f32.vlgmr.msra.gmra.mxu0 %vm56_vm0, %v7483_v58 }
 0xce3   :  { %1728 = vmatpush.msra.mxu0 %v7257_v0 }
 0xce5   :  { %1729 = vmatpush.msra.mxu0 %v7262_v1 }
 0xd5f   :  { %v1516_v59 = vpop.f32.mrf.mxu0 }
 0xd60   :  { %v1517_v60 = vadd.f32 %v7323_v8, %v1516_v59 }
 0xd62   :  { %6943 = vtanh.f32 %v1517_v60 }
 0xd68   :  { %v6944_v61 = vpop.eup %6943 }
 0xd69   :  { %6691 = vmatmul.msk.f32.vlgmr.msra.gmra.mxu2 %vm916_vm1, %v6944_v61 }
 0xd6a   :  { %1750 = vmatpush.msra.mxu2 %v7285_v4 }
 0xd6c   :  { %1751 = vmatpush.msra.mxu2 %v7291_v5 }
 0xd6e   :  { %1752 = vmatpush.msra.mxu2 %v7297_v6 }
 0xd70   :  { %1753 = vmatpush.msra.mxu2 %v7305_v7 }
 0xdec   :  { %v1540_v62 = vpop.f32.mrf.mxu2 }
 0xded   :  { %v1541_v63 = vadd.f32 %v7332_v12, %v1540_v62 }
 0xdef   :  { %v1543_v2 = vmul.f32 %v1541_v63, %v7334_v13 }
 0xdf1   :  { %v1544_v3 = vadd.f32 %v1543_v2, %v7483_v58 }
 0xdf3   :  { %6692 = vmatmul.msk.f32.vlgmr.msra.gmra.mxu1 %vm56_vm0, %v1544_v3 }
 0xdf4   :  { %1777 = vmatpush.msra.mxu1 %v7257_v0 }
 0xdf6   :  { %1778 = vmatpush.msra.mxu1 %v7262_v1 }
 0xe70   :  { %v1565_v9 = vpop.f32.mrf.mxu1 }
 0xe71   :  { %v1566_v10 = vadd.f32 %v7323_v8, %v1565_v9 }
 0xe73   :  { %6945 = vtanh.f32 %v1566_v10 }
 0xe79   :  { %v6946_v11 = vpop.eup %6945 }
 0xe7a   :  { %6693 = vmatmul.msk.f32.vlgmr.msra.gmra.mxu3 %vm916_vm1, %v6946_v11 }
 0xe7b   :  { %1799 = vmatpush.msra.mxu3 %v7285_v4 }
 0xe7d   :  { %1800 = vmatpush.msra.mxu3 %v7291_v5 }
 0xe7f   :  { %1801 = vmatpush.msra.mxu3 %v7297_v6 }
 0xe81   :  { %1802 = vmatpush.msra.mxu3 %v7305_v7 }
 0xefd   :  { %v1589_v14 = vpop.f32.mrf.mxu3 }
 0xefe   :  { %v1590_v15 = vadd.f32 %v7332_v12, %v1589_v14  ;;  %v7588_v14 = vstv %s6700_s23 }
 0xf00   :  { %v1592_v16 = vmul.f32 %v1590_v15, %v7334_v13  ;;  %v1690_v13 = vadd.f32 %v1590_v15, %v1590_v15 }
 0xf02   :  { %v1593_v17 = vadd.f32 %v1592_v16, %v7483_v58  ;;  %v1691_v23 = vadd.f32 %v1690_v13, %v1541_v63 }
 0xf04   :  { %6694 = vmatmul.msk.f32.vlgmr.msrb.gmra.mxu0 %vm56_vm0, %v1593_v17 }
 0xf05   :  { %1826 = vmatpush.msrb.mxu0 %v7257_v0 }
 0xf07   :  { %1827 = vmatpush.msrb.mxu0 %v7262_v1 }
 0xf81   :  { %v1614_v18 = vpop.f32.mrf.mxu0 }
 0xf82   :  { %v1615_v19 = vadd.f32 %v7323_v8, %v1614_v18 }
 0xf84   :  { %6947 = vtanh.f32 %v1615_v19 }
 0xf8a   :  { %v6948_v20 = vpop.eup %6947 }
 0xf8b   :  { %6695 = vmatmul.msk.f32.vlgmr.msrb.gmra.mxu2 %vm916_vm1, %v6948_v20 }
 0xf8c   :  { %1848 = vmatpush.msrb.mxu2 %v7285_v4 }
 0xf8e   :  { %1849 = vmatpush.msrb.mxu2 %v7291_v5 }
 0xf90   :  { %1850 = vmatpush.msrb.mxu2 %v7297_v6 }
 0xf92   :  { %1851 = vmatpush.msrb.mxu2 %v7305_v7 }
0x100e   :  { %v1638_v21 = vpop.f32.mrf.mxu2 }
0x100f   :  { %v1639_v22 = vadd.f32 %v7332_v12, %v1638_v21 }
0x1011   :  { %v1641_v24 = vmul.f32 %v1639_v22, %v7362_v29  ;;  %v1692_v25 = vadd.f32 %v1639_v22, %v1639_v22 }
0x1013   :  { %v1642_v26 = vadd.f32 %v1641_v24, %v7483_v58  ;;  %v1693_v27 = vadd.f32 %v1692_v25, %v1691_v23 }
0x1015   :  { %6696 = vmatmul.msk.f32.vlgmr.msrb.gmra.mxu1 %vm56_vm0, %v1642_v26 }
0x1016   :  { %1875 = vmatpush.msrb.mxu1 %v7257_v0 }
0x1018   :  { %1876 = vmatpush.msrb.mxu1 %v7262_v1 }
0x1092   :  { %v1663_v28 = vpop.f32.mrf.mxu1 }
0x1093   :  { %v1664_v30 = vadd.f32 %v7323_v8, %v1663_v28 }
0x1095   :  { %6949 = vtanh.f32 %v1664_v30 }
0x109b   :  { %v6950_v31 = vpop.eup %6949 }
0x109c   :  { %6697 = vmatmul.msk.f32.vlgmr.msrb.gmra.mxu3 %vm916_vm1, %v6950_v31 }
0x109d   :  { %1897 = vmatpush.msrb.mxu3 %v7285_v4 }
0x109f   :  { %1898 = vmatpush.msrb.mxu3 %v7291_v5 }
0x10a1   :  { %1899 = vmatpush.msrb.mxu3 %v7297_v6 }
0x10a3   :  { %1900 = vmatpush.msrb.mxu3 %v7305_v7 }
0x111f   :  { %v1687_v29 = vpop.f32.mrf.mxu3 }
0x1120   :  { %v1688_v32 = vadd.f32 %v7332_v12, %v1687_v29 }
0x1122   :  { %v1694_v33 = vadd.f32 %v1693_v27, %v1688_v32 }
0x1124   :  { %v1695_v34 = vmul.f32 %v1694_v33, %v7377_v42 }
0x1126   :  { %v7534_v35 = vadd.f32 %v1695_v34, %v7483_v58 }
0x1128   :  { %1698 = vrot.lane.b32.xlu0 %v7534_v35, %s7208_s20  ;;  %6701 = vmatmul.msk.f32.vlgmr.msra.gmra.mxu0 %vm56_vm0, %v7534_v35  ;;  %s6768_s20 = sld [smem:[#allocation3 + $0x4]] }
0x1129   :  { %1929 = vmatpush.msra.mxu0 %v7257_v0 }
0x112b   :  { %1930 = vmatpush.msra.mxu0 %v7262_v1 }
0x119a   :  { %v1699_v36 = vpop.permute.xlu0 %1698 }
0x119b   :  { %1702 = vst.msk [vmem:[#allocation6] sm:$0xff] %vm1701_vm2, %v1699_v36 }
0x11a5   :  { %v1731_v37 = vpop.f32.mrf.mxu0 }
0x11a6   :  { %v1732_v38 = vadd.f32 %v7323_v8, %v1731_v37 }
0x11a8   :  { %6951 = vtanh.f32 %v1732_v38 }
0x11ae   :  { %v6952_v42 = vpop.eup %6951 }
0x11af   :  { %6702 = vmatmul.msk.f32.vlgmr.msra.gmra.mxu2 %vm916_vm1, %v6952_v42 }
0x11b0   :  { %1951 = vmatpush.msra.mxu2 %v7285_v4 }
0x11b2   :  { %1952 = vmatpush.msra.mxu2 %v7291_v5 }
0x11b4   :  { %1953 = vmatpush.msra.mxu2 %v7297_v6 }
0x11b6   :  { %1954 = vmatpush.msra.mxu2 %v7305_v7 }
0x1232   :  { %v1755_v40 = vpop.f32.mrf.mxu2 }
0x1233   :  { %v1756_v41 = vadd.f32 %v7332_v12, %v1755_v40 }
0x1235   :  { %v1758_v43 = vmul.f32 %v1756_v41, %v7547_v39 }
0x1237   :  { %v1759_v44 = vadd.f32 %v1758_v43, %v7534_v35 }
0x1239   :  { %6703 = vmatmul.msk.f32.vlgmr.msra.gmra.mxu1 %vm56_vm0, %v1759_v44 }
0x123a   :  { %1978 = vmatpush.msra.mxu1 %v7257_v0 }
0x123c   :  { %1979 = vmatpush.msra.mxu1 %v7262_v1 }
0x12b6   :  { %v1780_v45 = vpop.f32.mrf.mxu1 }
0x12b7   :  { %v1781_v46 = vadd.f32 %v7323_v8, %v1780_v45 }
0x12b9   :  { %6953 = vtanh.f32 %v1781_v46 }
0x12bf   :  { %v6954_v47 = vpop.eup %6953 }
0x12c0   :  { %6704 = vmatmul.msk.f32.vlgmr.msra.gmra.mxu3 %vm916_vm1, %v6954_v47 }
0x12c1   :  { %2000 = vmatpush.msra.mxu3 %v7285_v4 }
0x12c3   :  { %2001 = vmatpush.msra.mxu3 %v7291_v5 }
0x12c5   :  { %2002 = vmatpush.msra.mxu3 %v7297_v6 }
0x12c7   :  { %2003 = vmatpush.msra.mxu3 %v7305_v7 }
0x1343   :  { %v1804_v48 = vpop.f32.mrf.mxu3 }
0x1344   :  { %v1805_v49 = vadd.f32 %v7332_v12, %v1804_v48 }
0x1346   :  { %v1807_v50 = vmul.f32 %v1805_v49, %v7547_v39  ;;  %v1905_v55 = vadd.f32 %v1805_v49, %v1805_v49 }
0x1348   :  { %v1808_v51 = vadd.f32 %v1807_v50, %v7534_v35  ;;  %v1906_v59 = vadd.f32 %v1905_v55, %v1756_v41 }
0x134a   :  { %6705 = vmatmul.msk.f32.vlgmr.msrb.gmra.mxu0 %vm56_vm0, %v1808_v51 }
0x134b   :  { %2027 = vmatpush.msrb.mxu0 %v7257_v0 }
0x134d   :  { %2028 = vmatpush.msrb.mxu0 %v7262_v1 }
0x13c7   :  { %v1829_v52 = vpop.f32.mrf.mxu0 }
0x13c8   :  { %v1830_v53 = vadd.f32 %v7323_v8, %v1829_v52 }
0x13ca   :  { %6955 = vtanh.f32 %v1830_v53 }
0x13d0   :  { %v6956_v54 = vpop.eup %6955 }
0x13d1   :  { %6706 = vmatmul.msk.f32.vlgmr.msrb.gmra.mxu2 %vm916_vm1, %v6956_v54 }
0x13d2   :  { %2049 = vmatpush.msrb.mxu2 %v7285_v4 }
0x13d4   :  { %2050 = vmatpush.msrb.mxu2 %v7291_v5 }
0x13d6   :  { %2051 = vmatpush.msrb.mxu2 %v7297_v6 }
0x13d8   :  { %2052 = vmatpush.msrb.mxu2 %v7305_v7 }
0x1454   :  { %v1853_v57 = vpop.f32.mrf.mxu2 }
0x1455   :  { %v1854_v58 = vadd.f32 %v7332_v12, %v1853_v57 }
0x1457   :  { %v1856_v60 = vmul.f32 %v1854_v58, %v7573_v56  ;;  %v1907_v61 = vadd.f32 %v1854_v58, %v1854_v58 }
0x1459   :  { %v1857_v62 = vadd.f32 %v1856_v60, %v7534_v35  ;;  %v1908_v63 = vadd.f32 %v1907_v61, %v1906_v59 }
0x145b   :  { %6707 = vmatmul.msk.f32.vlgmr.msrb.gmra.mxu1 %vm56_vm0, %v1857_v62 }
0x145c   :  { %2076 = vmatpush.msrb.mxu1 %v7257_v0 }
0x145e   :  { %2077 = vmatpush.msrb.mxu1 %v7262_v1 }
0x14d8   :  { %v1878_v2 = vpop.f32.mrf.mxu1 }
0x14d9   :  { %v1879_v3 = vadd.f32 %v7323_v8, %v1878_v2 }
0x14db   :  { %6957 = vtanh.f32 %v1879_v3 }
0x14e1   :  { %v6958_v9 = vpop.eup %6957 }
0x14e2   :  { %6708 = vmatmul.msk.f32.vlgmr.msrb.gmra.mxu3 %vm916_vm1, %v6958_v9 }
0x14e3   :  { %2098 = vmatpush.msrb.mxu3 %v7285_v4 }
0x14e5   :  { %2099 = vmatpush.msrb.mxu3 %v7291_v5 }
0x14e7   :  { %2100 = vmatpush.msrb.mxu3 %v7297_v6 }
0x14e9   :  { %2101 = vmatpush.msrb.mxu3 %v7305_v7 }
0x1565   :  { %v1902_v10 = vpop.f32.mrf.mxu3 }
0x1566   :  { %v1903_v11 = vadd.f32 %v7332_v12, %v1902_v10 }
0x1568   :  { %v1909_v15 = vadd.f32 %v1908_v63, %v1903_v11 }
0x156a   :  { %v1910_v16 = vmul.f32 %v1909_v15, %v7588_v14 }
0x156c   :  { %v7592_v17 = vadd.f32 %v1910_v16, %v7534_v35 }
0x156e   :  { %6709 = vmatmul.msk.f32.vlgmr.msra.gmra.mxu0 %vm56_vm0, %v7592_v17 }
0x156f   :  { %2130 = vmatpush.msra.mxu0 %v7257_v0 }
0x1571   :  { %2131 = vmatpush.msra.mxu0 %v7262_v1 }
0x15eb   :  { %v1932_v18 = vpop.f32.mrf.mxu0 }
0x15ec   :  { %v1933_v19 = vadd.f32 %v7323_v8, %v1932_v18 }
0x15ee   :  { %6959 = vtanh.f32 %v1933_v19 }
0x15f4   :  { %v6960_v20 = vpop.eup %6959 }
0x15f5   :  { %6710 = vmatmul.msk.f32.vlgmr.msra.gmra.mxu2 %vm916_vm1, %v6960_v20 }
0x15f6   :  { %2152 = vmatpush.msra.mxu2 %v7285_v4 }
0x15f8   :  { %2153 = vmatpush.msra.mxu2 %v7291_v5 }
0x15fa   :  { %2154 = vmatpush.msra.mxu2 %v7297_v6 }
0x15fc   :  { %2155 = vmatpush.msra.mxu2 %v7305_v7 }
0x1678   :  { %v1956_v13 = vpop.f32.mrf.mxu2 }
0x1679   :  { %v1957_v21 = vadd.f32 %v7332_v12, %v1956_v13 }
0x167b   :  { %v1959_v22 = vmul.f32 %v1957_v21, %v7547_v39 }
0x167d   :  { %v1960_v23 = vadd.f32 %v1959_v22, %v7592_v17 }
0x167f   :  { %6711 = vmatmul.msk.f32.vlgmr.msra.gmra.mxu1 %vm56_vm0, %v1960_v23  ;;  %v7700_v23 = vld [vmem:[%s8897_s4 + $0x18] sm:$0xff] }
0x1680   :  { %2179 = vmatpush.msra.mxu1 %v7257_v0 }
0x1682   :  { %2180 = vmatpush.msra.mxu1 %v7262_v1 }
0x16fc   :  { %v1981_v24 = vpop.f32.mrf.mxu1 }
0x16fd   :  { %v1982_v25 = vadd.f32 %v7323_v8, %v1981_v24  ;;  %v7706_v24 = vld [vmem:[%s8897_s4 + $0x10] sm:$0xff] }
0x16ff   :  { %6961 = vtanh.f32 %v1982_v25 }
0x1705   :  { %v6962_v26 = vpop.eup %6961 }
0x1706   :  { %6712 = vmatmul.msk.f32.vlgmr.msra.gmra.mxu3 %vm916_vm1, %v6962_v26 }
0x1707   :  { %2201 = vmatpush.msra.mxu3 %v7285_v4 }
0x1709   :  { %2202 = vmatpush.msra.mxu3 %v7291_v5 }
0x170b   :  { %2203 = vmatpush.msra.mxu3 %v7297_v6 }
0x170d   :  { %2204 = vmatpush.msra.mxu3 %v7305_v7 }
0x1789   :  { %v2005_v27 = vpop.f32.mrf.mxu3 }
0x178a   :  { %v2006_v28 = vadd.f32 %v7332_v12, %v2005_v27 }
0x178c   :  { %v2008_v30 = vmul.f32 %v2006_v28, %v7547_v39  ;;  %v2106_v34 = vadd.f32 %v2006_v28, %v2006_v28 }
0x178e   :  { %v2009_v31 = vadd.f32 %v2008_v30, %v7592_v17  ;;  %v2107_v37 = vadd.f32 %v2106_v34, %v1957_v21 }
0x1790   :  { %6713 = vmatmul.msk.f32.vlgmr.msrb.gmra.mxu0 %vm56_vm0, %v2009_v31 }
0x1791   :  { %2228 = vmatpush.msrb.mxu0 %v7257_v0 }
0x1793   :  { %2229 = vmatpush.msrb.mxu0 %v7262_v1 }
0x180d   :  { %v2030_v29 = vpop.f32.mrf.mxu0 }
0x180e   :  { %v2031_v32 = vadd.f32 %v7323_v8, %v2030_v29  ;;  %v7727_v29 = vld [vmem:[%s8897_s4 + $0x8] sm:$0xff] }
0x1810   :  { %6963 = vtanh.f32 %v2031_v32  ;;  %v7733_v32 = vld [vmem:[%s8897_s4] sm:$0xff] }
0x1816   :  { %v6964_v33 = vpop.eup %6963 }
0x1817   :  { %6714 = vmatmul.msk.f32.vlgmr.msrb.gmra.mxu2 %vm916_vm1, %v6964_v33 }
0x1818   :  { %2250 = vmatpush.msrb.mxu2 %v7285_v4 }
0x181a   :  { %2251 = vmatpush.msrb.mxu2 %v7291_v5 }
0x181c   :  { %2252 = vmatpush.msrb.mxu2 %v7297_v6 }
0x181e   :  { %2253 = vmatpush.msrb.mxu2 %v7305_v7 }
0x189a   :  { %v2054_v35 = vpop.f32.mrf.mxu2 }
0x189b   :  { %v2055_v36 = vadd.f32 %v7332_v12, %v2054_v35 }
0x189d   :  { %v2057_v38 = vmul.f32 %v2055_v36, %v7573_v56  ;;  %v2108_v42 = vadd.f32 %v2055_v36, %v2055_v36 }
0x189f   :  { %v2058_v40 = vadd.f32 %v2057_v38, %v7592_v17  ;;  %v2109_v41 = vadd.f32 %v2108_v42, %v2107_v37  ;;  %v7745_v37 = vld [vmem:[%s8896_s3] ss:$0 sm:$0xff] }
0x18a1   :  { %6715 = vmatmul.msk.f32.vlgmr.msrb.gmra.mxu1 %vm56_vm0, %v2058_v40  ;;  %v7756_v40 = vld [vmem:[%s8898_s5] ss:$0 sm:$0xff] }
0x18a2   :  { %2277 = vmatpush.msrb.mxu1 %v7257_v0 }
0x18a4   :  { %2278 = vmatpush.msrb.mxu1 %v7262_v1 }
0x191e   :  { %v2079_v43 = vpop.f32.mrf.mxu1 }
0x191f   :  { %v2080_v44 = vadd.f32 %v7323_v8, %v2079_v43 }
0x1921   :  { %6965 = vtanh.f32 %v2080_v44 }
0x1927   :  { %v6966_v45 = vpop.eup %6965 }
0x1928   :  { %6716 = vmatmul.msk.f32.vlgmr.msrb.gmra.mxu3 %vm916_vm1, %v6966_v45 }
0x1929   :  { %2299 = vmatpush.msrb.mxu3 %v7285_v4 }
0x192b   :  { %2300 = vmatpush.msrb.mxu3 %v7291_v5 }
0x192d   :  { %2301 = vmatpush.msrb.mxu3 %v7297_v6 }
0x192f   :  { %2302 = vmatpush.msrb.mxu3 %v7305_v7 }
0x19ab   :  { %v2103_v46 = vpop.f32.mrf.mxu3 }
0x19ac   :  { %v2104_v47 = vadd.f32 %v7332_v12, %v2103_v46 }
0x19ae   :  { %v2110_v48 = vadd.f32 %v2109_v41, %v2104_v47 }
0x19b0   :  { %v2111_v49 = vmul.f32 %v2110_v48, %v7588_v14 }
0x19b2   :  { %v7643_v50 = vadd.f32 %v2111_v49, %v7592_v17 }
0x19b4   :  { %6717 = vmatmul.msk.f32.vlgmr.msra.gmra.mxu0 %vm56_vm0, %v7643_v50 }
0x19b5   :  { %2331 = vmatpush.msra.mxu0 %v7257_v0 }
0x19b7   :  { %2332 = vmatpush.msra.mxu0 %v7262_v1 }
0x1a31   :  { %v2133_v51 = vpop.f32.mrf.mxu0 }
0x1a32   :  { %v2134_v52 = vadd.f32 %v7323_v8, %v2133_v51 }
0x1a34   :  { %6967 = vtanh.f32 %v2134_v52 }
0x1a3a   :  { %v6968_v53 = vpop.eup %6967 }
0x1a3b   :  { %6718 = vmatmul.msk.f32.vlgmr.msra.gmra.mxu2 %vm916_vm1, %v6968_v53 }
0x1a3c   :  { %2353 = vmatpush.msra.mxu2 %v7285_v4 }
0x1a3e   :  { %2354 = vmatpush.msra.mxu2 %v7291_v5 }
0x1a40   :  { %2355 = vmatpush.msra.mxu2 %v7297_v6 }
0x1a42   :  { %2356 = vmatpush.msra.mxu2 %v7305_v7 }
0x1abe   :  { %v2157_v54 = vpop.f32.mrf.mxu2 }
0x1abf   :  { %v2158_v55 = vadd.f32 %v7332_v12, %v2157_v54 }
0x1ac1   :  { %v2160_v57 = vmul.f32 %v2158_v55, %v7547_v39 }
0x1ac3   :  { %v2161_v58 = vadd.f32 %v2160_v57, %v7643_v50 }
0x1ac5   :  { %6719 = vmatmul.msk.f32.vlgmr.msra.gmra.mxu1 %vm56_vm0, %v2161_v58 }
0x1ac6   :  { %2380 = vmatpush.msra.mxu1 %v7257_v0 }
0x1ac8   :  { %2381 = vmatpush.msra.mxu1 %v7262_v1 }
0x1b42   :  { %v2182_v59 = vpop.f32.mrf.mxu1 }
0x1b43   :  { %v2183_v60 = vadd.f32 %v7323_v8, %v2182_v59 }
0x1b45   :  { %6969 = vtanh.f32 %v2183_v60 }
0x1b4b   :  { %v6970_v61 = vpop.eup %6969 }
0x1b4c   :  { %6720 = vmatmul.msk.f32.vlgmr.msra.gmra.mxu3 %vm916_vm1, %v6970_v61 }
0x1b4d   :  { %2402 = vmatpush.msra.mxu3 %v7285_v4 }
0x1b4f   :  { %2403 = vmatpush.msra.mxu3 %v7291_v5 }
0x1b51   :  { %2404 = vmatpush.msra.mxu3 %v7297_v6 }
0x1b53   :  { %2405 = vmatpush.msra.mxu3 %v7305_v7 }
0x1bcf   :  { %v2206_v62 = vpop.f32.mrf.mxu3 }
0x1bd0   :  { %v2207_v63 = vadd.f32 %v7332_v12, %v2206_v62 }
0x1bd2   :  { %v2209_v2 = vmul.f32 %v2207_v63, %v7547_v39  ;;  %v2307_v15 = vadd.f32 %v2207_v63, %v2207_v63 }
0x1bd4   :  { %v2210_v3 = vadd.f32 %v2209_v2, %v7643_v50 }
0x1bd6   :  { %6721 = vmatmul.msk.f32.vlgmr.msrb.gmra.mxu0 %vm56_vm0, %v2210_v3 }
0x1bd7   :  { %2429 = vmatpush.msrb.mxu0 %v7257_v0 }
0x1bd9   :  { %2430 = vmatpush.msrb.mxu0 %v7262_v1  ;;  %v2308_v1 = vadd.f32 %v2307_v15, %v2158_v55 }
0x1c53   :  { %v2231_v9 = vpop.f32.mrf.mxu0 }
0x1c54   :  { %v2232_v10 = vadd.f32 %v7323_v8, %v2231_v9  ;;  %v7798_v9 = vstv %s6734_s15  ;;  %s6805_s15 = sld [smem:[#allocation3 + $0x15]] }
0x1c56   :  { %6971 = vtanh.f32 %v2232_v10 }
0x1c5c   :  { %v6972_v11 = vpop.eup %6971 }
0x1c5d   :  { %6722 = vmatmul.msk.f32.vlgmr.msrb.gmra.mxu2 %vm916_vm1, %v6972_v11 }
0x1c5e   :  { %2451 = vmatpush.msrb.mxu2 %v7285_v4  ;;  %v7686_v4 = vld [vmem:[%s8895_s2 + $0x8] sm:$0xff] }
0x1c60   :  { %2452 = vmatpush.msrb.mxu2 %v7291_v5  ;;  %v7692_v5 = vld [vmem:[%s8895_s2] sm:$0xff] }
0x1c62   :  { %2453 = vmatpush.msrb.mxu2 %v7297_v6 }
0x1c64   :  { %2454 = vmatpush.msrb.mxu2 %v7305_v7 }
0x1ce0   :  { %v2255_v16 = vpop.f32.mrf.mxu2 }
0x1ce1   :  { %v2256_v0 = vadd.f32 %v7332_v12, %v2255_v16 }
0x1ce3   :  { %v2258_v17 = vmul.f32 %v2256_v0, %v7573_v56  ;;  %v2309_v18 = vadd.f32 %v2256_v0, %v2256_v0 }
0x1ce5   :  { %v2259_v19 = vadd.f32 %v2258_v17, %v7643_v50  ;;  %v2310_v20 = vadd.f32 %v2309_v18, %v2308_v1 }
0x1ce7   :  { %6723 = vmatmul.msk.f32.vlgmr.msrb.gmra.mxu1 %vm56_vm0, %v2259_v19 }
0x1ce8   :  { %2478 = vmatpush.msrb.mxu1 %v7686_v4 }
0x1cea   :  { %2479 = vmatpush.msrb.mxu1 %v7692_v5 }
0x1d64   :  { %v2280_v13 = vpop.f32.mrf.mxu1 }
0x1d65   :  { %v2281_v21 = vadd.f32 %v7323_v8, %v2280_v13 }
0x1d67   :  { %6973 = vtanh.f32 %v2281_v21 }
0x1d6d   :  { %v6974_v22 = vpop.eup %6973 }
0x1d6e   :  { %6724 = vmatmul.msk.f32.vlgmr.msrb.gmra.mxu3 %vm916_vm1, %v6974_v22 }
0x1d6f   :  { %2500 = vmatpush.msrb.mxu3 %v7700_v23 }
0x1d71   :  { %2501 = vmatpush.msrb.mxu3 %v7706_v24 }
0x1d73   :  { %2502 = vmatpush.msrb.mxu3 %v7297_v6 }
0x1d75   :  { %2503 = vmatpush.msrb.mxu3 %v7305_v7 }
0x1df1   :  { %v2304_v25 = vpop.f32.mrf.mxu3 }
0x1df2   :  { %v2305_v26 = vadd.f32 %v7332_v12, %v2304_v25 }
0x1df4   :  { %v2311_v27 = vadd.f32 %v2310_v20, %v2305_v26 }
0x1df6   :  { %v2312_v28 = vmul.f32 %v2311_v27, %v7588_v14  ;;  %v7824_v27 = vstv %s6733_s16  ;;  %s7212_s16 = smov 80  }
0x1df8   :  { %v7714_v30 = vadd.f32 %v2312_v28, %v7643_v50 }
0x1dfa   :  { %6725 = vmatmul.msk.f32.vlgmr.msra.gmra.mxu0 %vm56_vm0, %v7714_v30 }
0x1dfb   :  { %2546 = vmatpush.msra.mxu0 %v7686_v4 }
0x1dfd   :  { %2547 = vmatpush.msra.mxu0 %v7692_v5 }
0x1e77   :  { %v2334_v31 = vpop.f32.mrf.mxu0 }
0x1e78   :  { %v2335_v6 = vadd.f32 %v7323_v8, %v2334_v31 }
0x1e7a   :  { %6975 = vtanh.f32 %v2335_v6 }
0x1e80   :  { %v6976_v7 = vpop.eup %6975 }
0x1e81   :  { %6726 = vmatmul.msk.f32.vlgmr.msra.gmra.mxu2 %vm916_vm1, %v6976_v7 }
0x1e82   :  { %2568 = vmatpush.msra.mxu2 %v7700_v23 }
0x1e84   :  { %2569 = vmatpush.msra.mxu2 %v7706_v24 }
0x1e86   :  { %2570 = vmatpush.msra.mxu2 %v7727_v29 }
0x1e88   :  { %2571 = vmatpush.msra.mxu2 %v7733_v32 }
0x1f04   :  { %v2358_v8 = vpop.f32.mrf.mxu2 }
0x1f05   :  { %v2359_v33 = vadd.f32 %v7332_v12, %v2358_v8 }
0x1f07   :  { %v2361_v34 = vmul.f32 %v2359_v33, %v7547_v39 }
0x1f09   :  { %v2362_v35 = vadd.f32 %v2361_v34, %v7714_v30 }
0x1f0b   :  { %6727 = vmatmul.msk.f32.vlgmr.msra.gmra.mxu1 %vm56_vm0, %v2362_v35 }
0x1f0c   :  { %2595 = vmatpush.msra.mxu1 %v7686_v4 }
0x1f0e   :  { %2596 = vmatpush.msra.mxu1 %v7692_v5 }
0x1f88   :  { %v2383_v36 = vpop.f32.mrf.mxu1 }
0x1f89   :  { %v2384_v38 = vadd.f32 %v7745_v37, %v2383_v36 }
0x1f8b   :  { %6977 = vtanh.f32 %v2384_v38 }
0x1f91   :  { %v6978_v12 = vpop.eup %6977 }
0x1f92   :  { %6728 = vmatmul.msk.f32.vlgmr.msra.gmra.mxu3 %vm916_vm1, %v6978_v12 }
0x1f93   :  { %2617 = vmatpush.msra.mxu3 %v7700_v23 }
0x1f95   :  { %2618 = vmatpush.msra.mxu3 %v7706_v24 }
0x1f97   :  { %2619 = vmatpush.msra.mxu3 %v7727_v29 }
0x1f99   :  { %2620 = vmatpush.msra.mxu3 %v7733_v32 }
0x2015   :  { %v2407_v42 = vpop.f32.mrf.mxu3 }
0x2016   :  { %v2408_v41 = vadd.f32 %v7756_v40, %v2407_v42  ;;  %v7839_v42 = vstv %s6735_s17  ;;  %s6839_s17 = sld [smem:[#allocation3 + $0xe]] }
0x2018   :  { %v2410_v43 = vmul.f32 %v2408_v41, %v7547_v39  ;;  %v2508_v39 = vadd.f32 %v2408_v41, %v2408_v41 }
0x201a   :  { %v2411_v44 = vadd.f32 %v2410_v43, %v7714_v30  ;;  %v2509_v50 = vadd.f32 %v2508_v39, %v2359_v33 }
0x201c   :  { %6729 = vmatmul.msk.f32.vlgmr.msrb.gmra.mxu0 %vm56_vm0, %v2411_v44 }
0x201d   :  { %2644 = vmatpush.msrb.mxu0 %v7686_v4 }
0x201f   :  { %2645 = vmatpush.msrb.mxu0 %v7692_v5 }
0x2099   :  { %v2432_v45 = vpop.f32.mrf.mxu0 }
0x209a   :  { %v2433_v46 = vadd.f32 %v7745_v37, %v2432_v45 }
0x209c   :  { %6979 = vtanh.f32 %v2433_v46 }
0x20a2   :  { %v6980_v47 = vpop.eup %6979 }
0x20a3   :  { %6730 = vmatmul.msk.f32.vlgmr.msrb.gmra.mxu2 %vm916_vm1, %v6980_v47 }
0x20a4   :  { %2666 = vmatpush.msrb.mxu2 %v7700_v23 }
0x20a6   :  { %2667 = vmatpush.msrb.mxu2 %v7706_v24 }
0x20a8   :  { %2668 = vmatpush.msrb.mxu2 %v7727_v29 }
0x20aa   :  { %2669 = vmatpush.msrb.mxu2 %v7733_v32 }
0x2126   :  { %v2456_v48 = vpop.f32.mrf.mxu2 }
0x2127   :  { %v2457_v49 = vadd.f32 %v7756_v40, %v2456_v48 }
0x2129   :  { %v2459_v51 = vmul.f32 %v2457_v49, %v7573_v56  ;;  %v2510_v52 = vadd.f32 %v2457_v49, %v2457_v49 }
0x212b   :  { %v2460_v53 = vadd.f32 %v2459_v51, %v7714_v30  ;;  %v2511_v54 = vadd.f32 %v2510_v52, %v2509_v50 }
0x212d   :  { %6731 = vmatmul.msk.f32.vlgmr.msrb.gmra.mxu1 %vm56_vm0, %v2460_v53 }
0x212e   :  { %2693 = vmatpush.msrb.mxu1 %v7686_v4 }
0x2130   :  { %2694 = vmatpush.msrb.mxu1 %v7692_v5 }
0x21aa   :  { %v2481_v55 = vpop.f32.mrf.mxu1 }
0x21ab   :  { %v2482_v57 = vadd.f32 %v7745_v37, %v2481_v55 }
0x21ad   :  { %6981 = vtanh.f32 %v2482_v57 }
0x21b3   :  { %v6982_v58 = vpop.eup %6981 }
0x21b4   :  { %6732 = vmatmul.msk.f32.vlgmr.msrb.gmra.mxu3 %vm916_vm1, %v6982_v58 }
0x21b5   :  { %2715 = vmatpush.msrb.mxu3 %v7700_v23 }
0x21b7   :  { %2716 = vmatpush.msrb.mxu3 %v7706_v24 }
0x21b9   :  { %2717 = vmatpush.msrb.mxu3 %v7727_v29 }
0x21bb   :  { %2718 = vmatpush.msrb.mxu3 %v7733_v32 }
0x2237   :  { %v2505_v56 = vpop.f32.mrf.mxu3 }
0x2238   :  { %v2506_v59 = vadd.f32 %v7756_v40, %v2505_v56 }
0x223a   :  { %v2512_v60 = vadd.f32 %v2511_v54, %v2506_v59 }
0x223c   :  { %v2513_v61 = vmul.f32 %v2512_v60, %v7588_v14 }
0x223e   :  { %v7785_v62 = vadd.f32 %v2513_v61, %v7714_v30 }
0x2240   :  { %2516 = vrot.lane.b32.xlu0 %v7785_v62, %s7209_s14  ;;  %6736 = vmatmul.msk.f32.vlgmr.msra.gmra.mxu0 %vm56_vm0, %v7785_v62  ;;  %s6803_s14 = sld [smem:[#allocation3 + $0x5]] }
0x2241   :  { %2747 = vmatpush.msra.mxu0 %v7686_v4 }
0x2243   :  { %2748 = vmatpush.msra.mxu0 %v7692_v5 }
0x22b2   :  { %v2517_v63 = vpop.permute.xlu0 %2516 }
0x22b3   :  { %2520 = vst.msk [vmem:[#allocation6] sm:$0xff] %vm2519_vm3, %v2517_v63 }
0x22bd   :  { %v2549_v2 = vpop.f32.mrf.mxu0 }
0x22be   :  { %v2550_v3 = vadd.f32 %v7745_v37, %v2549_v2 }
0x22c0   :  { %6983 = vtanh.f32 %v2550_v3 }
0x22c6   :  { %v6984_v14 = vpop.eup %6983 }
0x22c7   :  { %6737 = vmatmul.msk.f32.vlgmr.msra.gmra.mxu2 %vm916_vm1, %v6984_v14 }
0x22c8   :  { %2769 = vmatpush.msra.mxu2 %v7700_v23 }
0x22ca   :  { %2770 = vmatpush.msra.mxu2 %v7706_v24 }
0x22cc   :  { %2771 = vmatpush.msra.mxu2 %v7727_v29 }
0x22ce   :  { %2772 = vmatpush.msra.mxu2 %v7733_v32 }
0x234a   :  { %v2573_v10 = vpop.f32.mrf.mxu2 }
0x234b   :  { %v2574_v11 = vadd.f32 %v7756_v40, %v2573_v10 }
0x234d   :  { %v2576_v15 = vmul.f32 %v2574_v11, %v7798_v9 }
0x234f   :  { %v2577_v16 = vadd.f32 %v2576_v15, %v7785_v62 }
0x2351   :  { %6738 = vmatmul.msk.f32.vlgmr.msra.gmra.mxu1 %vm56_vm0, %v2577_v16 }
0x2352   :  { %2796 = vmatpush.msra.mxu1 %v7686_v4 }
0x2354   :  { %2797 = vmatpush.msra.mxu1 %v7692_v5 }
0x23ce   :  { %v2598_v0 = vpop.f32.mrf.mxu1 }
0x23cf   :  { %v2599_v1 = vadd.f32 %v7745_v37, %v2598_v0 }
0x23d1   :  { %6985 = vtanh.f32 %v2599_v1 }
0x23d7   :  { %v6986_v17 = vpop.eup %6985 }
0x23d8   :  { %6739 = vmatmul.msk.f32.vlgmr.msra.gmra.mxu3 %vm916_vm1, %v6986_v17 }
0x23d9   :  { %2818 = vmatpush.msra.mxu3 %v7700_v23 }
0x23db   :  { %2819 = vmatpush.msra.mxu3 %v7706_v24 }
0x23dd   :  { %2820 = vmatpush.msra.mxu3 %v7727_v29 }
0x23df   :  { %2821 = vmatpush.msra.mxu3 %v7733_v32 }
0x245b   :  { %v2622_v18 = vpop.f32.mrf.mxu3 }
0x245c   :  { %v2623_v19 = vadd.f32 %v7756_v40, %v2622_v18 }
0x245e   :  { %v2625_v20 = vmul.f32 %v2623_v19, %v7798_v9  ;;  %v2723_v26 = vadd.f32 %v2623_v19, %v2623_v19 }
0x2460   :  { %v2626_v13 = vadd.f32 %v2625_v20, %v7785_v62  ;;  %v2724_v31 = vadd.f32 %v2723_v26, %v2574_v11 }
0x2462   :  { %6740 = vmatmul.msk.f32.vlgmr.msrb.gmra.mxu0 %vm56_vm0, %v2626_v13 }
0x2463   :  { %2845 = vmatpush.msrb.mxu0 %v7686_v4 }
0x2465   :  { %2846 = vmatpush.msrb.mxu0 %v7692_v5 }
0x24df   :  { %v2647_v21 = vpop.f32.mrf.mxu0 }
0x24e0   :  { %v2648_v22 = vadd.f32 %v7745_v37, %v2647_v21 }
0x24e2   :  { %6987 = vtanh.f32 %v2648_v22 }
0x24e8   :  { %v6988_v25 = vpop.eup %6987 }
0x24e9   :  { %6741 = vmatmul.msk.f32.vlgmr.msrb.gmra.mxu2 %vm916_vm1, %v6988_v25 }
0x24ea   :  { %2867 = vmatpush.msrb.mxu2 %v7700_v23 }
0x24ec   :  { %2868 = vmatpush.msrb.mxu2 %v7706_v24 }
0x24ee   :  { %2869 = vmatpush.msrb.mxu2 %v7727_v29 }
0x24f0   :  { %2870 = vmatpush.msrb.mxu2 %v7733_v32 }
0x256c   :  { %v2671_v28 = vpop.f32.mrf.mxu2 }
0x256d   :  { %v2672_v30 = vadd.f32 %v7756_v40, %v2671_v28 }
0x256f   :  { %v2674_v6 = vmul.f32 %v2672_v30, %v7824_v27  ;;  %v2725_v7 = vadd.f32 %v2672_v30, %v2672_v30 }
0x2571   :  { %v2675_v8 = vadd.f32 %v2674_v6, %v7785_v62  ;;  %v2726_v33 = vadd.f32 %v2725_v7, %v2724_v31 }
0x2573   :  { %6742 = vmatmul.msk.f32.vlgmr.msrb.gmra.mxu1 %vm56_vm0, %v2675_v8 }
0x2574   :  { %2894 = vmatpush.msrb.mxu1 %v7686_v4 }
0x2576   :  { %2895 = vmatpush.msrb.mxu1 %v7692_v5 }
0x25f0   :  { %v2696_v34 = vpop.f32.mrf.mxu1 }
0x25f1   :  { %v2697_v35 = vadd.f32 %v7745_v37, %v2696_v34 }
0x25f3   :  { %6989 = vtanh.f32 %v2697_v35 }
0x25f9   :  { %v6990_v36 = vpop.eup %6989 }
0x25fa   :  { %6743 = vmatmul.msk.f32.vlgmr.msrb.gmra.mxu3 %vm916_vm1, %v6990_v36 }
0x25fb   :  { %2916 = vmatpush.msrb.mxu3 %v7700_v23 }
0x25fd   :  { %2917 = vmatpush.msrb.mxu3 %v7706_v24 }
0x25ff   :  { %2918 = vmatpush.msrb.mxu3 %v7727_v29 }
0x2601   :  { %2919 = vmatpush.msrb.mxu3 %v7733_v32 }
0x267d   :  { %v2720_v38 = vpop.f32.mrf.mxu3 }
0x267e   :  { %v2721_v12 = vadd.f32 %v7756_v40, %v2720_v38 }
0x2680   :  { %v2727_v41 = vadd.f32 %v2726_v33, %v2721_v12 }
0x2682   :  { %v2728_v43 = vmul.f32 %v2727_v41, %v7839_v42 }
0x2684   :  { %v7843_v44 = vadd.f32 %v2728_v43, %v7785_v62 }
0x2686   :  { %6744 = vmatmul.msk.f32.vlgmr.msra.gmra.mxu0 %vm56_vm0, %v7843_v44 }
0x2687   :  { %2948 = vmatpush.msra.mxu0 %v7686_v4 }
0x2689   :  { %2949 = vmatpush.msra.mxu0 %v7692_v5 }
0x2703   :  { %v2750_v45 = vpop.f32.mrf.mxu0 }
0x2704   :  { %v2751_v46 = vadd.f32 %v7745_v37, %v2750_v45 }
0x2706   :  { %6991 = vtanh.f32 %v2751_v46 }
0x270c   :  { %v6992_v47 = vpop.eup %6991 }
0x270d   :  { %6745 = vmatmul.msk.f32.vlgmr.msra.gmra.mxu2 %vm916_vm1, %v6992_v47 }
0x270e   :  { %2970 = vmatpush.msra.mxu2 %v7700_v23 }
0x2710   :  { %2971 = vmatpush.msra.mxu2 %v7706_v24 }
0x2712   :  { %2972 = vmatpush.msra.mxu2 %v7727_v29 }
0x2714   :  { %2973 = vmatpush.msra.mxu2 %v7733_v32 }
0x2790   :  { %v2774_v39 = vpop.f32.mrf.mxu2 }
0x2791   :  { %v2775_v48 = vadd.f32 %v7756_v40, %v2774_v39 }
0x2793   :  { %v2777_v49 = vmul.f32 %v2775_v48, %v7798_v9 }
0x2795   :  { %v2778_v50 = vadd.f32 %v2777_v49, %v7843_v44 }
0x2797   :  { %6746 = vmatmul.msk.f32.vlgmr.msra.gmra.mxu1 %vm56_vm0, %v2778_v50 }
0x2798   :  { %2997 = vmatpush.msra.mxu1 %v7686_v4 }
0x279a   :  { %2998 = vmatpush.msra.mxu1 %v7692_v5 }
0x2814   :  { %v2799_v51 = vpop.f32.mrf.mxu1 }
0x2815   :  { %v2800_v52 = vadd.f32 %v7745_v37, %v2799_v51 }
0x2817   :  { %6993 = vtanh.f32 %v2800_v52 }
0x281d   :  { %v6994_v53 = vpop.eup %6993 }
0x281e   :  { %6747 = vmatmul.msk.f32.vlgmr.msra.gmra.mxu3 %vm916_vm1, %v6994_v53 }
0x281f   :  { %3019 = vmatpush.msra.mxu3 %v7700_v23 }
0x2821   :  { %3020 = vmatpush.msra.mxu3 %v7706_v24 }
0x2823   :  { %3021 = vmatpush.msra.mxu3 %v7727_v29 }
0x2825   :  { %3022 = vmatpush.msra.mxu3 %v7733_v32 }
0x28a1   :  { %v2823_v54 = vpop.f32.mrf.mxu3 }
0x28a2   :  { %v2824_v55 = vadd.f32 %v7756_v40, %v2823_v54 }
0x28a4   :  { %v2826_v57 = vmul.f32 %v2824_v55, %v7798_v9  ;;  %v2924_v61 = vadd.f32 %v2824_v55, %v2824_v55 }
0x28a6   :  { %v2827_v58 = vadd.f32 %v2826_v57, %v7843_v44  ;;  %v2925_v2 = vadd.f32 %v2924_v61, %v2775_v48 }
0x28a8   :  { %6748 = vmatmul.msk.f32.vlgmr.msrb.gmra.mxu0 %vm56_vm0, %v2827_v58 }
0x28a9   :  { %3046 = vmatpush.msrb.mxu0 %v7686_v4 }
0x28ab   :  { %3047 = vmatpush.msrb.mxu0 %v7692_v5 }
0x2925   :  { %v2848_v56 = vpop.f32.mrf.mxu0 }
0x2926   :  { %v2849_v59 = vadd.f32 %v7745_v37, %v2848_v56 }
0x2928   :  { %6995 = vtanh.f32 %v2849_v59 }
0x292e   :  { %v6996_v60 = vpop.eup %6995 }
0x292f   :  { %6749 = vmatmul.msk.f32.vlgmr.msrb.gmra.mxu2 %vm916_vm1, %v6996_v60 }
0x2930   :  { %3068 = vmatpush.msrb.mxu2 %v7700_v23 }
0x2932   :  { %3069 = vmatpush.msrb.mxu2 %v7706_v24 }
0x2934   :  { %3070 = vmatpush.msrb.mxu2 %v7727_v29 }
0x2936   :  { %3071 = vmatpush.msrb.mxu2 %v7733_v32 }
0x29b2   :  { %v2872_v62 = vpop.f32.mrf.mxu2 }
0x29b3   :  { %v2873_v63 = vadd.f32 %v7756_v40, %v2872_v62 }
0x29b5   :  { %v2875_v3 = vmul.f32 %v2873_v63, %v7824_v27  ;;  %v2926_v14 = vadd.f32 %v2873_v63, %v2873_v63 }
0x29b7   :  { %v2876_v10 = vadd.f32 %v2875_v3, %v7843_v44  ;;  %v2927_v11 = vadd.f32 %v2926_v14, %v2925_v2 }
0x29b9   :  { %6750 = vmatmul.msk.f32.vlgmr.msrb.gmra.mxu1 %vm56_vm0, %v2876_v10 }
0x29ba   :  { %3095 = vmatpush.msrb.mxu1 %v7686_v4 }
0x29bc   :  { %3096 = vmatpush.msrb.mxu1 %v7692_v5 }
0x2a36   :  { %v2897_v15 = vpop.f32.mrf.mxu1 }
0x2a37   :  { %v2898_v16 = vadd.f32 %v7745_v37, %v2897_v15 }
0x2a39   :  { %6997 = vtanh.f32 %v2898_v16 }
0x2a3f   :  { %v6998_v0 = vpop.eup %6997 }
0x2a40   :  { %6751 = vmatmul.msk.f32.vlgmr.msrb.gmra.mxu3 %vm916_vm1, %v6998_v0 }
0x2a41   :  { %3117 = vmatpush.msrb.mxu3 %v7700_v23 }
0x2a43   :  { %3118 = vmatpush.msrb.mxu3 %v7706_v24 }
0x2a45   :  { %3119 = vmatpush.msrb.mxu3 %v7727_v29 }
0x2a47   :  { %3120 = vmatpush.msrb.mxu3 %v7733_v32 }
0x2ac3   :  { %v2921_v1 = vpop.f32.mrf.mxu3 }
0x2ac4   :  { %v2922_v17 = vadd.f32 %v7756_v40, %v2921_v1 }
0x2ac6   :  { %v2928_v18 = vadd.f32 %v2927_v11, %v2922_v17 }
0x2ac8   :  { %v2929_v19 = vmul.f32 %v2928_v18, %v7839_v42 }
0x2aca   :  { %v7894_v20 = vadd.f32 %v2929_v19, %v7843_v44 }
0x2acc   :  { %6752 = vmatmul.msk.f32.vlgmr.msra.gmra.mxu0 %vm56_vm0, %v7894_v20 }
0x2acd   :  { %3149 = vmatpush.msra.mxu0 %v7686_v4 }
0x2acf   :  { %3150 = vmatpush.msra.mxu0 %v7692_v5 }
0x2b49   :  { %v2951_v13 = vpop.f32.mrf.mxu0 }
0x2b4a   :  { %v2952_v21 = vadd.f32 %v7745_v37, %v2951_v13 }
0x2b4c   :  { %6999 = vtanh.f32 %v2952_v21 }
0x2b52   :  { %v7000_v22 = vpop.eup %6999 }
0x2b53   :  { %6753 = vmatmul.msk.f32.vlgmr.msra.gmra.mxu2 %vm916_vm1, %v7000_v22 }
0x2b54   :  { %3171 = vmatpush.msra.mxu2 %v7700_v23 }
0x2b56   :  { %3172 = vmatpush.msra.mxu2 %v7706_v24 }
0x2b58   :  { %3173 = vmatpush.msra.mxu2 %v7727_v29 }
0x2b5a   :  { %3174 = vmatpush.msra.mxu2 %v7733_v32 }
0x2bd6   :  { %v2975_v25 = vpop.f32.mrf.mxu2 }
0x2bd7   :  { %v2976_v26 = vadd.f32 %v7756_v40, %v2975_v25 }
0x2bd9   :  { %v2978_v28 = vmul.f32 %v2976_v26, %v7798_v9 }
0x2bdb   :  { %v2979_v30 = vadd.f32 %v2978_v28, %v7894_v20 }
0x2bdd   :  { %6754 = vmatmul.msk.f32.vlgmr.msra.gmra.mxu1 %vm56_vm0, %v2979_v30 }
0x2bde   :  { %3198 = vmatpush.msra.mxu1 %v7686_v4 }
0x2be0   :  { %3199 = vmatpush.msra.mxu1 %v7692_v5 }
0x2c5a   :  { %v3000_v31 = vpop.f32.mrf.mxu1 }
0x2c5b   :  { %v3001_v6 = vadd.f32 %v7745_v37, %v3000_v31 }
0x2c5d   :  { %7001 = vtanh.f32 %v3001_v6 }
0x2c63   :  { %v7002_v7 = vpop.eup %7001 }
0x2c64   :  { %6755 = vmatmul.msk.f32.vlgmr.msra.gmra.mxu3 %vm916_vm1, %v7002_v7 }
0x2c65   :  { %3220 = vmatpush.msra.mxu3 %v7700_v23 }
0x2c67   :  { %3221 = vmatpush.msra.mxu3 %v7706_v24 }
0x2c69   :  { %3222 = vmatpush.msra.mxu3 %v7727_v29 }
0x2c6b   :  { %3223 = vmatpush.msra.mxu3 %v7733_v32 }
0x2ce7   :  { %v3024_v8 = vpop.f32.mrf.mxu3 }
0x2ce8   :  { %v3025_v33 = vadd.f32 %v7756_v40, %v3024_v8 }
0x2cea   :  { %v3027_v34 = vmul.f32 %v3025_v33, %v7798_v9  ;;  %v3125_v41 = vadd.f32 %v3025_v33, %v3025_v33 }
0x2cec   :  { %v3028_v35 = vadd.f32 %v3027_v34, %v7894_v20  ;;  %v3126_v45 = vadd.f32 %v3125_v41, %v2976_v26 }
0x2cee   :  { %6756 = vmatmul.msk.f32.vlgmr.msrb.gmra.mxu0 %vm56_vm0, %v3028_v35 }
0x2cef   :  { %3247 = vmatpush.msrb.mxu0 %v7686_v4 }
0x2cf1   :  { %3248 = vmatpush.msrb.mxu0 %v7692_v5 }
0x2d6b   :  { %v3049_v36 = vpop.f32.mrf.mxu0 }
0x2d6c   :  { %v3050_v38 = vadd.f32 %v7745_v37, %v3049_v36  ;;  %v8009_v36 = vstv %s6769_s19  ;;  %s6840_s19 = sld [smem:[#allocation3 + $0x16]] }
0x2d6e   :  { %7003 = vtanh.f32 %v3050_v38 }
0x2d74   :  { %v7004_v12 = vpop.eup %7003 }
0x2d75   :  { %6757 = vmatmul.msk.f32.vlgmr.msrb.gmra.mxu2 %vm916_vm1, %v7004_v12 }
0x2d76   :  { %3269 = vmatpush.msrb.mxu2 %v7700_v23 }
0x2d78   :  { %3270 = vmatpush.msrb.mxu2 %v7706_v24 }
0x2d7a   :  { %3271 = vmatpush.msrb.mxu2 %v7727_v29 }
0x2d7c   :  { %3272 = vmatpush.msrb.mxu2 %v7733_v32 }
0x2df8   :  { %v3073_v43 = vpop.f32.mrf.mxu2 }
0x2df9   :  { %v3074_v44 = vadd.f32 %v7756_v40, %v3073_v43 }
0x2dfb   :  { %v3076_v46 = vmul.f32 %v3074_v44, %v7824_v27  ;;  %v3127_v47 = vadd.f32 %v3074_v44, %v3074_v44 }
0x2dfd   :  { %v3077_v39 = vadd.f32 %v3076_v46, %v7894_v20  ;;  %v3128_v48 = vadd.f32 %v3127_v47, %v3126_v45 }
0x2dff   :  { %6758 = vmatmul.msk.f32.vlgmr.msrb.gmra.mxu1 %vm56_vm0, %v3077_v39 }
0x2e00   :  { %3296 = vmatpush.msrb.mxu1 %v7686_v4 }
0x2e02   :  { %3297 = vmatpush.msrb.mxu1 %v7692_v5 }
0x2e7c   :  { %v3098_v49 = vpop.f32.mrf.mxu1 }
0x2e7d   :  { %v3099_v50 = vadd.f32 %v7745_v37, %v3098_v49 }
0x2e7f   :  { %7005 = vtanh.f32 %v3099_v50 }
0x2e85   :  { %v7006_v51 = vpop.eup %7005 }
0x2e86   :  { %6759 = vmatmul.msk.f32.vlgmr.msrb.gmra.mxu3 %vm916_vm1, %v7006_v51 }
0x2e87   :  { %3318 = vmatpush.msrb.mxu3 %v7700_v23 }
0x2e89   :  { %3319 = vmatpush.msrb.mxu3 %v7706_v24 }
0x2e8b   :  { %3320 = vmatpush.msrb.mxu3 %v7727_v29 }
0x2e8d   :  { %3321 = vmatpush.msrb.mxu3 %v7733_v32 }
0x2f09   :  { %v3122_v52 = vpop.f32.mrf.mxu3 }
0x2f0a   :  { %v3123_v53 = vadd.f32 %v7756_v40, %v3122_v52 }
0x2f0c   :  { %v3129_v54 = vadd.f32 %v3128_v48, %v3123_v53 }
0x2f0e   :  { %v3130_v55 = vmul.f32 %v3129_v54, %v7839_v42  ;;  %v8035_v54 = vstv %s6768_s20 }
0x2f10   :  { %v7945_v57 = vadd.f32 %v3130_v55, %v7894_v20 }
0x2f12   :  { %6760 = vmatmul.msk.f32.vlgmr.msra.gmra.mxu0 %vm56_vm0, %v7945_v57 }
0x2f13   :  { %3364 = vmatpush.msra.mxu0 %v7686_v4 }
0x2f15   :  { %3365 = vmatpush.msra.mxu0 %v7692_v5 }
0x2f8f   :  { %v3152_v58 = vpop.f32.mrf.mxu0 }
0x2f90   :  { %v3153_v56 = vadd.f32 %v7745_v37, %v3152_v58 }
0x2f92   :  { %7007 = vtanh.f32 %v3153_v56 }
0x2f98   :  { %v7008_v59 = vpop.eup %7007 }
0x2f99   :  { %6761 = vmatmul.msk.f32.vlgmr.msra.gmra.mxu2 %vm916_vm1, %v7008_v59 }
0x2f9a   :  { %3386 = vmatpush.msra.mxu2 %v7700_v23 }
0x2f9c   :  { %3387 = vmatpush.msra.mxu2 %v7706_v24 }
0x2f9e   :  { %3388 = vmatpush.msra.mxu2 %v7727_v29 }
0x2fa0   :  { %3389 = vmatpush.msra.mxu2 %v7733_v32 }
0x301c   :  { %v3176_v60 = vpop.f32.mrf.mxu2 }
0x301d   :  { %v3177_v61 = vadd.f32 %v7756_v40, %v3176_v60 }
0x301f   :  { %v3179_v62 = vmul.f32 %v3177_v61, %v7798_v9 }
0x3021   :  { %v3180_v63 = vadd.f32 %v3179_v62, %v7945_v57 }
0x3023   :  { %6762 = vmatmul.msk.f32.vlgmr.msra.gmra.mxu1 %vm56_vm0, %v3180_v63 }
0x3024   :  { %3413 = vmatpush.msra.mxu1 %v7686_v4 }
0x3026   :  { %3414 = vmatpush.msra.mxu1 %v7692_v5 }
0x30a0   :  { %v3201_v2 = vpop.f32.mrf.mxu1 }
0x30a1   :  { %v3202_v3 = vadd.f32 %v7745_v37, %v3201_v2 }
0x30a3   :  { %7009 = vtanh.f32 %v3202_v3 }
0x30a9   :  { %v7010_v14 = vpop.eup %7009 }
0x30aa   :  { %6763 = vmatmul.msk.f32.vlgmr.msra.gmra.mxu3 %vm916_vm1, %v7010_v14 }
0x30ab   :  { %3435 = vmatpush.msra.mxu3 %v7700_v23 }
0x30ad   :  { %3436 = vmatpush.msra.mxu3 %v7706_v24 }
0x30af   :  { %3437 = vmatpush.msra.mxu3 %v7727_v29 }
0x30b1   :  { %3438 = vmatpush.msra.mxu3 %v7733_v32 }
0x312d   :  { %v3225_v10 = vpop.f32.mrf.mxu3 }
0x312e   :  { %v3226_v11 = vadd.f32 %v7756_v40, %v3225_v10  ;;  %v8050_v10 = vstv %s6770_s21 }
0x3130   :  { %v3228_v15 = vmul.f32 %v3226_v11, %v7798_v9  ;;  %v3326_v9 = vadd.f32 %v3226_v11, %v3226_v11 }
0x3132   :  { %v3229_v16 = vadd.f32 %v3228_v15, %v7945_v57  ;;  %v3327_v20 = vadd.f32 %v3326_v9, %v3177_v61 }
0x3134   :  { %6764 = vmatmul.msk.f32.vlgmr.msrb.gmra.mxu0 %vm56_vm0, %v3229_v16 }
0x3135   :  { %3462 = vmatpush.msrb.mxu0 %v7686_v4 }
0x3137   :  { %3463 = vmatpush.msrb.mxu0 %v7692_v5 }
0x31b1   :  { %v3250_v0 = vpop.f32.mrf.mxu0 }
0x31b2   :  { %v3251_v1 = vadd.f32 %v7745_v37, %v3250_v0 }
0x31b4   :  { %7011 = vtanh.f32 %v3251_v1 }
0x31ba   :  { %v7012_v17 = vpop.eup %7011 }
0x31bb   :  { %6765 = vmatmul.msk.f32.vlgmr.msrb.gmra.mxu2 %vm916_vm1, %v7012_v17 }
0x31bc   :  { %3484 = vmatpush.msrb.mxu2 %v7700_v23 }
0x31be   :  { %3485 = vmatpush.msrb.mxu2 %v7706_v24 }
0x31c0   :  { %3486 = vmatpush.msrb.mxu2 %v7727_v29 }
0x31c2   :  { %3487 = vmatpush.msrb.mxu2 %v7733_v32 }
0x323e   :  { %v3274_v18 = vpop.f32.mrf.mxu2 }
0x323f   :  { %v3275_v19 = vadd.f32 %v7756_v40, %v3274_v18 }
0x3241   :  { %v3277_v13 = vmul.f32 %v3275_v19, %v7824_v27  ;;  %v3328_v21 = vadd.f32 %v3275_v19, %v3275_v19 }
0x3243   :  { %v3278_v22 = vadd.f32 %v3277_v13, %v7945_v57  ;;  %v3329_v25 = vadd.f32 %v3328_v21, %v3327_v20 }
0x3245   :  { %6766 = vmatmul.msk.f32.vlgmr.msrb.gmra.mxu1 %vm56_vm0, %v3278_v22 }
0x3246   :  { %3511 = vmatpush.msrb.mxu1 %v7686_v4 }
0x3248   :  { %3512 = vmatpush.msrb.mxu1 %v7692_v5 }
0x32c2   :  { %v3299_v26 = vpop.f32.mrf.mxu1 }
0x32c3   :  { %v3300_v28 = vadd.f32 %v7745_v37, %v3299_v26 }
0x32c5   :  { %7013 = vtanh.f32 %v3300_v28 }
0x32cb   :  { %v7014_v30 = vpop.eup %7013 }
0x32cc   :  { %6767 = vmatmul.msk.f32.vlgmr.msrb.gmra.mxu3 %vm916_vm1, %v7014_v30 }
0x32cd   :  { %3533 = vmatpush.msrb.mxu3 %v7700_v23 }
0x32cf   :  { %3534 = vmatpush.msrb.mxu3 %v7706_v24 }
0x32d1   :  { %3535 = vmatpush.msrb.mxu3 %v7727_v29 }
0x32d3   :  { %3536 = vmatpush.msrb.mxu3 %v7733_v32 }
0x334f   :  { %v3323_v27 = vpop.f32.mrf.mxu3 }
0x3350   :  { %v3324_v31 = vadd.f32 %v7756_v40, %v3323_v27 }
0x3352   :  { %v3330_v6 = vadd.f32 %v3329_v25, %v3324_v31 }
0x3354   :  { %v3331_v7 = vmul.f32 %v3330_v6, %v7839_v42 }
0x3356   :  { %v7996_v8 = vadd.f32 %v3331_v7, %v7945_v57 }
0x3358   :  { %3334 = vrot.lane.b32.xlu1 %v7996_v8, %s7210_s18  ;;  %6771 = vmatmul.msk.f32.vlgmr.msra.gmra.mxu0 %vm56_vm0, %v7996_v8  ;;  %s6838_s18 = sld [smem:[#allocation3 + $0x6]] }
0x3359   :  { %3565 = vmatpush.msra.mxu0 %v7686_v4 }
0x335b   :  { %3566 = vmatpush.msra.mxu0 %v7692_v5 }
0x33ca   :  { %v3335_v33 = vpop.permute.xlu1 %3334 }
0x33cb   :  { %3338 = vst.msk [vmem:[#allocation6] sm:$0xff] %vm3337_vm4, %v3335_v33 }
0x33d5   :  { %v3367_v34 = vpop.f32.mrf.mxu0 }
0x33d6   :  { %v3368_v35 = vadd.f32 %v7745_v37, %v3367_v34 }
0x33d8   :  { %7015 = vtanh.f32 %v3368_v35 }
0x33de   :  { %v7016_v42 = vpop.eup %7015 }
0x33df   :  { %6772 = vmatmul.msk.f32.vlgmr.msra.gmra.mxu2 %vm916_vm1, %v7016_v42 }
0x33e0   :  { %3587 = vmatpush.msra.mxu2 %v7700_v23 }
0x33e2   :  { %3588 = vmatpush.msra.mxu2 %v7706_v24 }
0x33e4   :  { %3589 = vmatpush.msra.mxu2 %v7727_v29 }
0x33e6   :  { %3590 = vmatpush.msra.mxu2 %v7733_v32 }
0x3462   :  { %v3391_v38 = vpop.f32.mrf.mxu2 }
0x3463   :  { %v3392_v12 = vadd.f32 %v7756_v40, %v3391_v38 }
0x3465   :  { %v3394_v41 = vmul.f32 %v3392_v12, %v8009_v36 }
0x3467   :  { %v3395_v43 = vadd.f32 %v3394_v41, %v7996_v8 }
0x3469   :  { %6773 = vmatmul.msk.f32.vlgmr.msra.gmra.mxu1 %vm56_vm0, %v3395_v43 }
0x346a   :  { %3614 = vmatpush.msra.mxu1 %v7686_v4 }
0x346c   :  { %3615 = vmatpush.msra.mxu1 %v7692_v5 }
0x34e6   :  { %v3416_v44 = vpop.f32.mrf.mxu1 }
0x34e7   :  { %v3417_v45 = vadd.f32 %v7745_v37, %v3416_v44 }
0x34e9   :  { %7017 = vtanh.f32 %v3417_v45 }
0x34ef   :  { %v7018_v46 = vpop.eup %7017 }
0x34f0   :  { %6774 = vmatmul.msk.f32.vlgmr.msra.gmra.mxu3 %vm916_vm1, %v7018_v46 }
0x34f1   :  { %3636 = vmatpush.msra.mxu3 %v7700_v23 }
0x34f3   :  { %3637 = vmatpush.msra.mxu3 %v7706_v24 }
0x34f5   :  { %3638 = vmatpush.msra.mxu3 %v7727_v29 }
0x34f7   :  { %3639 = vmatpush.msra.mxu3 %v7733_v32 }
0x3573   :  { %v3440_v47 = vpop.f32.mrf.mxu3 }
0x3574   :  { %v3441_v39 = vadd.f32 %v7756_v40, %v3440_v47 }
0x3576   :  { %v3443_v48 = vmul.f32 %v3441_v39, %v8009_v36  ;;  %v3541_v53 = vadd.f32 %v3441_v39, %v3441_v39 }
0x3578   :  { %v3444_v49 = vadd.f32 %v3443_v48, %v7996_v8  ;;  %v3542_v58 = vadd.f32 %v3541_v53, %v3392_v12 }
0x357a   :  { %6775 = vmatmul.msk.f32.vlgmr.msrb.gmra.mxu0 %vm56_vm0, %v3444_v49 }
0x357b   :  { %3663 = vmatpush.msrb.mxu0 %v7686_v4 }
0x357d   :  { %3664 = vmatpush.msrb.mxu0 %v7692_v5 }
0x35f7   :  { %v3465_v50 = vpop.f32.mrf.mxu0 }
0x35f8   :  { %v3466_v51 = vadd.f32 %v7745_v37, %v3465_v50  ;;  %v8126_v50 = vld [vmem:[%s8897_s4 + $0x18] sm:$0xff] }
0x35fa   :  { %7019 = vtanh.f32 %v3466_v51  ;;  %v8132_v51 = vld [vmem:[%s8897_s4 + $0x10] sm:$0xff] }
0x3600   :  { %v7020_v52 = vpop.eup %7019 }
0x3601   :  { %6776 = vmatmul.msk.f32.vlgmr.msrb.gmra.mxu2 %vm916_vm1, %v7020_v52 }
0x3602   :  { %3685 = vmatpush.msrb.mxu2 %v7700_v23 }
0x3604   :  { %3686 = vmatpush.msrb.mxu2 %v7706_v24 }
0x3606   :  { %3687 = vmatpush.msrb.mxu2 %v7727_v29 }
0x3608   :  { %3688 = vmatpush.msrb.mxu2 %v7733_v32 }
0x3684   :  { %v3489_v55 = vpop.f32.mrf.mxu2 }
0x3685   :  { %v3490_v57 = vadd.f32 %v7756_v40, %v3489_v55 }
0x3687   :  { %v3492_v56 = vmul.f32 %v3490_v57, %v8035_v54  ;;  %v3543_v59 = vadd.f32 %v3490_v57, %v3490_v57 }
0x3689   :  { %v3493_v60 = vadd.f32 %v3492_v56, %v7996_v8  ;;  %v3544_v61 = vadd.f32 %v3543_v59, %v3542_v58  ;;  %v8156_v59 = vld [vmem:[%s8897_s4] sm:$0xff] }
0x368b   :  { %6777 = vmatmul.msk.f32.vlgmr.msrb.gmra.mxu1 %vm56_vm0, %v3493_v60 }
0x368c   :  { %3712 = vmatpush.msrb.mxu1 %v7686_v4 }
0x368e   :  { %3713 = vmatpush.msrb.mxu1 %v7692_v5 }
0x3708   :  { %v3514_v62 = vpop.f32.mrf.mxu1 }
0x3709   :  { %v3515_v63 = vadd.f32 %v7745_v37, %v3514_v62 }
0x370b   :  { %7021 = vtanh.f32 %v3515_v63 }
0x3711   :  { %v7022_v2 = vpop.eup %7021 }
0x3712   :  { %6778 = vmatmul.msk.f32.vlgmr.msrb.gmra.mxu3 %vm916_vm1, %v7022_v2  ;;  %v8168_v2 = vld [vmem:[%s8896_s3] ss:$0 sm:$0xff] }
0x3713   :  { %3734 = vmatpush.msrb.mxu3 %v7700_v23 }
0x3715   :  { %3735 = vmatpush.msrb.mxu3 %v7706_v24 }
0x3717   :  { %3736 = vmatpush.msrb.mxu3 %v7727_v29 }
0x3719   :  { %3737 = vmatpush.msrb.mxu3 %v7733_v32 }
0x3795   :  { %v3538_v3 = vpop.f32.mrf.mxu3 }
0x3796   :  { %v3539_v14 = vadd.f32 %v7756_v40, %v3538_v3 }
0x3798   :  { %v3545_v11 = vadd.f32 %v3544_v61, %v3539_v14 }
0x379a   :  { %v3546_v15 = vmul.f32 %v3545_v11, %v8050_v10 }
0x379c   :  { %v8054_v16 = vadd.f32 %v3546_v15, %v7996_v8  ;;  %v8179_v15 = vld [vmem:[%s8898_s5] ss:$0 sm:$0xff] }
0x379e   :  { %6779 = vmatmul.msk.f32.vlgmr.msra.gmra.mxu0 %vm56_vm0, %v8054_v16 }
0x379f   :  { %3766 = vmatpush.msra.mxu0 %v7686_v4 }
0x37a1   :  { %3767 = vmatpush.msra.mxu0 %v7692_v5 }
0x381b   :  { %v3568_v0 = vpop.f32.mrf.mxu0 }
0x381c   :  { %v3569_v1 = vadd.f32 %v7745_v37, %v3568_v0 }
0x381e   :  { %7023 = vtanh.f32 %v3569_v1 }
0x3824   :  { %v7024_v17 = vpop.eup %7023 }
0x3825   :  { %6780 = vmatmul.msk.f32.vlgmr.msra.gmra.mxu2 %vm916_vm1, %v7024_v17 }
0x3826   :  { %3788 = vmatpush.msra.mxu2 %v7700_v23 }
0x3828   :  { %3789 = vmatpush.msra.mxu2 %v7706_v24 }
0x382a   :  { %3790 = vmatpush.msra.mxu2 %v7727_v29 }
0x382c   :  { %3791 = vmatpush.msra.mxu2 %v7733_v32 }
0x38a8   :  { %v3592_v9 = vpop.f32.mrf.mxu2 }
0x38a9   :  { %v3593_v18 = vadd.f32 %v7756_v40, %v3592_v9 }
0x38ab   :  { %v3595_v19 = vmul.f32 %v3593_v18, %v8009_v36 }
0x38ad   :  { %v3596_v20 = vadd.f32 %v3595_v19, %v8054_v16 }
0x38af   :  { %6781 = vmatmul.msk.f32.vlgmr.msra.gmra.mxu1 %vm56_vm0, %v3596_v20 }
0x38b0   :  { %3815 = vmatpush.msra.mxu1 %v7686_v4 }
0x38b2   :  { %3816 = vmatpush.msra.mxu1 %v7692_v5 }
0x392c   :  { %v3617_v13 = vpop.f32.mrf.mxu1 }
0x392d   :  { %v3618_v21 = vadd.f32 %v7745_v37, %v3617_v13 }
0x392f   :  { %7025 = vtanh.f32 %v3618_v21 }
0x3935   :  { %v7026_v22 = vpop.eup %7025 }
0x3936   :  { %6782 = vmatmul.msk.f32.vlgmr.msra.gmra.mxu3 %vm916_vm1, %v7026_v22 }
0x3937   :  { %3837 = vmatpush.msra.mxu3 %v7700_v23 }
0x3939   :  { %3838 = vmatpush.msra.mxu3 %v7706_v24 }
0x393b   :  { %3839 = vmatpush.msra.mxu3 %v7727_v29 }
0x393d   :  { %3840 = vmatpush.msra.mxu3 %v7733_v32 }
0x39b9   :  { %v3641_v25 = vpop.f32.mrf.mxu3 }
0x39ba   :  { %v3642_v26 = vadd.f32 %v7756_v40, %v3641_v25 }
0x39bc   :  { %v3644_v28 = vmul.f32 %v3642_v26, %v8009_v36  ;;  %v3742_v7 = vadd.f32 %v3642_v26, %v3642_v26 }
0x39be   :  { %v3645_v30 = vadd.f32 %v3644_v28, %v8054_v16  ;;  %v3743_v34 = vadd.f32 %v3742_v7, %v3593_v18 }
0x39c0   :  { %6783 = vmatmul.msk.f32.vlgmr.msrb.gmra.mxu0 %vm56_vm0, %v3645_v30 }
0x39c1   :  { %3864 = vmatpush.msrb.mxu0 %v7686_v4 }
0x39c3   :  { %3865 = vmatpush.msrb.mxu0 %v7692_v5 }
0x3a3d   :  { %v3666_v27 = vpop.f32.mrf.mxu0 }
0x3a3e   :  { %v3667_v31 = vadd.f32 %v7745_v37, %v3666_v27 }
0x3a40   :  { %7027 = vtanh.f32 %v3667_v31 }
0x3a46   :  { %v7028_v6 = vpop.eup %7027 }
0x3a47   :  { %6784 = vmatmul.msk.f32.vlgmr.msrb.gmra.mxu2 %vm916_vm1, %v7028_v6 }
0x3a48   :  { %3886 = vmatpush.msrb.mxu2 %v7700_v23 }
0x3a4a   :  { %3887 = vmatpush.msrb.mxu2 %v7706_v24 }
0x3a4c   :  { %3888 = vmatpush.msrb.mxu2 %v7727_v29 }
0x3a4e   :  { %3889 = vmatpush.msrb.mxu2 %v7733_v32 }
0x3aca   :  { %v3690_v8 = vpop.f32.mrf.mxu2 }
0x3acb   :  { %v3691_v33 = vadd.f32 %v7756_v40, %v3690_v8 }
0x3acd   :  { %v3693_v35 = vmul.f32 %v3691_v33, %v8035_v54  ;;  %v3744_v42 = vadd.f32 %v3691_v33, %v3691_v33 }
0x3acf   :  { %v3694_v38 = vadd.f32 %v3693_v35, %v8054_v16  ;;  %v3745_v12 = vadd.f32 %v3744_v42, %v3743_v34 }
0x3ad1   :  { %6785 = vmatmul.msk.f32.vlgmr.msrb.gmra.mxu1 %vm56_vm0, %v3694_v38 }
0x3ad2   :  { %3913 = vmatpush.msrb.mxu1 %v7686_v4 }
0x3ad4   :  { %3914 = vmatpush.msrb.mxu1 %v7692_v5 }
0x3b4e   :  { %v3715_v41 = vpop.f32.mrf.mxu1 }
0x3b4f   :  { %v3716_v43 = vadd.f32 %v7745_v37, %v3715_v41 }
0x3b51   :  { %7029 = vtanh.f32 %v3716_v43 }
0x3b57   :  { %v7030_v44 = vpop.eup %7029 }
0x3b58   :  { %6786 = vmatmul.msk.f32.vlgmr.msrb.gmra.mxu3 %vm916_vm1, %v7030_v44 }
0x3b59   :  { %3935 = vmatpush.msrb.mxu3 %v7700_v23  ;;  %v8112_v23 = vld [vmem:[%s8895_s2 + $0x8] sm:$0xff] }
0x3b5b   :  { %3936 = vmatpush.msrb.mxu3 %v7706_v24  ;;  %v8118_v24 = vld [vmem:[%s8895_s2] sm:$0xff] }
0x3b5d   :  { %3937 = vmatpush.msrb.mxu3 %v7727_v29 }
0x3b5f   :  { %3938 = vmatpush.msrb.mxu3 %v7733_v32 }
0x3bdb   :  { %v3739_v45 = vpop.f32.mrf.mxu3 }
0x3bdc   :  { %v3740_v4 = vadd.f32 %v7756_v40, %v3739_v45 }
0x3bde   :  { %v3746_v46 = vadd.f32 %v3745_v12, %v3740_v4 }
0x3be0   :  { %v3747_v5 = vmul.f32 %v3746_v46, %v8050_v10 }
0x3be2   :  { %v8105_v47 = vadd.f32 %v3747_v5, %v8054_v16 }
0x3be4   :  { %6787 = vmatmul.msk.f32.vlgmr.msra.gmra.mxu0 %vm56_vm0, %v8105_v47 }
0x3be5   :  { %3967 = vmatpush.msra.mxu0 %v8112_v23 }
0x3be7   :  { %3968 = vmatpush.msra.mxu0 %v8118_v24 }
0x3c61   :  { %v3769_v39 = vpop.f32.mrf.mxu0 }
0x3c62   :  { %v3770_v48 = vadd.f32 %v7745_v37, %v3769_v39 }
0x3c64   :  { %7031 = vtanh.f32 %v3770_v48 }
0x3c6a   :  { %v7032_v49 = vpop.eup %7031 }
0x3c6b   :  { %6788 = vmatmul.msk.f32.vlgmr.msra.gmra.mxu2 %vm916_vm1, %v7032_v49 }
0x3c6c   :  { %3989 = vmatpush.msra.mxu2 %v8126_v50 }
0x3c6e   :  { %3990 = vmatpush.msra.mxu2 %v8132_v51 }
0x3c70   :  { %3991 = vmatpush.msra.mxu2 %v7727_v29 }
0x3c72   :  { %3992 = vmatpush.msra.mxu2 %v7733_v32  ;;  %v8150_v32 = vld [vmem:[%s8897_s4 + $0x8] sm:$0xff] }
0x3cee   :  { %v3793_v52 = vpop.f32.mrf.mxu2 }
0x3cef   :  { %v3794_v53 = vadd.f32 %v7756_v40, %v3793_v52 }
0x3cf1   :  { %v3796_v55 = vmul.f32 %v3794_v53, %v8009_v36 }
0x3cf3   :  { %v3797_v57 = vadd.f32 %v3796_v55, %v8105_v47 }
0x3cf5   :  { %6789 = vmatmul.msk.f32.vlgmr.msra.gmra.mxu1 %vm56_vm0, %v3797_v57 }
0x3cf6   :  { %4016 = vmatpush.msra.mxu1 %v8112_v23 }
0x3cf8   :  { %4017 = vmatpush.msra.mxu1 %v8118_v24 }
0x3d72   :  { %v3818_v58 = vpop.f32.mrf.mxu1 }
0x3d73   :  { %v3819_v56 = vadd.f32 %v7745_v37, %v3818_v58 }
0x3d75   :  { %7033 = vtanh.f32 %v3819_v56 }
0x3d7b   :  { %v7034_v29 = vpop.eup %7033 }
0x3d7c   :  { %6790 = vmatmul.msk.f32.vlgmr.msra.gmra.mxu3 %vm916_vm1, %v7034_v29 }
0x3d7d   :  { %4038 = vmatpush.msra.mxu3 %v8126_v50 }
0x3d7f   :  { %4039 = vmatpush.msra.mxu3 %v8132_v51 }
0x3d81   :  { %4040 = vmatpush.msra.mxu3 %v8150_v32 }
0x3d83   :  { %4041 = vmatpush.msra.mxu3 %v8156_v59 }
0x3dff   :  { %v3842_v37 = vpop.f32.mrf.mxu3 }
0x3e00   :  { %v3843_v60 = vadd.f32 %v7756_v40, %v3842_v37 }
0x3e02   :  { %v3845_v61 = vmul.f32 %v3843_v60, %v8009_v36  ;;  %v3943_v14 = vadd.f32 %v3843_v60, %v3843_v60 }
0x3e04   :  { %v3846_v62 = vadd.f32 %v3845_v61, %v8105_v47  ;;  %v3944_v0 = vadd.f32 %v3943_v14, %v3794_v53 }
0x3e06   :  { %6791 = vmatmul.msk.f32.vlgmr.msrb.gmra.mxu0 %vm56_vm0, %v3846_v62 }
0x3e07   :  { %4065 = vmatpush.msrb.mxu0 %v8112_v23 }
0x3e09   :  { %4066 = vmatpush.msrb.mxu0 %v8118_v24 }
0x3e83   :  { %v3867_v63 = vpop.f32.mrf.mxu0 }
0x3e84   :  { %v3868_v3 = vadd.f32 %v8168_v2, %v3867_v63  ;;  %v8260_v63 = vstv %s6804_s13 }
0x3e86   :  { %7035 = vtanh.f32 %v3868_v3 }
0x3e8c   :  { %v7036_v40 = vpop.eup %7035 }
0x3e8d   :  { %6792 = vmatmul.msk.f32.vlgmr.msrb.gmra.mxu2 %vm916_vm1, %v7036_v40 }
0x3e8e   :  { %4087 = vmatpush.msrb.mxu2 %v8126_v50 }
0x3e90   :  { %4088 = vmatpush.msrb.mxu2 %v8132_v51 }
0x3e92   :  { %4089 = vmatpush.msrb.mxu2 %v8150_v32 }
0x3e94   :  { %4090 = vmatpush.msrb.mxu2 %v8156_v59 }
0x3f10   :  { %v3891_v11 = vpop.f32.mrf.mxu2 }
0x3f11   :  { %v3892_v16 = vadd.f32 %v8179_v15, %v3891_v11 }
0x3f13   :  { %v3894_v1 = vmul.f32 %v3892_v16, %v8035_v54  ;;  %v3945_v17 = vadd.f32 %v3892_v16, %v3892_v16 }
0x3f15   :  { %v3895_v9 = vadd.f32 %v3894_v1, %v8105_v47  ;;  %v3946_v18 = vadd.f32 %v3945_v17, %v3944_v0 }
0x3f17   :  { %6793 = vmatmul.msk.f32.vlgmr.msrb.gmra.mxu1 %vm56_vm0, %v3895_v9 }
0x3f18   :  { %4114 = vmatpush.msrb.mxu1 %v8112_v23 }
0x3f1a   :  { %4115 = vmatpush.msrb.mxu1 %v8118_v24 }
0x3f94   :  { %v3916_v19 = vpop.f32.mrf.mxu1 }
0x3f95   :  { %v3917_v20 = vadd.f32 %v8168_v2, %v3916_v19 }
0x3f97   :  { %7037 = vtanh.f32 %v3917_v20 }
0x3f9d   :  { %v7038_v13 = vpop.eup %7037 }
0x3f9e   :  { %6794 = vmatmul.msk.f32.vlgmr.msrb.gmra.mxu3 %vm916_vm1, %v7038_v13 }
0x3f9f   :  { %4136 = vmatpush.msrb.mxu3 %v8126_v50 }
0x3fa1   :  { %4137 = vmatpush.msrb.mxu3 %v8132_v51 }
0x3fa3   :  { %4138 = vmatpush.msrb.mxu3 %v8150_v32 }
0x3fa5   :  { %4139 = vmatpush.msrb.mxu3 %v8156_v59 }
0x4021   :  { %v3940_v21 = vpop.f32.mrf.mxu3 }
0x4022   :  { %v3941_v22 = vadd.f32 %v8179_v15, %v3940_v21 }
0x4024   :  { %v3947_v25 = vadd.f32 %v3946_v18, %v3941_v22 }
0x4026   :  { %v3948_v26 = vmul.f32 %v3947_v25, %v8050_v10  ;;  %v8286_v25 = vstv %s6803_s14 }
0x4028   :  { %v8196_v28 = vadd.f32 %v3948_v26, %v8105_v47 }
0x402a   :  { %6795 = vmatmul.msk.f32.vlgmr.msra.gmra.mxu0 %vm56_vm0, %v8196_v28 }
0x402b   :  { %4182 = vmatpush.msra.mxu0 %v8112_v23 }
0x402d   :  { %4183 = vmatpush.msra.mxu0 %v8118_v24 }
0x40a7   :  { %v3970_v30 = vpop.f32.mrf.mxu0 }
0x40a8   :  { %v3971_v27 = vadd.f32 %v8168_v2, %v3970_v30 }
0x40aa   :  { %7039 = vtanh.f32 %v3971_v27 }
0x40b0   :  { %v7040_v31 = vpop.eup %7039 }
0x40b1   :  { %6796 = vmatmul.msk.f32.vlgmr.msra.gmra.mxu2 %vm916_vm1, %v7040_v31 }
0x40b2   :  { %4204 = vmatpush.msra.mxu2 %v8126_v50 }
0x40b4   :  { %4205 = vmatpush.msra.mxu2 %v8132_v51 }
0x40b6   :  { %4206 = vmatpush.msra.mxu2 %v8150_v32 }
0x40b8   :  { %4207 = vmatpush.msra.mxu2 %v8156_v59 }
0x4134   :  { %v3994_v6 = vpop.f32.mrf.mxu2 }
0x4135   :  { %v3995_v7 = vadd.f32 %v8179_v15, %v3994_v6 }
0x4137   :  { %v3997_v8 = vmul.f32 %v3995_v7, %v8009_v36 }
0x4139   :  { %v3998_v33 = vadd.f32 %v3997_v8, %v8196_v28 }
0x413b   :  { %6797 = vmatmul.msk.f32.vlgmr.msra.gmra.mxu1 %vm56_vm0, %v3998_v33 }
0x413c   :  { %4231 = vmatpush.msra.mxu1 %v8112_v23 }
0x413e   :  { %4232 = vmatpush.msra.mxu1 %v8118_v24 }
0x41b8   :  { %v4019_v34 = vpop.f32.mrf.mxu1 }
0x41b9   :  { %v4020_v35 = vadd.f32 %v8168_v2, %v4019_v34 }
0x41bb   :  { %7041 = vtanh.f32 %v4020_v35 }
0x41c1   :  { %v7042_v42 = vpop.eup %7041 }
0x41c2   :  { %6798 = vmatmul.msk.f32.vlgmr.msra.gmra.mxu3 %vm916_vm1, %v7042_v42 }
0x41c3   :  { %4253 = vmatpush.msra.mxu3 %v8126_v50 }
0x41c5   :  { %4254 = vmatpush.msra.mxu3 %v8132_v51 }
0x41c7   :  { %4255 = vmatpush.msra.mxu3 %v8150_v32 }
0x41c9   :  { %4256 = vmatpush.msra.mxu3 %v8156_v59 }
0x4245   :  { %v4043_v38 = vpop.f32.mrf.mxu3 }
0x4246   :  { %v4044_v12 = vadd.f32 %v8179_v15, %v4043_v38  ;;  %v8301_v38 = vstv %s6805_s15  ;;  %s6619_s15 = sshll.u32 %s8899_s6, 4  ;;  %s6620_s15 = int_to_ptr.hbm [resolvable:$true] %s6619_s15 }
0x4248   :  { %v4046_v41 = vmul.f32 %v4044_v12, %v8009_v36  ;;  %v4144_v36 = vadd.f32 %v4044_v12, %v4044_v12 }
0x424a   :  { %v4047_v43 = vadd.f32 %v4046_v41, %v8196_v28  ;;  %v4145_v47 = vadd.f32 %v4144_v36, %v3995_v7 }
0x424c   :  { %6799 = vmatmul.msk.f32.vlgmr.msrb.gmra.mxu0 %vm56_vm0, %v4047_v43 }
0x424d   :  { %4280 = vmatpush.msrb.mxu0 %v8112_v23 }
0x424f   :  { %4281 = vmatpush.msrb.mxu0 %v8118_v24 }
0x42c9   :  { %v4068_v44 = vpop.f32.mrf.mxu0 }
0x42ca   :  { %v4069_v45 = vadd.f32 %v8168_v2, %v4068_v44 }
0x42cc   :  { %7043 = vtanh.f32 %v4069_v45 }
0x42d2   :  { %v7044_v4 = vpop.eup %7043 }
0x42d3   :  { %6800 = vmatmul.msk.f32.vlgmr.msrb.gmra.mxu2 %vm916_vm1, %v7044_v4 }
0x42d4   :  { %4302 = vmatpush.msrb.mxu2 %v8126_v50 }
0x42d6   :  { %4303 = vmatpush.msrb.mxu2 %v8132_v51 }
0x42d8   :  { %4304 = vmatpush.msrb.mxu2 %v8150_v32 }
0x42da   :  { %4305 = vmatpush.msrb.mxu2 %v8156_v59 }
0x4356   :  { %v4092_v46 = vpop.f32.mrf.mxu2 }
0x4357   :  { %v4093_v5 = vadd.f32 %v8179_v15, %v4092_v46 }
0x4359   :  { %v4095_v39 = vmul.f32 %v4093_v5, %v8035_v54  ;;  %v4146_v48 = vadd.f32 %v4093_v5, %v4093_v5 }
0x435b   :  { %v4096_v49 = vadd.f32 %v4095_v39, %v8196_v28  ;;  %v4147_v52 = vadd.f32 %v4146_v48, %v4145_v47 }
0x435d   :  { %6801 = vmatmul.msk.f32.vlgmr.msrb.gmra.mxu1 %vm56_vm0, %v4096_v49 }
0x435e   :  { %4329 = vmatpush.msrb.mxu1 %v8112_v23 }
0x4360   :  { %4330 = vmatpush.msrb.mxu1 %v8118_v24 }
0x43da   :  { %v4117_v53 = vpop.f32.mrf.mxu1 }
0x43db   :  { %v4118_v55 = vadd.f32 %v8168_v2, %v4117_v53 }
0x43dd   :  { %7045 = vtanh.f32 %v4118_v55 }
0x43e3   :  { %v7046_v57 = vpop.eup %7045 }
0x43e4   :  { %6802 = vmatmul.msk.f32.vlgmr.msrb.gmra.mxu3 %vm916_vm1, %v7046_v57 }
0x43e5   :  { %4351 = vmatpush.msrb.mxu3 %v8126_v50 }
0x43e7   :  { %4352 = vmatpush.msrb.mxu3 %v8132_v51 }
0x43e9   :  { %4353 = vmatpush.msrb.mxu3 %v8150_v32 }
0x43eb   :  { %4354 = vmatpush.msrb.mxu3 %v8156_v59 }
0x4467   :  { %v4141_v54 = vpop.f32.mrf.mxu3 }
0x4468   :  { %v4142_v58 = vadd.f32 %v8179_v15, %v4141_v54 }
0x446a   :  { %v4148_v56 = vadd.f32 %v4147_v52, %v4142_v58 }
0x446c   :  { %v4149_v29 = vmul.f32 %v4148_v56, %v8050_v10 }
0x446e   :  { %v8247_v37 = vadd.f32 %v4149_v29, %v8196_v28 }
0x4470   :  { %4152 = vrot.lane.b32.xlu1 %v8247_v37, %s7211_s12  ;;  %6806 = vmatmul.msk.f32.vlgmr.msra.gmra.mxu0 %vm56_vm0, %v8247_v37  ;;  %s6617_s12 = sshll.u32 %s7215_s11, 4  ;;  %s6618_s12 = int_to_ptr.vmem [resolvable:$true] %s6617_s12 }
0x4471   :  { %4383 = vmatpush.msra.mxu0 %v8112_v23 }
0x4473   :  { %4384 = vmatpush.msra.mxu0 %v8118_v24 }
0x44e2   :  { %v4153_v60 = vpop.permute.xlu1 %4152 }
0x44e3   :  { %4156 = vst.msk [vmem:[#allocation6] sm:$0xff] %vm4155_vm5, %v4153_v60 }
0x44ed   :  { %v4185_v61 = vpop.f32.mrf.mxu0 }
0x44ee   :  { %v4186_v62 = vadd.f32 %v8168_v2, %v4185_v61 }
0x44f0   :  { %7047 = vtanh.f32 %v4186_v62 }
0x44f6   :  { %v7048_v10 = vpop.eup %7047 }
0x44f7   :  { %6807 = vmatmul.msk.f32.vlgmr.msra.gmra.mxu2 %vm916_vm1, %v7048_v10 }
0x44f8   :  { %4405 = vmatpush.msra.mxu2 %v8126_v50 }
0x44fa   :  { %4406 = vmatpush.msra.mxu2 %v8132_v51 }
0x44fc   :  { %4407 = vmatpush.msra.mxu2 %v8150_v32 }
0x44fe   :  { %4408 = vmatpush.msra.mxu2 %v8156_v59 }
0x457a   :  { %v4209_v3 = vpop.f32.mrf.mxu2 }
0x457b   :  { %v4210_v40 = vadd.f32 %v8179_v15, %v4209_v3 }
0x457d   :  { %v4212_v14 = vmul.f32 %v4210_v40, %v8260_v63 }
0x457f   :  { %v4213_v11 = vadd.f32 %v4212_v14, %v8247_v37 }
0x4581   :  { %6808 = vmatmul.msk.f32.vlgmr.msra.gmra.mxu1 %vm56_vm0, %v4213_v11 }
0x4582   :  { %4432 = vmatpush.msra.mxu1 %v8112_v23 }
0x4584   :  { %4433 = vmatpush.msra.mxu1 %v8118_v24 }
0x45fe   :  { %v4234_v16 = vpop.f32.mrf.mxu1 }
0x45ff   :  { %v4235_v0 = vadd.f32 %v8168_v2, %v4234_v16 }
0x4601   :  { %7049 = vtanh.f32 %v4235_v0 }
0x4607   :  { %v7050_v1 = vpop.eup %7049 }
0x4608   :  { %6809 = vmatmul.msk.f32.vlgmr.msra.gmra.mxu3 %vm916_vm1, %v7050_v1 }
0x4609   :  { %4454 = vmatpush.msra.mxu3 %v8126_v50 }
0x460b   :  { %4455 = vmatpush.msra.mxu3 %v8132_v51 }
0x460d   :  { %4456 = vmatpush.msra.mxu3 %v8150_v32 }
0x460f   :  { %4457 = vmatpush.msra.mxu3 %v8156_v59 }
0x468b   :  { %v4258_v17 = vpop.f32.mrf.mxu3 }
0x468c   :  { %v4259_v9 = vadd.f32 %v8179_v15, %v4258_v17 }
0x468e   :  { %v4261_v18 = vmul.f32 %v4259_v9, %v8260_v63  ;;  %v4359_v22 = vadd.f32 %v4259_v9, %v4259_v9 }
0x4690   :  { %v4262_v19 = vadd.f32 %v4261_v18, %v8247_v37  ;;  %v4360_v30 = vadd.f32 %v4359_v22, %v4210_v40 }
0x4692   :  { %6810 = vmatmul.msk.f32.vlgmr.msrb.gmra.mxu0 %vm56_vm0, %v4262_v19 }
0x4693   :  { %4481 = vmatpush.msrb.mxu0 %v8112_v23 }
0x4695   :  { %4482 = vmatpush.msrb.mxu0 %v8118_v24 }
0x470f   :  { %v4283_v20 = vpop.f32.mrf.mxu0 }
0x4710   :  { %v4284_v13 = vadd.f32 %v8168_v2, %v4283_v20 }
0x4712   :  { %7051 = vtanh.f32 %v4284_v13 }
0x4718   :  { %v7052_v21 = vpop.eup %7051 }
0x4719   :  { %6811 = vmatmul.msk.f32.vlgmr.msrb.gmra.mxu2 %vm916_vm1, %v7052_v21 }
0x471a   :  { %4503 = vmatpush.msrb.mxu2 %v8126_v50 }
0x471c   :  { %4504 = vmatpush.msrb.mxu2 %v8132_v51 }
0x471e   :  { %4505 = vmatpush.msrb.mxu2 %v8150_v32 }
0x4720   :  { %4506 = vmatpush.msrb.mxu2 %v8156_v59 }
0x479c   :  { %v4307_v26 = vpop.f32.mrf.mxu2 }
0x479d   :  { %v4308_v28 = vadd.f32 %v8179_v15, %v4307_v26 }
0x479f   :  { %v4310_v27 = vmul.f32 %v4308_v28, %v8286_v25  ;;  %v4361_v31 = vadd.f32 %v4308_v28, %v4308_v28 }
0x47a1   :  { %v4311_v6 = vadd.f32 %v4310_v27, %v8247_v37  ;;  %v4362_v7 = vadd.f32 %v4361_v31, %v4360_v30 }
0x47a3   :  { %6812 = vmatmul.msk.f32.vlgmr.msrb.gmra.mxu1 %vm56_vm0, %v4311_v6 }
0x47a4   :  { %4530 = vmatpush.msrb.mxu1 %v8112_v23 }
0x47a6   :  { %4531 = vmatpush.msrb.mxu1 %v8118_v24 }
0x4820   :  { %v4332_v8 = vpop.f32.mrf.mxu1 }
0x4821   :  { %v4333_v33 = vadd.f32 %v8168_v2, %v4332_v8 }
0x4823   :  { %7053 = vtanh.f32 %v4333_v33 }
0x4829   :  { %v7054_v34 = vpop.eup %7053 }
0x482a   :  { %6813 = vmatmul.msk.f32.vlgmr.msrb.gmra.mxu3 %vm916_vm1, %v7054_v34 }
0x482b   :  { %4552 = vmatpush.msrb.mxu3 %v8126_v50 }
0x482d   :  { %4553 = vmatpush.msrb.mxu3 %v8132_v51 }
0x482f   :  { %4554 = vmatpush.msrb.mxu3 %v8150_v32 }
0x4831   :  { %4555 = vmatpush.msrb.mxu3 %v8156_v59 }
0x48ad   :  { %v4356_v35 = vpop.f32.mrf.mxu3 }
0x48ae   :  { %v4357_v42 = vadd.f32 %v8179_v15, %v4356_v35 }
0x48b0   :  { %v4363_v12 = vadd.f32 %v4362_v7, %v4357_v42 }
0x48b2   :  { %v4364_v41 = vmul.f32 %v4363_v12, %v8301_v38 }
0x48b4   :  { %v8305_v43 = vadd.f32 %v4364_v41, %v8247_v37 }
0x48b6   :  { %6814 = vmatmul.msk.f32.vlgmr.msra.gmra.mxu0 %vm56_vm0, %v8305_v43 }
0x48b7   :  { %4584 = vmatpush.msra.mxu0 %v8112_v23 }
0x48b9   :  { %4585 = vmatpush.msra.mxu0 %v8118_v24 }
0x4933   :  { %v4386_v44 = vpop.f32.mrf.mxu0 }
0x4934   :  { %v4387_v45 = vadd.f32 %v8168_v2, %v4386_v44 }
0x4936   :  { %7055 = vtanh.f32 %v4387_v45 }
0x493c   :  { %v7056_v4 = vpop.eup %7055 }
0x493d   :  { %6815 = vmatmul.msk.f32.vlgmr.msra.gmra.mxu2 %vm916_vm1, %v7056_v4 }
0x493e   :  { %4606 = vmatpush.msra.mxu2 %v8126_v50 }
0x4940   :  { %4607 = vmatpush.msra.mxu2 %v8132_v51 }
0x4942   :  { %4608 = vmatpush.msra.mxu2 %v8150_v32 }
0x4944   :  { %4609 = vmatpush.msra.mxu2 %v8156_v59 }
0x49c0   :  { %v4410_v36 = vpop.f32.mrf.mxu2 }
0x49c1   :  { %v4411_v46 = vadd.f32 %v8179_v15, %v4410_v36 }
0x49c3   :  { %v4413_v5 = vmul.f32 %v4411_v46, %v8260_v63 }
0x49c5   :  { %v4414_v47 = vadd.f32 %v4413_v5, %v8305_v43 }
0x49c7   :  { %6816 = vmatmul.msk.f32.vlgmr.msra.gmra.mxu1 %vm56_vm0, %v4414_v47 }
0x49c8   :  { %4633 = vmatpush.msra.mxu1 %v8112_v23 }
0x49ca   :  { %4634 = vmatpush.msra.mxu1 %v8118_v24 }
0x4a44   :  { %v4435_v39 = vpop.f32.mrf.mxu1 }
0x4a45   :  { %v4436_v48 = vadd.f32 %v8168_v2, %v4435_v39 }
0x4a47   :  { %7057 = vtanh.f32 %v4436_v48 }
0x4a4d   :  { %v7058_v49 = vpop.eup %7057 }
0x4a4e   :  { %6817 = vmatmul.msk.f32.vlgmr.msra.gmra.mxu3 %vm916_vm1, %v7058_v49 }
0x4a4f   :  { %4655 = vmatpush.msra.mxu3 %v8126_v50 }
0x4a51   :  { %4656 = vmatpush.msra.mxu3 %v8132_v51 }
0x4a53   :  { %4657 = vmatpush.msra.mxu3 %v8150_v32 }
0x4a55   :  { %4658 = vmatpush.msra.mxu3 %v8156_v59 }
0x4ad1   :  { %v4459_v52 = vpop.f32.mrf.mxu3 }
0x4ad2   :  { %v4460_v53 = vadd.f32 %v8179_v15, %v4459_v52 }
0x4ad4   :  { %v4462_v55 = vmul.f32 %v4460_v53, %v8260_v63  ;;  %v4560_v29 = vadd.f32 %v4460_v53, %v4460_v53 }
0x4ad6   :  { %v4463_v57 = vadd.f32 %v4462_v55, %v8305_v43  ;;  %v4561_v61 = vadd.f32 %v4560_v29, %v4411_v46 }
0x4ad8   :  { %6818 = vmatmul.msk.f32.vlgmr.msrb.gmra.mxu0 %vm56_vm0, %v4463_v57 }
0x4ad9   :  { %4682 = vmatpush.msrb.mxu0 %v8112_v23 }
0x4adb   :  { %4683 = vmatpush.msrb.mxu0 %v8118_v24 }
0x4b55   :  { %v4484_v54 = vpop.f32.mrf.mxu0 }
0x4b56   :  { %v4485_v58 = vadd.f32 %v8168_v2, %v4484_v54 }
0x4b58   :  { %7059 = vtanh.f32 %v4485_v58 }
0x4b5e   :  { %v7060_v56 = vpop.eup %7059 }
0x4b5f   :  { %6819 = vmatmul.msk.f32.vlgmr.msrb.gmra.mxu2 %vm916_vm1, %v7060_v56 }
0x4b60   :  { %4704 = vmatpush.msrb.mxu2 %v8126_v50 }
0x4b62   :  { %4705 = vmatpush.msrb.mxu2 %v8132_v51 }
0x4b64   :  { %4706 = vmatpush.msrb.mxu2 %v8150_v32 }
0x4b66   :  { %4707 = vmatpush.msrb.mxu2 %v8156_v59 }
0x4be2   :  { %v4508_v37 = vpop.f32.mrf.mxu2 }
0x4be3   :  { %v4509_v60 = vadd.f32 %v8179_v15, %v4508_v37 }
0x4be5   :  { %v4511_v62 = vmul.f32 %v4509_v60, %v8286_v25  ;;  %v4562_v10 = vadd.f32 %v4509_v60, %v4509_v60 }
0x4be7   :  { %v4512_v3 = vadd.f32 %v4511_v62, %v8305_v43  ;;  %v4563_v40 = vadd.f32 %v4562_v10, %v4561_v61 }
0x4be9   :  { %6820 = vmatmul.msk.f32.vlgmr.msrb.gmra.mxu1 %vm56_vm0, %v4512_v3 }
0x4bea   :  { %4731 = vmatpush.msrb.mxu1 %v8112_v23 }
0x4bec   :  { %4732 = vmatpush.msrb.mxu1 %v8118_v24 }
0x4c66   :  { %v4533_v14 = vpop.f32.mrf.mxu1 }
0x4c67   :  { %v4534_v11 = vadd.f32 %v8168_v2, %v4533_v14 }
0x4c69   :  { %7061 = vtanh.f32 %v4534_v11 }
0x4c6f   :  { %v7062_v16 = vpop.eup %7061 }
0x4c70   :  { %6821 = vmatmul.msk.f32.vlgmr.msrb.gmra.mxu3 %vm916_vm1, %v7062_v16 }
0x4c71   :  { %4753 = vmatpush.msrb.mxu3 %v8126_v50 }
0x4c73   :  { %4754 = vmatpush.msrb.mxu3 %v8132_v51 }
0x4c75   :  { %4755 = vmatpush.msrb.mxu3 %v8150_v32 }
0x4c77   :  { %4756 = vmatpush.msrb.mxu3 %v8156_v59 }
0x4cf3   :  { %v4557_v0 = vpop.f32.mrf.mxu3 }
0x4cf4   :  { %v4558_v1 = vadd.f32 %v8179_v15, %v4557_v0 }
0x4cf6   :  { %v4564_v17 = vadd.f32 %v4563_v40, %v4558_v1 }
0x4cf8   :  { %v4565_v9 = vmul.f32 %v4564_v17, %v8301_v38 }
0x4cfa   :  { %v8356_v18 = vadd.f32 %v4565_v9, %v8305_v43 }
0x4cfc   :  { %6822 = vmatmul.msk.f32.vlgmr.msra.gmra.mxu0 %vm56_vm0, %v8356_v18 }
0x4cfd   :  { %4785 = vmatpush.msra.mxu0 %v8112_v23 }
0x4cff   :  { %4786 = vmatpush.msra.mxu0 %v8118_v24 }
0x4d79   :  { %v4587_v19 = vpop.f32.mrf.mxu0 }
0x4d7a   :  { %v4588_v20 = vadd.f32 %v8168_v2, %v4587_v19 }
0x4d7c   :  { %7063 = vtanh.f32 %v4588_v20 }
0x4d82   :  { %v7064_v13 = vpop.eup %7063 }
0x4d83   :  { %6823 = vmatmul.msk.f32.vlgmr.msra.gmra.mxu2 %vm916_vm1, %v7064_v13 }
0x4d84   :  { %4807 = vmatpush.msra.mxu2 %v8126_v50 }
0x4d86   :  { %4808 = vmatpush.msra.mxu2 %v8132_v51 }
0x4d88   :  { %4809 = vmatpush.msra.mxu2 %v8150_v32 }
0x4d8a   :  { %4810 = vmatpush.msra.mxu2 %v8156_v59 }
0x4e06   :  { %v4611_v21 = vpop.f32.mrf.mxu2 }
0x4e07   :  { %v4612_v22 = vadd.f32 %v8179_v15, %v4611_v21 }
0x4e09   :  { %v4614_v26 = vmul.f32 %v4612_v22, %v8260_v63 }
0x4e0b   :  { %v4615_v28 = vadd.f32 %v4614_v26, %v8356_v18 }
0x4e0d   :  { %6824 = vmatmul.msk.f32.vlgmr.msra.gmra.mxu1 %vm56_vm0, %v4615_v28 }
0x4e0e   :  { %4834 = vmatpush.msra.mxu1 %v8112_v23 }
0x4e10   :  { %4835 = vmatpush.msra.mxu1 %v8118_v24 }
0x4e8a   :  { %v4636_v30 = vpop.f32.mrf.mxu1 }
0x4e8b   :  { %v4637_v27 = vadd.f32 %v8168_v2, %v4636_v30 }
0x4e8d   :  { %7065 = vtanh.f32 %v4637_v27 }
0x4e93   :  { %v7066_v31 = vpop.eup %7065 }
0x4e94   :  { %6825 = vmatmul.msk.f32.vlgmr.msra.gmra.mxu3 %vm916_vm1, %v7066_v31 }
0x4e95   :  { %4856 = vmatpush.msra.mxu3 %v8126_v50 }
0x4e97   :  { %4857 = vmatpush.msra.mxu3 %v8132_v51 }
0x4e99   :  { %4858 = vmatpush.msra.mxu3 %v8150_v32 }
0x4e9b   :  { %4859 = vmatpush.msra.mxu3 %v8156_v59 }
0x4f17   :  { %v4660_v6 = vpop.f32.mrf.mxu3 }
0x4f18   :  { %v4661_v7 = vadd.f32 %v8179_v15, %v4660_v6 }
0x4f1a   :  { %v4663_v8 = vmul.f32 %v4661_v7, %v8260_v63  ;;  %v4761_v12 = vadd.f32 %v4661_v7, %v4661_v7 }
0x4f1c   :  { %v4664_v33 = vadd.f32 %v4663_v8, %v8356_v18  ;;  %v4762_v44 = vadd.f32 %v4761_v12, %v4612_v22 }
0x4f1e   :  { %6826 = vmatmul.msk.f32.vlgmr.msrb.gmra.mxu0 %vm56_vm0, %v4664_v33 }
0x4f1f   :  { %4883 = vmatpush.msrb.mxu0 %v8112_v23 }
0x4f21   :  { %4884 = vmatpush.msrb.mxu0 %v8118_v24 }
0x4f9b   :  { %v4685_v34 = vpop.f32.mrf.mxu0 }
0x4f9c   :  { %v4686_v35 = vadd.f32 %v8168_v2, %v4685_v34  ;;  %v8471_v34 = vstv %s6839_s17 }
0x4f9e   :  { %7067 = vtanh.f32 %v4686_v35 }
0x4fa4   :  { %v7068_v42 = vpop.eup %7067 }
0x4fa5   :  { %6827 = vmatmul.msk.f32.vlgmr.msrb.gmra.mxu2 %vm916_vm1, %v7068_v42 }
0x4fa6   :  { %4905 = vmatpush.msrb.mxu2 %v8126_v50 }
0x4fa8   :  { %4906 = vmatpush.msrb.mxu2 %v8132_v51 }
0x4faa   :  { %4907 = vmatpush.msrb.mxu2 %v8150_v32 }
0x4fac   :  { %4908 = vmatpush.msrb.mxu2 %v8156_v59 }
0x5028   :  { %v4709_v41 = vpop.f32.mrf.mxu2 }
0x5029   :  { %v4710_v43 = vadd.f32 %v8179_v15, %v4709_v41 }
0x502b   :  { %v4712_v45 = vmul.f32 %v4710_v43, %v8286_v25  ;;  %v4763_v4 = vadd.f32 %v4710_v43, %v4710_v43 }
0x502d   :  { %v4713_v36 = vadd.f32 %v4712_v45, %v8356_v18  ;;  %v4764_v46 = vadd.f32 %v4763_v4, %v4762_v44 }
0x502f   :  { %6828 = vmatmul.msk.f32.vlgmr.msrb.gmra.mxu1 %vm56_vm0, %v4713_v36 }
0x5030   :  { %4932 = vmatpush.msrb.mxu1 %v8112_v23 }
0x5032   :  { %4933 = vmatpush.msrb.mxu1 %v8118_v24 }
0x50ac   :  { %v4734_v5 = vpop.f32.mrf.mxu1 }
0x50ad   :  { %v4735_v47 = vadd.f32 %v8168_v2, %v4734_v5 }
0x50af   :  { %7069 = vtanh.f32 %v4735_v47 }
0x50b5   :  { %v7070_v39 = vpop.eup %7069 }
0x50b6   :  { %6829 = vmatmul.msk.f32.vlgmr.msrb.gmra.mxu3 %vm916_vm1, %v7070_v39 }
0x50b7   :  { %4954 = vmatpush.msrb.mxu3 %v8126_v50 }
0x50b9   :  { %4955 = vmatpush.msrb.mxu3 %v8132_v51 }
0x50bb   :  { %4956 = vmatpush.msrb.mxu3 %v8150_v32 }
0x50bd   :  { %4957 = vmatpush.msrb.mxu3 %v8156_v59 }
0x5139   :  { %v4758_v48 = vpop.f32.mrf.mxu3 }
0x513a   :  { %v4759_v49 = vadd.f32 %v8179_v15, %v4758_v48 }
0x513c   :  { %v4765_v52 = vadd.f32 %v4764_v46, %v4759_v49 }
0x513e   :  { %v4766_v53 = vmul.f32 %v4765_v52, %v8301_v38  ;;  %v8497_v52 = vstv %s6838_s18 }
0x5140   :  { %v8407_v55 = vadd.f32 %v4766_v53, %v8356_v18 }
0x5142   :  { %6830 = vmatmul.msk.f32.vlgmr.msra.gmra.mxu0 %vm56_vm0, %v8407_v55 }
0x5143   :  { %5000 = vmatpush.msra.mxu0 %v8112_v23 }
0x5145   :  { %5001 = vmatpush.msra.mxu0 %v8118_v24 }
0x51bf   :  { %v4788_v57 = vpop.f32.mrf.mxu0 }
0x51c0   :  { %v4789_v54 = vadd.f32 %v8168_v2, %v4788_v57 }
0x51c2   :  { %7071 = vtanh.f32 %v4789_v54 }
0x51c8   :  { %v7072_v58 = vpop.eup %7071 }
0x51c9   :  { %6831 = vmatmul.msk.f32.vlgmr.msra.gmra.mxu2 %vm916_vm1, %v7072_v58 }
0x51ca   :  { %5022 = vmatpush.msra.mxu2 %v8126_v50 }
0x51cc   :  { %5023 = vmatpush.msra.mxu2 %v8132_v51 }
0x51ce   :  { %5024 = vmatpush.msra.mxu2 %v8150_v32 }
0x51d0   :  { %5025 = vmatpush.msra.mxu2 %v8156_v59 }
0x524c   :  { %v4812_v56 = vpop.f32.mrf.mxu2 }
0x524d   :  { %v4813_v29 = vadd.f32 %v8179_v15, %v4812_v56 }
0x524f   :  { %v4815_v37 = vmul.f32 %v4813_v29, %v8260_v63 }
0x5251   :  { %v4816_v60 = vadd.f32 %v4815_v37, %v8407_v55 }
0x5253   :  { %6832 = vmatmul.msk.f32.vlgmr.msra.gmra.mxu1 %vm56_vm0, %v4816_v60 }
0x5254   :  { %5049 = vmatpush.msra.mxu1 %v8112_v23 }
0x5256   :  { %5050 = vmatpush.msra.mxu1 %v8118_v24 }
0x52d0   :  { %v4837_v61 = vpop.f32.mrf.mxu1 }
0x52d1   :  { %v4838_v62 = vadd.f32 %v8168_v2, %v4837_v61 }
0x52d3   :  { %7073 = vtanh.f32 %v4838_v62 }
0x52d9   :  { %v7074_v10 = vpop.eup %7073 }
0x52da   :  { %6833 = vmatmul.msk.f32.vlgmr.msra.gmra.mxu3 %vm916_vm1, %v7074_v10 }
0x52db   :  { %5071 = vmatpush.msra.mxu3 %v8126_v50 }
0x52dd   :  { %5072 = vmatpush.msra.mxu3 %v8132_v51 }
0x52df   :  { %5073 = vmatpush.msra.mxu3 %v8150_v32 }
0x52e1   :  { %5074 = vmatpush.msra.mxu3 %v8156_v59 }
0x535d   :  { %v4861_v3 = vpop.f32.mrf.mxu3 }
0x535e   :  { %v4862_v40 = vadd.f32 %v8179_v15, %v4861_v3  ;;  %v8512_v3 = vstv %s6840_s19 }
0x5360   :  { %v4864_v14 = vmul.f32 %v4862_v40, %v8260_v63  ;;  %v4962_v63 = vadd.f32 %v4862_v40, %v4862_v40 }
0x5362   :  { %v4865_v11 = vadd.f32 %v4864_v14, %v8407_v55  ;;  %v4963_v18 = vadd.f32 %v4962_v63, %v4813_v29 }
0x5364   :  { %6834 = vmatmul.msk.f32.vlgmr.msrb.gmra.mxu0 %vm56_vm0, %v4865_v11 }
0x5365   :  { %5098 = vmatpush.msrb.mxu0 %v8112_v23 }
0x5367   :  { %5099 = vmatpush.msrb.mxu0 %v8118_v24 }
0x53e1   :  { %v4886_v16 = vpop.f32.mrf.mxu0 }
0x53e2   :  { %v4887_v0 = vadd.f32 %v8168_v2, %v4886_v16 }
0x53e4   :  { %7075 = vtanh.f32 %v4887_v0 }
0x53ea   :  { %v7076_v1 = vpop.eup %7075 }
0x53eb   :  { %6835 = vmatmul.msk.f32.vlgmr.msrb.gmra.mxu2 %vm916_vm1, %v7076_v1 }
0x53ec   :  { %5120 = vmatpush.msrb.mxu2 %v8126_v50 }
0x53ee   :  { %5121 = vmatpush.msrb.mxu2 %v8132_v51 }
0x53f0   :  { %5122 = vmatpush.msrb.mxu2 %v8150_v32 }
0x53f2   :  { %5123 = vmatpush.msrb.mxu2 %v8156_v59 }
0x546e   :  { %v4910_v17 = vpop.f32.mrf.mxu2 }
0x546f   :  { %v4911_v9 = vadd.f32 %v8179_v15, %v4910_v17 }
0x5471   :  { %v4913_v19 = vmul.f32 %v4911_v9, %v8286_v25  ;;  %v4964_v20 = vadd.f32 %v4911_v9, %v4911_v9  ;;  %v8535_v9 = vld [vmem:[%s8895_s2 + $0x8] sm:$0xff] }
0x5473   :  { %v4914_v13 = vadd.f32 %v4913_v19, %v8407_v55  ;;  %v4965_v21 = vadd.f32 %v4964_v20, %v4963_v18  ;;  %v8549_v20 = vld [vmem:[%s8897_s4 + $0x18] sm:$0xff] }
0x5475   :  { %6836 = vmatmul.msk.f32.vlgmr.msrb.gmra.mxu1 %vm56_vm0, %v4914_v13  ;;  %v8555_v13 = vld [vmem:[%s8897_s4 + $0x10] sm:$0xff] }
0x5476   :  { %5147 = vmatpush.msrb.mxu1 %v8112_v23 }
0x5478   :  { %5148 = vmatpush.msrb.mxu1 %v8118_v24 }
0x54f2   :  { %v4935_v22 = vpop.f32.mrf.mxu1 }
0x54f3   :  { %v4936_v26 = vadd.f32 %v8168_v2, %v4935_v22 }
0x54f5   :  { %7077 = vtanh.f32 %v4936_v26 }
0x54fb   :  { %v7078_v28 = vpop.eup %7077 }
0x54fc   :  { %6837 = vmatmul.msk.f32.vlgmr.msrb.gmra.mxu3 %vm916_vm1, %v7078_v28 }
0x54fd   :  { %5169 = vmatpush.msrb.mxu3 %v8126_v50 }
0x54ff   :  { %5170 = vmatpush.msrb.mxu3 %v8132_v51 }
0x5501   :  { %5171 = vmatpush.msrb.mxu3 %v8150_v32 }
0x5503   :  { %5172 = vmatpush.msrb.mxu3 %v8156_v59 }
0x557f   :  { %v4959_v25 = vpop.f32.mrf.mxu3 }
0x5580   :  { %v4960_v30 = vadd.f32 %v8179_v15, %v4959_v25 }
0x5582   :  { %v4966_v27 = vadd.f32 %v4965_v21, %v4960_v30 }
0x5584   :  { %v4967_v31 = vmul.f32 %v4966_v27, %v8301_v38  ;;  %v8579_v27 = vld [vmem:[%s8897_s4] sm:$0xff] }
0x5586   :  { %v8458_v6 = vadd.f32 %v4967_v31, %v8407_v55 }
0x5588   :  { %4970 = vrot.lane.b32.xlu2 %v8458_v6, %s7212_s16  ;;  %6841 = vmatmul.msk.f32.vlgmr.msra.gmra.mxu0 %vm56_vm0, %v8458_v6 }
0x5589   :  { %5201 = vmatpush.msra.mxu0 %v8112_v23 }
0x558b   :  { %5202 = vmatpush.msra.mxu0 %v8118_v24 }
0x55e2   :  { %v4971_v7 = vpop.permute.xlu2 %4970 }
0x55e3   :  { %4974 = vst.msk [vmem:[#allocation6] sm:$0xff] %vm4973_vm6, %v4971_v7 }
0x5605   :  { %v5003_v8 = vpop.f32.mrf.mxu0 }
0x5606   :  { %v5004_v33 = vadd.f32 %v8168_v2, %v5003_v8 }
0x5608   :  { %7079 = vtanh.f32 %v5004_v33 }
0x560e   :  { %v7080_v38 = vpop.eup %7079 }
0x560f   :  { %6842 = vmatmul.msk.f32.vlgmr.msra.gmra.mxu2 %vm916_vm1, %v7080_v38 }
0x5610   :  { %5223 = vmatpush.msra.mxu2 %v8126_v50 }
0x5612   :  { %5224 = vmatpush.msra.mxu2 %v8132_v51 }
0x5614   :  { %5225 = vmatpush.msra.mxu2 %v8150_v32 }
0x5616   :  { %5226 = vmatpush.msra.mxu2 %v8156_v59 }
0x5692   :  { %v5027_v35 = vpop.f32.mrf.mxu2 }
0x5693   :  { %v5028_v42 = vadd.f32 %v8179_v15, %v5027_v35 }
0x5695   :  { %v5030_v12 = vmul.f32 %v5028_v42, %v8471_v34 }
0x5697   :  { %v5031_v41 = vadd.f32 %v5030_v12, %v8458_v6  ;;  %v8591_v12 = vld [vmem:[%s8896_s3] ss:$0 sm:$0xff]  ;;  %s7213_s3 = smov 96  }
0x5699   :  { %6843 = vmatmul.msk.f32.vlgmr.msra.gmra.mxu1 %vm56_vm0, %v5031_v41 }
0x569a   :  { %5250 = vmatpush.msra.mxu1 %v8112_v23 }
0x569c   :  { %5251 = vmatpush.msra.mxu1 %v8118_v24 }
0x5716   :  { %v5052_v43 = vpop.f32.mrf.mxu1 }
0x5717   :  { %v5053_v44 = vadd.f32 %v8168_v2, %v5052_v43 }
0x5719   :  { %7081 = vtanh.f32 %v5053_v44  ;;  %v8602_v44 = vld [vmem:[%s8898_s5] ss:$0 sm:$0xff]  ;;  %s6874_s5 = sld [smem:[#allocation3 + $0xf]] }
0x571f   :  { %v7082_v45 = vpop.eup %7081 }
0x5720   :  { %6844 = vmatmul.msk.f32.vlgmr.msra.gmra.mxu3 %vm916_vm1, %v7082_v45 }
0x5721   :  { %5272 = vmatpush.msra.mxu3 %v8126_v50 }
0x5723   :  { %5273 = vmatpush.msra.mxu3 %v8132_v51 }
0x5725   :  { %5274 = vmatpush.msra.mxu3 %v8150_v32 }
0x5727   :  { %5275 = vmatpush.msra.mxu3 %v8156_v59 }
0x57a3   :  { %v5076_v4 = vpop.f32.mrf.mxu3 }
0x57a4   :  { %v5077_v36 = vadd.f32 %v8179_v15, %v5076_v4 }
0x57a6   :  { %v5079_v46 = vmul.f32 %v5077_v36, %v8471_v34  ;;  %v5177_v49 = vadd.f32 %v5077_v36, %v5077_v36 }
0x57a8   :  { %v5080_v5 = vadd.f32 %v5079_v46, %v8458_v6  ;;  %v5178_v57 = vadd.f32 %v5177_v49, %v5028_v42 }
0x57aa   :  { %6845 = vmatmul.msk.f32.vlgmr.msrb.gmra.mxu0 %vm56_vm0, %v5080_v5 }
0x57ab   :  { %5299 = vmatpush.msrb.mxu0 %v8112_v23 }
0x57ad   :  { %5300 = vmatpush.msrb.mxu0 %v8118_v24 }
0x5827   :  { %v5101_v47 = vpop.f32.mrf.mxu0 }
0x5828   :  { %v5102_v39 = vadd.f32 %v8168_v2, %v5101_v47 }
0x582a   :  { %7083 = vtanh.f32 %v5102_v39 }
0x5830   :  { %v7084_v48 = vpop.eup %7083 }
0x5831   :  { %6846 = vmatmul.msk.f32.vlgmr.msrb.gmra.mxu2 %vm916_vm1, %v7084_v48 }
0x5832   :  { %5321 = vmatpush.msrb.mxu2 %v8126_v50 }
0x5834   :  { %5322 = vmatpush.msrb.mxu2 %v8132_v51 }
0x5836   :  { %5323 = vmatpush.msrb.mxu2 %v8150_v32 }
0x5838   :  { %5324 = vmatpush.msrb.mxu2 %v8156_v59 }
0x58b4   :  { %v5125_v53 = vpop.f32.mrf.mxu2 }
0x58b5   :  { %v5126_v55 = vadd.f32 %v8179_v15, %v5125_v53 }
0x58b7   :  { %v5128_v54 = vmul.f32 %v5126_v55, %v8497_v52  ;;  %v5179_v58 = vadd.f32 %v5126_v55, %v5126_v55 }
0x58b9   :  { %v5129_v56 = vadd.f32 %v5128_v54, %v8458_v6  ;;  %v5180_v29 = vadd.f32 %v5179_v58, %v5178_v57 }
0x58bb   :  { %6847 = vmatmul.msk.f32.vlgmr.msrb.gmra.mxu1 %vm56_vm0, %v5129_v56 }
0x58bc   :  { %5348 = vmatpush.msrb.mxu1 %v8112_v23 }
0x58be   :  { %5349 = vmatpush.msrb.mxu1 %v8118_v24 }
0x5938   :  { %v5150_v37 = vpop.f32.mrf.mxu1 }
0x5939   :  { %v5151_v60 = vadd.f32 %v8168_v2, %v5150_v37 }
0x593b   :  { %7085 = vtanh.f32 %v5151_v60 }
0x5941   :  { %v7086_v61 = vpop.eup %7085 }
0x5942   :  { %6848 = vmatmul.msk.f32.vlgmr.msrb.gmra.mxu3 %vm916_vm1, %v7086_v61 }
0x5943   :  { %5370 = vmatpush.msrb.mxu3 %v8126_v50 }
0x5945   :  { %5371 = vmatpush.msrb.mxu3 %v8132_v51 }
0x5947   :  { %5372 = vmatpush.msrb.mxu3 %v8150_v32 }
0x5949   :  { %5373 = vmatpush.msrb.mxu3 %v8156_v59 }
0x59c5   :  { %v5174_v62 = vpop.f32.mrf.mxu3 }
0x59c6   :  { %v5175_v10 = vadd.f32 %v8179_v15, %v5174_v62 }
0x59c8   :  { %v5181_v40 = vadd.f32 %v5180_v29, %v5175_v10 }
0x59ca   :  { %v5182_v14 = vmul.f32 %v5181_v40, %v8512_v3 }
0x59cc   :  { %v8516_v11 = vadd.f32 %v5182_v14, %v8458_v6 }
0x59ce   :  { %6849 = vmatmul.msk.f32.vlgmr.msra.gmra.mxu0 %vm56_vm0, %v8516_v11 }
0x59cf   :  { %5402 = vmatpush.msra.mxu0 %v8112_v23 }
0x59d1   :  { %5403 = vmatpush.msra.mxu0 %v8118_v24 }
0x5a4b   :  { %v5204_v16 = vpop.f32.mrf.mxu0 }
0x5a4c   :  { %v5205_v0 = vadd.f32 %v8168_v2, %v5204_v16 }
0x5a4e   :  { %7087 = vtanh.f32 %v5205_v0 }
0x5a54   :  { %v7088_v1 = vpop.eup %7087 }
0x5a55   :  { %6850 = vmatmul.msk.f32.vlgmr.msra.gmra.mxu2 %vm916_vm1, %v7088_v1 }
0x5a56   :  { %5424 = vmatpush.msra.mxu2 %v8126_v50  ;;  %v8541_v50 = vld [vmem:[%s8895_s2] sm:$0xff] }
0x5a58   :  { %5425 = vmatpush.msra.mxu2 %v8132_v51 }
0x5a5a   :  { %5426 = vmatpush.msra.mxu2 %v8150_v32 }
0x5a5c   :  { %5427 = vmatpush.msra.mxu2 %v8156_v59 }
0x5ad8   :  { %v5228_v63 = vpop.f32.mrf.mxu2 }
0x5ad9   :  { %v5229_v23 = vadd.f32 %v8179_v15, %v5228_v63 }
0x5adb   :  { %v5231_v24 = vmul.f32 %v5229_v23, %v8471_v34 }
0x5add   :  { %v5232_v17 = vadd.f32 %v5231_v24, %v8516_v11 }
0x5adf   :  { %6851 = vmatmul.msk.f32.vlgmr.msra.gmra.mxu1 %vm56_vm0, %v5232_v17 }
0x5ae0   :  { %5451 = vmatpush.msra.mxu1 %v8535_v9 }
0x5ae2   :  { %5452 = vmatpush.msra.mxu1 %v8541_v50 }
0x5b5c   :  { %v5253_v51 = vpop.f32.mrf.mxu1 }
0x5b5d   :  { %v5254_v18 = vadd.f32 %v8168_v2, %v5253_v51 }
0x5b5f   :  { %7089 = vtanh.f32 %v5254_v18 }
0x5b65   :  { %v7090_v19 = vpop.eup %7089 }
0x5b66   :  { %6852 = vmatmul.msk.f32.vlgmr.msra.gmra.mxu3 %vm916_vm1, %v7090_v19 }
0x5b67   :  { %5473 = vmatpush.msra.mxu3 %v8549_v20 }
0x5b69   :  { %5474 = vmatpush.msra.mxu3 %v8555_v13 }
0x5b6b   :  { %5475 = vmatpush.msra.mxu3 %v8150_v32 }
0x5b6d   :  { %5476 = vmatpush.msra.mxu3 %v8156_v59  ;;  %v8573_v59 = vld [vmem:[%s8897_s4 + $0x8] sm:$0xff] }
0x5be9   :  { %v5277_v21 = vpop.f32.mrf.mxu3 }
0x5bea   :  { %v5278_v22 = vadd.f32 %v8179_v15, %v5277_v21 }
0x5bec   :  { %v5280_v26 = vmul.f32 %v5278_v22, %v8471_v34 }
0x5bee   :  { %v5281_v28 = vadd.f32 %v5280_v26, %v8516_v11 }
0x5bf0   :  { %6853 = vmatmul.msk.f32.vlgmr.msrb.gmra.mxu0 %vm56_vm0, %v5281_v28 }
0x5bf1   :  { %5500 = vmatpush.msrb.mxu0 %v8535_v9 }
0x5bf3   :  { %5501 = vmatpush.msrb.mxu0 %v8541_v50 }
0x5c6d   :  { %v5302_v25 = vpop.f32.mrf.mxu0 }
0x5c6e   :  { %v5303_v30 = vadd.f32 %v8168_v2, %v5302_v25  ;;  %v5378_v2 = vadd.f32 %v5278_v22, %v5278_v22 }
0x5c70   :  { %7091 = vtanh.f32 %v5303_v30  ;;  %v5379_v7 = vadd.f32 %v5378_v2, %v5229_v23 }
0x5c76   :  { %v7092_v32 = vpop.eup %7091 }
0x5c77   :  { %6854 = vmatmul.msk.f32.vlgmr.msrb.gmra.mxu2 %vm916_vm1, %v7092_v32 }
0x5c78   :  { %5522 = vmatpush.msrb.mxu2 %v8549_v20 }
0x5c7a   :  { %5523 = vmatpush.msrb.mxu2 %v8555_v13 }
0x5c7c   :  { %5524 = vmatpush.msrb.mxu2 %v8573_v59 }
0x5c7e   :  { %5525 = vmatpush.msrb.mxu2 %v8579_v27 }
0x5cfa   :  { %v5326_v31 = vpop.f32.mrf.mxu2 }
0x5cfb   :  { %v5327_v6 = vadd.f32 %v8179_v15, %v5326_v31 }
0x5cfd   :  { %v5329_v8 = vmul.f32 %v5327_v6, %v8497_v52  ;;  %v5380_v33 = vadd.f32 %v5327_v6, %v5327_v6 }
0x5cff   :  { %v5330_v38 = vadd.f32 %v5329_v8, %v8516_v11  ;;  %v5381_v35 = vadd.f32 %v5380_v33, %v5379_v7 }
0x5d01   :  { %6855 = vmatmul.msk.f32.vlgmr.msrb.gmra.mxu1 %vm56_vm0, %v5330_v38 }
0x5d02   :  { %5549 = vmatpush.msrb.mxu1 %v8535_v9 }
0x5d04   :  { %5550 = vmatpush.msrb.mxu1 %v8541_v50 }
0x5d7e   :  { %v5351_v42 = vpop.f32.mrf.mxu1 }
0x5d7f   :  { %v5352_v15 = vadd.f32 %v8591_v12, %v5351_v42 }
0x5d81   :  { %7093 = vtanh.f32 %v5352_v15 }
0x5d87   :  { %v7094_v41 = vpop.eup %7093 }
0x5d88   :  { %6856 = vmatmul.msk.f32.vlgmr.msrb.gmra.mxu3 %vm916_vm1, %v7094_v41 }
0x5d89   :  { %5571 = vmatpush.msrb.mxu3 %v8549_v20 }
0x5d8b   :  { %5572 = vmatpush.msrb.mxu3 %v8555_v13 }
0x5d8d   :  { %5573 = vmatpush.msrb.mxu3 %v8573_v59 }
0x5d8f   :  { %5574 = vmatpush.msrb.mxu3 %v8579_v27 }
0x5e0b   :  { %v5375_v43 = vpop.f32.mrf.mxu3 }
0x5e0c   :  { %v5376_v45 = vadd.f32 %v8602_v44, %v5375_v43 }
0x5e0e   :  { %v5382_v4 = vadd.f32 %v5381_v35, %v5376_v45 }
0x5e10   :  { %v5383_v36 = vmul.f32 %v5382_v4, %v8512_v3 }
0x5e12   :  { %v8607_v46 = vadd.f32 %v5383_v36, %v8516_v11 }
0x5e14   :  { %6857 = vmatmul.msk.f32.vlgmr.msra.gmra.mxu0 %vm56_vm0, %v8607_v46 }
0x5e15   :  { %5603 = vmatpush.msra.mxu0 %v8535_v9 }
0x5e17   :  { %5604 = vmatpush.msra.mxu0 %v8541_v50 }
0x5e91   :  { %v5405_v5 = vpop.f32.mrf.mxu0 }
0x5e92   :  { %v5406_v47 = vadd.f32 %v8591_v12, %v5405_v5 }
0x5e94   :  { %7095 = vtanh.f32 %v5406_v47 }
0x5e9a   :  { %v7096_v39 = vpop.eup %7095 }
0x5e9b   :  { %6858 = vmatmul.msk.f32.vlgmr.msra.gmra.mxu2 %vm916_vm1, %v7096_v39 }
0x5e9c   :  { %5625 = vmatpush.msra.mxu2 %v8549_v20 }
0x5e9e   :  { %5626 = vmatpush.msra.mxu2 %v8555_v13 }
0x5ea0   :  { %5627 = vmatpush.msra.mxu2 %v8573_v59 }
0x5ea2   :  { %5628 = vmatpush.msra.mxu2 %v8579_v27 }
0x5f1e   :  { %v5429_v48 = vpop.f32.mrf.mxu2 }
0x5f1f   :  { %v5430_v49 = vadd.f32 %v8602_v44, %v5429_v48 }
0x5f21   :  { %v5432_v53 = vmul.f32 %v5430_v49, %v8471_v34 }
0x5f23   :  { %v5433_v55 = vadd.f32 %v5432_v53, %v8607_v46 }
0x5f25   :  { %6859 = vmatmul.msk.f32.vlgmr.msra.gmra.mxu1 %vm56_vm0, %v5433_v55 }
0x5f26   :  { %5652 = vmatpush.msra.mxu1 %v8535_v9 }
0x5f28   :  { %5653 = vmatpush.msra.mxu1 %v8541_v50 }
0x5fa2   :  { %v5454_v57 = vpop.f32.mrf.mxu1 }
0x5fa3   :  { %v5455_v54 = vadd.f32 %v8591_v12, %v5454_v57 }
0x5fa5   :  { %7097 = vtanh.f32 %v5455_v54 }
0x5fab   :  { %v7098_v58 = vpop.eup %7097 }
0x5fac   :  { %6860 = vmatmul.msk.f32.vlgmr.msra.gmra.mxu3 %vm916_vm1, %v7098_v58 }
0x5fad   :  { %5674 = vmatpush.msra.mxu3 %v8549_v20 }
0x5faf   :  { %5675 = vmatpush.msra.mxu3 %v8555_v13 }
0x5fb1   :  { %5676 = vmatpush.msra.mxu3 %v8573_v59 }
0x5fb3   :  { %5677 = vmatpush.msra.mxu3 %v8579_v27 }
0x602f   :  { %v5478_v56 = vpop.f32.mrf.mxu3 }
0x6030   :  { %v5479_v29 = vadd.f32 %v8602_v44, %v5478_v56 }
0x6032   :  { %v5481_v37 = vmul.f32 %v5479_v29, %v8471_v34  ;;  %v5579_v40 = vadd.f32 %v5479_v29, %v5479_v29 }
0x6034   :  { %v5482_v60 = vadd.f32 %v5481_v37, %v8607_v46  ;;  %v5580_v16 = vadd.f32 %v5579_v40, %v5430_v49 }
0x6036   :  { %6861 = vmatmul.msk.f32.vlgmr.msrb.gmra.mxu0 %vm56_vm0, %v5482_v60 }
0x6037   :  { %5701 = vmatpush.msrb.mxu0 %v8535_v9 }
0x6039   :  { %5702 = vmatpush.msrb.mxu0 %v8541_v50 }
0x60b3   :  { %v5503_v61 = vpop.f32.mrf.mxu0 }
0x60b4   :  { %v5504_v62 = vadd.f32 %v8591_v12, %v5503_v61  ;;  %v8722_v61 = vstv %s6874_s5 }
0x60b6   :  { %7099 = vtanh.f32 %v5504_v62 }
0x60bc   :  { %v7100_v10 = vpop.eup %7099 }
0x60bd   :  { %6862 = vmatmul.msk.f32.vlgmr.msrb.gmra.mxu2 %vm916_vm1, %v7100_v10 }
0x60be   :  { %5723 = vmatpush.msrb.mxu2 %v8549_v20 }
0x60c0   :  { %5724 = vmatpush.msrb.mxu2 %v8555_v13 }
0x60c2   :  { %5725 = vmatpush.msrb.mxu2 %v8573_v59 }
0x60c4   :  { %5726 = vmatpush.msrb.mxu2 %v8579_v27 }
0x6140   :  { %v5527_v14 = vpop.f32.mrf.mxu2 }
0x6141   :  { %v5528_v11 = vadd.f32 %v8602_v44, %v5527_v14 }
0x6143   :  { %v5530_v0 = vmul.f32 %v5528_v11, %v8497_v52  ;;  %v5581_v1 = vadd.f32 %v5528_v11, %v5528_v11 }
0x6145   :  { %v5531_v63 = vadd.f32 %v5530_v0, %v8607_v46  ;;  %v5582_v23 = vadd.f32 %v5581_v1, %v5580_v16 }
0x6147   :  { %6863 = vmatmul.msk.f32.vlgmr.msrb.gmra.mxu1 %vm56_vm0, %v5531_v63 }
0x6148   :  { %5750 = vmatpush.msrb.mxu1 %v8535_v9 }
0x614a   :  { %5751 = vmatpush.msrb.mxu1 %v8541_v50 }
0x61c4   :  { %v5552_v24 = vpop.f32.mrf.mxu1 }
0x61c5   :  { %v5553_v17 = vadd.f32 %v8591_v12, %v5552_v24 }
0x61c7   :  { %7101 = vtanh.f32 %v5553_v17 }
0x61cd   :  { %v7102_v51 = vpop.eup %7101 }
0x61ce   :  { %6864 = vmatmul.msk.f32.vlgmr.msrb.gmra.mxu3 %vm916_vm1, %v7102_v51 }
0x61cf   :  { %5772 = vmatpush.msrb.mxu3 %v8549_v20 }
0x61d1   :  { %5773 = vmatpush.msrb.mxu3 %v8555_v13 }
0x61d3   :  { %5774 = vmatpush.msrb.mxu3 %v8573_v59 }
0x61d5   :  { %5775 = vmatpush.msrb.mxu3 %v8579_v27 }
0x6251   :  { %v5576_v18 = vpop.f32.mrf.mxu3 }
0x6252   :  { %v5577_v19 = vadd.f32 %v8602_v44, %v5576_v18 }
0x6254   :  { %v5583_v21 = vadd.f32 %v5582_v23, %v5577_v19 }
0x6256   :  { %v5584_v22 = vmul.f32 %v5583_v21, %v8512_v3  ;;  %v8748_v21 = vstv %s6873_s8 }
0x6258   :  { %v8658_v26 = vadd.f32 %v5584_v22, %v8607_v46 }
0x625a   :  { %6865 = vmatmul.msk.f32.vlgmr.msra.gmra.mxu0 %vm56_vm0, %v8658_v26 }
0x625b   :  { %5818 = vmatpush.msra.mxu0 %v8535_v9 }
0x625d   :  { %5819 = vmatpush.msra.mxu0 %v8541_v50 }
0x62d7   :  { %v5606_v28 = vpop.f32.mrf.mxu0 }
0x62d8   :  { %v5607_v25 = vadd.f32 %v8591_v12, %v5606_v28 }
0x62da   :  { %7103 = vtanh.f32 %v5607_v25 }
0x62e0   :  { %v7104_v30 = vpop.eup %7103 }
0x62e1   :  { %6866 = vmatmul.msk.f32.vlgmr.msra.gmra.mxu2 %vm916_vm1, %v7104_v30 }
0x62e2   :  { %5840 = vmatpush.msra.mxu2 %v8549_v20 }
0x62e4   :  { %5841 = vmatpush.msra.mxu2 %v8555_v13 }
0x62e6   :  { %5842 = vmatpush.msra.mxu2 %v8573_v59 }
0x62e8   :  { %5843 = vmatpush.msra.mxu2 %v8579_v27 }
0x6364   :  { %v5630_v32 = vpop.f32.mrf.mxu2 }
0x6365   :  { %v5631_v2 = vadd.f32 %v8602_v44, %v5630_v32 }
0x6367   :  { %v5633_v31 = vmul.f32 %v5631_v2, %v8471_v34 }
0x6369   :  { %v5634_v6 = vadd.f32 %v5633_v31, %v8658_v26 }
0x636b   :  { %6867 = vmatmul.msk.f32.vlgmr.msra.gmra.mxu1 %vm56_vm0, %v5634_v6 }
0x636c   :  { %5867 = vmatpush.msra.mxu1 %v8535_v9 }
0x636e   :  { %5868 = vmatpush.msra.mxu1 %v8541_v50 }
0x63e8   :  { %v5655_v7 = vpop.f32.mrf.mxu1 }
0x63e9   :  { %v5656_v8 = vadd.f32 %v8591_v12, %v5655_v7 }
0x63eb   :  { %7105 = vtanh.f32 %v5656_v8 }
0x63f1   :  { %v7106_v33 = vpop.eup %7105 }
0x63f2   :  { %6868 = vmatmul.msk.f32.vlgmr.msra.gmra.mxu3 %vm916_vm1, %v7106_v33 }
0x63f3   :  { %5889 = vmatpush.msra.mxu3 %v8549_v20 }
0x63f5   :  { %5890 = vmatpush.msra.mxu3 %v8555_v13 }
0x63f7   :  { %5891 = vmatpush.msra.mxu3 %v8573_v59 }
0x63f9   :  { %5892 = vmatpush.msra.mxu3 %v8579_v27 }
0x6475   :  { %v5679_v38 = vpop.f32.mrf.mxu3 }
0x6476   :  { %v5680_v35 = vadd.f32 %v8602_v44, %v5679_v38  ;;  %v8763_v38 = vstv %s6875_s9 }
0x6478   :  { %v5682_v42 = vmul.f32 %v5680_v35, %v8471_v34  ;;  %v5780_v34 = vadd.f32 %v5680_v35, %v5680_v35 }
0x647a   :  { %v5683_v15 = vadd.f32 %v5682_v42, %v8658_v26  ;;  %v5781_v46 = vadd.f32 %v5780_v34, %v5631_v2 }
0x647c   :  { %6869 = vmatmul.msk.f32.vlgmr.msrb.gmra.mxu0 %vm56_vm0, %v5683_v15 }
0x647d   :  { %5916 = vmatpush.msrb.mxu0 %v8535_v9 }
0x647f   :  { %5917 = vmatpush.msrb.mxu0 %v8541_v50 }
0x64f9   :  { %v5704_v41 = vpop.f32.mrf.mxu0 }
0x64fa   :  { %v5705_v43 = vadd.f32 %v8591_v12, %v5704_v41 }
0x64fc   :  { %7107 = vtanh.f32 %v5705_v43 }
0x6502   :  { %v7108_v45 = vpop.eup %7107 }
0x6503   :  { %6870 = vmatmul.msk.f32.vlgmr.msrb.gmra.mxu2 %vm916_vm1, %v7108_v45 }
0x6504   :  { %5938 = vmatpush.msrb.mxu2 %v8549_v20 }
0x6506   :  { %5939 = vmatpush.msrb.mxu2 %v8555_v13 }
0x6508   :  { %5940 = vmatpush.msrb.mxu2 %v8573_v59 }
0x650a   :  { %5941 = vmatpush.msrb.mxu2 %v8579_v27 }
0x6586   :  { %v5728_v4 = vpop.f32.mrf.mxu2 }
0x6587   :  { %v5729_v36 = vadd.f32 %v8602_v44, %v5728_v4 }
0x6589   :  { %v5731_v5 = vmul.f32 %v5729_v36, %v8497_v52  ;;  %v5782_v47 = vadd.f32 %v5729_v36, %v5729_v36 }
0x658b   :  { %v5732_v39 = vadd.f32 %v5731_v5, %v8658_v26  ;;  %v5783_v48 = vadd.f32 %v5782_v47, %v5781_v46 }
0x658d   :  { %6871 = vmatmul.msk.f32.vlgmr.msrb.gmra.mxu1 %vm56_vm0, %v5732_v39 }
0x658e   :  { %5965 = vmatpush.msrb.mxu1 %v8535_v9 }
0x6590   :  { %5966 = vmatpush.msrb.mxu1 %v8541_v50 }
0x660a   :  { %v5753_v49 = vpop.f32.mrf.mxu1 }
0x660b   :  { %v5754_v53 = vadd.f32 %v8591_v12, %v5753_v49 }
0x660d   :  { %7109 = vtanh.f32 %v5754_v53 }
0x6613   :  { %v7110_v55 = vpop.eup %7109 }
0x6614   :  { %6872 = vmatmul.msk.f32.vlgmr.msrb.gmra.mxu3 %vm916_vm1, %v7110_v55 }
0x6615   :  { %5987 = vmatpush.msrb.mxu3 %v8549_v20 }
0x6617   :  { %5988 = vmatpush.msrb.mxu3 %v8555_v13 }
0x6619   :  { %5989 = vmatpush.msrb.mxu3 %v8573_v59 }
0x661b   :  { %5990 = vmatpush.msrb.mxu3 %v8579_v27 }
0x6697   :  { %v5777_v52 = vpop.f32.mrf.mxu3 }
0x6698   :  { %v5778_v57 = vadd.f32 %v8602_v44, %v5777_v52 }
0x669a   :  { %v5784_v54 = vadd.f32 %v5783_v48, %v5778_v57 }
0x669c   :  { %v5785_v58 = vmul.f32 %v5784_v54, %v8512_v3 }
0x669e   :  { %v8709_v56 = vadd.f32 %v5785_v58, %v8658_v26 }
0x66a0   :  { %5788 = vrot.lane.b32.xlu2 %v8709_v56, %s7213_s3  ;;  %6876 = vmatmul.msk.f32.vlgmr.msra.gmra.mxu0 %vm56_vm0, %v8709_v56 }
0x66a1   :  { %6019 = vmatpush.msra.mxu0 %v8535_v9 }
0x66a3   :  { %6020 = vmatpush.msra.mxu0 %v8541_v50 }
0x66fa   :  { %v5789_v29 = vpop.permute.xlu2 %5788 }
0x66fb   :  { %5792 = vst.msk [vmem:[#allocation6] sm:$0xff] %vm5791_vm7, %v5789_v29 }
0x671d   :  { %v5821_v37 = vpop.f32.mrf.mxu0 }
0x671e   :  { %v5822_v60 = vadd.f32 %v8591_v12, %v5821_v37 }
0x6720   :  { %7111 = vtanh.f32 %v5822_v60 }
0x6726   :  { %v7112_v3 = vpop.eup %7111 }
0x6727   :  { %6877 = vmatmul.msk.f32.vlgmr.msra.gmra.mxu2 %vm916_vm1, %v7112_v3 }
0x6728   :  { %6041 = vmatpush.msra.mxu2 %v8549_v20 }
0x672a   :  { %6042 = vmatpush.msra.mxu2 %v8555_v13 }
0x672c   :  { %6043 = vmatpush.msra.mxu2 %v8573_v59 }
0x672e   :  { %6044 = vmatpush.msra.mxu2 %v8579_v27 }
0x67aa   :  { %v5845_v62 = vpop.f32.mrf.mxu2 }
0x67ab   :  { %v5846_v10 = vadd.f32 %v8602_v44, %v5845_v62 }
0x67ad   :  { %v5848_v40 = vmul.f32 %v5846_v10, %v8722_v61 }
0x67af   :  { %v5849_v14 = vadd.f32 %v5848_v40, %v8709_v56 }
0x67b1   :  { %6878 = vmatmul.msk.f32.vlgmr.msra.gmra.mxu1 %vm56_vm0, %v5849_v14 }
0x67b2   :  { %6068 = vmatpush.msra.mxu1 %v8535_v9 }
0x67b4   :  { %6069 = vmatpush.msra.mxu1 %v8541_v50 }
0x682e   :  { %v5870_v11 = vpop.f32.mrf.mxu1 }
0x682f   :  { %v5871_v16 = vadd.f32 %v8591_v12, %v5870_v11 }
0x6831   :  { %7113 = vtanh.f32 %v5871_v16 }
0x6837   :  { %v7114_v0 = vpop.eup %7113 }
0x6838   :  { %6879 = vmatmul.msk.f32.vlgmr.msra.gmra.mxu3 %vm916_vm1, %v7114_v0 }
0x6839   :  { %6090 = vmatpush.msra.mxu3 %v8549_v20 }
0x683b   :  { %6091 = vmatpush.msra.mxu3 %v8555_v13 }
0x683d   :  { %6092 = vmatpush.msra.mxu3 %v8573_v59 }
0x683f   :  { %6093 = vmatpush.msra.mxu3 %v8579_v27 }
0x68bb   :  { %v5894_v1 = vpop.f32.mrf.mxu3 }
0x68bc   :  { %v5895_v63 = vadd.f32 %v8602_v44, %v5894_v1 }
0x68be   :  { %v5897_v23 = vmul.f32 %v5895_v63, %v8722_v61  ;;  %v5995_v19 = vadd.f32 %v5895_v63, %v5895_v63 }
0x68c0   :  { %v5898_v24 = vadd.f32 %v5897_v23, %v8709_v56  ;;  %v5996_v28 = vadd.f32 %v5995_v19, %v5846_v10 }
0x68c2   :  { %6880 = vmatmul.msk.f32.vlgmr.msrb.gmra.mxu0 %vm56_vm0, %v5898_v24 }
0x68c3   :  { %6117 = vmatpush.msrb.mxu0 %v8535_v9 }
0x68c5   :  { %6118 = vmatpush.msrb.mxu0 %v8541_v50 }
0x693f   :  { %v5919_v17 = vpop.f32.mrf.mxu0 }
0x6940   :  { %v5920_v51 = vadd.f32 %v8591_v12, %v5919_v17 }
0x6942   :  { %7115 = vtanh.f32 %v5920_v51 }
0x6948   :  { %v7116_v18 = vpop.eup %7115 }
0x6949   :  { %6881 = vmatmul.msk.f32.vlgmr.msrb.gmra.mxu2 %vm916_vm1, %v7116_v18 }
0x694a   :  { %6139 = vmatpush.msrb.mxu2 %v8549_v20 }
0x694c   :  { %6140 = vmatpush.msrb.mxu2 %v8555_v13 }
0x694e   :  { %6141 = vmatpush.msrb.mxu2 %v8573_v59 }
0x6950   :  { %6142 = vmatpush.msrb.mxu2 %v8579_v27 }
0x69cc   :  { %v5943_v22 = vpop.f32.mrf.mxu2 }
0x69cd   :  { %v5944_v26 = vadd.f32 %v8602_v44, %v5943_v22 }
0x69cf   :  { %v5946_v25 = vmul.f32 %v5944_v26, %v8748_v21  ;;  %v5997_v30 = vadd.f32 %v5944_v26, %v5944_v26 }
0x69d1   :  { %v5947_v32 = vadd.f32 %v5946_v25, %v8709_v56  ;;  %v5998_v2 = vadd.f32 %v5997_v30, %v5996_v28 }
0x69d3   :  { %6882 = vmatmul.msk.f32.vlgmr.msrb.gmra.mxu1 %vm56_vm0, %v5947_v32 }
0x69d4   :  { %6166 = vmatpush.msrb.mxu1 %v8535_v9 }
0x69d6   :  { %6167 = vmatpush.msrb.mxu1 %v8541_v50 }
0x6a50   :  { %v5968_v31 = vpop.f32.mrf.mxu1 }
0x6a51   :  { %v5969_v6 = vadd.f32 %v8591_v12, %v5968_v31 }
0x6a53   :  { %7117 = vtanh.f32 %v5969_v6 }
0x6a59   :  { %v7118_v7 = vpop.eup %7117 }
0x6a5a   :  { %6883 = vmatmul.msk.f32.vlgmr.msrb.gmra.mxu3 %vm916_vm1, %v7118_v7 }
0x6a5b   :  { %6188 = vmatpush.msrb.mxu3 %v8549_v20 }
0x6a5d   :  { %6189 = vmatpush.msrb.mxu3 %v8555_v13 }
0x6a5f   :  { %6190 = vmatpush.msrb.mxu3 %v8573_v59 }
0x6a61   :  { %6191 = vmatpush.msrb.mxu3 %v8579_v27 }
0x6add   :  { %v5992_v8 = vpop.f32.mrf.mxu3 }
0x6ade   :  { %v5993_v33 = vadd.f32 %v8602_v44, %v5992_v8 }
0x6ae0   :  { %v5999_v35 = vadd.f32 %v5998_v2, %v5993_v33 }
0x6ae2   :  { %v6000_v42 = vmul.f32 %v5999_v35, %v8763_v38 }
0x6ae4   :  { %v8767_v15 = vadd.f32 %v6000_v42, %v8709_v56 }
0x6ae6   :  { %6884 = vmatmul.msk.f32.vlgmr.msra.gmra.mxu0 %vm56_vm0, %v8767_v15 }
0x6ae7   :  { %6220 = vmatpush.msra.mxu0 %v8535_v9 }
0x6ae9   :  { %6221 = vmatpush.msra.mxu0 %v8541_v50 }
0x6b63   :  { %v6022_v41 = vpop.f32.mrf.mxu0 }
0x6b64   :  { %v6023_v43 = vadd.f32 %v8591_v12, %v6022_v41 }
0x6b66   :  { %7119 = vtanh.f32 %v6023_v43 }
0x6b6c   :  { %v7120_v45 = vpop.eup %7119 }
0x6b6d   :  { %6885 = vmatmul.msk.f32.vlgmr.msra.gmra.mxu2 %vm916_vm1, %v7120_v45 }
0x6b6e   :  { %6242 = vmatpush.msra.mxu2 %v8549_v20 }
0x6b70   :  { %6243 = vmatpush.msra.mxu2 %v8555_v13 }
0x6b72   :  { %6244 = vmatpush.msra.mxu2 %v8573_v59 }
0x6b74   :  { %6245 = vmatpush.msra.mxu2 %v8579_v27 }
0x6bf0   :  { %v6046_v34 = vpop.f32.mrf.mxu2 }
0x6bf1   :  { %v6047_v4 = vadd.f32 %v8602_v44, %v6046_v34 }
0x6bf3   :  { %v6049_v36 = vmul.f32 %v6047_v4, %v8722_v61 }
0x6bf5   :  { %v6050_v46 = vadd.f32 %v6049_v36, %v8767_v15 }
0x6bf7   :  { %6886 = vmatmul.msk.f32.vlgmr.msra.gmra.mxu1 %vm56_vm0, %v6050_v46 }
0x6bf8   :  { %6269 = vmatpush.msra.mxu1 %v8535_v9 }
0x6bfa   :  { %6270 = vmatpush.msra.mxu1 %v8541_v50 }
0x6c74   :  { %v6071_v5 = vpop.f32.mrf.mxu1 }
0x6c75   :  { %v6072_v47 = vadd.f32 %v8591_v12, %v6071_v5 }
0x6c77   :  { %7121 = vtanh.f32 %v6072_v47 }
0x6c7d   :  { %v7122_v39 = vpop.eup %7121 }
0x6c7e   :  { %6887 = vmatmul.msk.f32.vlgmr.msra.gmra.mxu3 %vm916_vm1, %v7122_v39 }
0x6c7f   :  { %6291 = vmatpush.msra.mxu3 %v8549_v20 }
0x6c81   :  { %6292 = vmatpush.msra.mxu3 %v8555_v13 }
0x6c83   :  { %6293 = vmatpush.msra.mxu3 %v8573_v59 }
0x6c85   :  { %6294 = vmatpush.msra.mxu3 %v8579_v27 }
0x6d01   :  { %v6095_v48 = vpop.f32.mrf.mxu3 }
0x6d02   :  { %v6096_v49 = vadd.f32 %v8602_v44, %v6095_v48 }
0x6d04   :  { %v6098_v53 = vmul.f32 %v6096_v49, %v8722_v61  ;;  %v6196_v58 = vadd.f32 %v6096_v49, %v6096_v49 }
0x6d06   :  { %v6099_v55 = vadd.f32 %v6098_v53, %v8767_v15  ;;  %v6197_v37 = vadd.f32 %v6196_v58, %v6047_v4 }
0x6d08   :  { %6888 = vmatmul.msk.f32.vlgmr.msrb.gmra.mxu0 %vm56_vm0, %v6099_v55 }
0x6d09   :  { %6318 = vmatpush.msrb.mxu0 %v8535_v9 }
0x6d0b   :  { %6319 = vmatpush.msrb.mxu0 %v8541_v50 }
0x6d85   :  { %v6120_v52 = vpop.f32.mrf.mxu0 }
0x6d86   :  { %v6121_v57 = vadd.f32 %v8591_v12, %v6120_v52 }
0x6d88   :  { %7123 = vtanh.f32 %v6121_v57 }
0x6d8e   :  { %v7124_v54 = vpop.eup %7123 }
0x6d8f   :  { %6889 = vmatmul.msk.f32.vlgmr.msrb.gmra.mxu2 %vm916_vm1, %v7124_v54 }
0x6d90   :  { %6340 = vmatpush.msrb.mxu2 %v8549_v20 }
0x6d92   :  { %6341 = vmatpush.msrb.mxu2 %v8555_v13 }
0x6d94   :  { %6342 = vmatpush.msrb.mxu2 %v8573_v59 }
0x6d96   :  { %6343 = vmatpush.msrb.mxu2 %v8579_v27 }
0x6e12   :  { %v6144_v56 = vpop.f32.mrf.mxu2 }
0x6e13   :  { %v6145_v29 = vadd.f32 %v8602_v44, %v6144_v56 }
0x6e15   :  { %v6147_v60 = vmul.f32 %v6145_v29, %v8748_v21  ;;  %v6198_v3 = vadd.f32 %v6145_v29, %v6145_v29 }
0x6e17   :  { %v6148_v62 = vadd.f32 %v6147_v60, %v8767_v15  ;;  %v6199_v10 = vadd.f32 %v6198_v3, %v6197_v37 }
0x6e19   :  { %6890 = vmatmul.msk.f32.vlgmr.msrb.gmra.mxu1 %vm56_vm0, %v6148_v62 }
0x6e1a   :  { %6367 = vmatpush.msrb.mxu1 %v8535_v9 }
0x6e1c   :  { %6368 = vmatpush.msrb.mxu1 %v8541_v50 }
0x6e96   :  { %v6169_v40 = vpop.f32.mrf.mxu1 }
0x6e97   :  { %v6170_v14 = vadd.f32 %v8591_v12, %v6169_v40 }
0x6e99   :  { %7125 = vtanh.f32 %v6170_v14 }
0x6e9f   :  { %v7126_v11 = vpop.eup %7125 }
0x6ea0   :  { %6891 = vmatmul.msk.f32.vlgmr.msrb.gmra.mxu3 %vm916_vm1, %v7126_v11 }
0x6ea1   :  { %6389 = vmatpush.msrb.mxu3 %v8549_v20 }
0x6ea3   :  { %6390 = vmatpush.msrb.mxu3 %v8555_v13 }
0x6ea5   :  { %6391 = vmatpush.msrb.mxu3 %v8573_v59 }
0x6ea7   :  { %6392 = vmatpush.msrb.mxu3 %v8579_v27 }
0x6f23   :  { %v6193_v16 = vpop.f32.mrf.mxu3 }
0x6f24   :  { %v6194_v0 = vadd.f32 %v8602_v44, %v6193_v16 }
0x6f26   :  { %v6200_v1 = vadd.f32 %v6199_v10, %v6194_v0 }
0x6f28   :  { %v6201_v63 = vmul.f32 %v6200_v1, %v8763_v38 }
0x6f2a   :  { %v8818_v23 = vadd.f32 %v6201_v63, %v8767_v15 }
0x6f2c   :  { %6892 = vmatmul.msk.f32.vlgmr.msra.gmra.mxu0 %vm56_vm0, %v8818_v23 }
0x6f2d   :  { %6421 = vmatpush.msra.mxu0 %v8535_v9 }
0x6f2f   :  { %6422 = vmatpush.msra.mxu0 %v8541_v50 }
0x6fa9   :  { %v6223_v24 = vpop.f32.mrf.mxu0 }
0x6faa   :  { %v6224_v17 = vadd.f32 %v8591_v12, %v6223_v24 }
0x6fac   :  { %7127 = vtanh.f32 %v6224_v17 }
0x6fb2   :  { %v7128_v51 = vpop.eup %7127 }
0x6fb3   :  { %6893 = vmatmul.msk.f32.vlgmr.msra.gmra.mxu2 %vm916_vm1, %v7128_v51 }
0x6fb4   :  { %6443 = vmatpush.msra.mxu2 %v8549_v20 }
0x6fb6   :  { %6444 = vmatpush.msra.mxu2 %v8555_v13 }
0x6fb8   :  { %6445 = vmatpush.msra.mxu2 %v8573_v59 }
0x6fba   :  { %6446 = vmatpush.msra.mxu2 %v8579_v27 }
0x7036   :  { %v6247_v18 = vpop.f32.mrf.mxu2 }
0x7037   :  { %v6248_v19 = vadd.f32 %v8602_v44, %v6247_v18 }
0x7039   :  { %v6250_v22 = vmul.f32 %v6248_v19, %v8722_v61 }
0x703b   :  { %v6251_v26 = vadd.f32 %v6250_v22, %v8818_v23 }
0x703d   :  { %6894 = vmatmul.msk.f32.vlgmr.msra.gmra.mxu1 %vm56_vm0, %v6251_v26 }
0x703e   :  { %6470 = vmatpush.msra.mxu1 %v8535_v9 }
0x7040   :  { %6471 = vmatpush.msra.mxu1 %v8541_v50 }
0x70ba   :  { %v6272_v28 = vpop.f32.mrf.mxu1 }
0x70bb   :  { %v6273_v25 = vadd.f32 %v8591_v12, %v6272_v28 }
0x70bd   :  { %7129 = vtanh.f32 %v6273_v25 }
0x70c3   :  { %v7130_v30 = vpop.eup %7129 }
0x70c4   :  { %6895 = vmatmul.msk.f32.vlgmr.msra.gmra.mxu3 %vm916_vm1, %v7130_v30 }
0x70c5   :  { %6492 = vmatpush.msra.mxu3 %v8549_v20 }
0x70c7   :  { %6493 = vmatpush.msra.mxu3 %v8555_v13 }
0x70c9   :  { %6494 = vmatpush.msra.mxu3 %v8573_v59 }
0x70cb   :  { %6495 = vmatpush.msra.mxu3 %v8579_v27 }
0x7147   :  { %v6296_v32 = vpop.f32.mrf.mxu3 }
0x7148   :  { %v6297_v2 = vadd.f32 %v8602_v44, %v6296_v32 }
0x714a   :  { %v6299_v31 = vmul.f32 %v6297_v2, %v8722_v61  ;;  %v6397_v35 = vadd.f32 %v6297_v2, %v6297_v2 }
0x714c   :  { %v6300_v6 = vadd.f32 %v6299_v31, %v8818_v23  ;;  %v6398_v41 = vadd.f32 %v6397_v35, %v6248_v19 }
0x714e   :  { %6896 = vmatmul.msk.f32.vlgmr.msrb.gmra.mxu0 %vm56_vm0, %v6300_v6 }
0x714f   :  { %6519 = vmatpush.msrb.mxu0 %v8535_v9 }
0x7151   :  { %6520 = vmatpush.msrb.mxu0 %v8541_v50 }
0x71cb   :  { %v6321_v7 = vpop.f32.mrf.mxu0 }
0x71cc   :  { %v6322_v8 = vadd.f32 %v8591_v12, %v6321_v7 }
0x71ce   :  { %7131 = vtanh.f32 %v6322_v8 }
0x71d4   :  { %v7132_v33 = vpop.eup %7131 }
0x71d5   :  { %6897 = vmatmul.msk.f32.vlgmr.msrb.gmra.mxu2 %vm916_vm1, %v7132_v33 }
0x71d6   :  { %6541 = vmatpush.msrb.mxu2 %v8549_v20 }
0x71d8   :  { %6542 = vmatpush.msrb.mxu2 %v8555_v13 }
0x71da   :  { %6543 = vmatpush.msrb.mxu2 %v8573_v59 }
0x71dc   :  { %6544 = vmatpush.msrb.mxu2 %v8579_v27 }
0x7258   :  { %v6345_v42 = vpop.f32.mrf.mxu2 }
0x7259   :  { %v6346_v15 = vadd.f32 %v8602_v44, %v6345_v42 }
0x725b   :  { %v6348_v43 = vmul.f32 %v6346_v15, %v8748_v21  ;;  %v6399_v45 = vadd.f32 %v6346_v15, %v6346_v15 }
0x725d   :  { %v6349_v34 = vadd.f32 %v6348_v43, %v8818_v23  ;;  %v6400_v4 = vadd.f32 %v6399_v45, %v6398_v41 }
0x725f   :  { %6898 = vmatmul.msk.f32.vlgmr.msrb.gmra.mxu1 %vm56_vm0, %v6349_v34 }
0x7260   :  { %6568 = vmatpush.msrb.mxu1 %v8535_v9 }
0x7262   :  { %6569 = vmatpush.msrb.mxu1 %v8541_v50 }
0x72dc   :  { %v6370_v36 = vpop.f32.mrf.mxu1 }
0x72dd   :  { %v6371_v46 = vadd.f32 %v8591_v12, %v6370_v36 }
0x72df   :  { %7133 = vtanh.f32 %v6371_v46 }
0x72e5   :  { %v7134_v5 = vpop.eup %7133 }
0x72e6   :  { %6899 = vmatmul.msk.f32.vlgmr.msrb.gmra.mxu3 %vm916_vm1, %v7134_v5 }
0x72e7   :  { %6590 = vmatpush.msrb.mxu3 %v8549_v20 }
0x72e9   :  { %6591 = vmatpush.msrb.mxu3 %v8555_v13 }
0x72eb   :  { %6592 = vmatpush.msrb.mxu3 %v8573_v59 }
0x72ed   :  { %6593 = vmatpush.msrb.mxu3 %v8579_v27 }
0x7369   :  { %v6394_v47 = vpop.f32.mrf.mxu3 }
0x736a   :  { %v6395_v9 = vadd.f32 %v8602_v44, %v6394_v47 }
0x736c   :  { %v6401_v39 = vadd.f32 %v6400_v4, %v6395_v9 }
0x736e   :  { %v6402_v50 = vmul.f32 %v6401_v39, %v8763_v38 }
0x7370   :  { %v6403_v48 = vadd.f32 %v6402_v50, %v8818_v23 }
0x7372   :  { %6900 = vmatmul.msk.f32.vlgmr.msra.gmra.mxu0 %vm56_vm0, %v6403_v48 }
0x73ef   :  { %v6424_v49 = vpop.f32.mrf.mxu0 }
0x73f0   :  { %v6425_v53 = vadd.f32 %v8591_v12, %v6424_v49 }
0x73f2   :  { %7135 = vtanh.f32 %v6425_v53 }
0x73f8   :  { %v7136_v20 = vpop.eup %7135 }
0x73f9   :  { %6901 = vmatmul.msk.f32.vlgmr.msra.gmra.mxu2 %vm916_vm1, %v7136_v20 }
0x747c   :  { %v6448_v13 = vpop.f32.mrf.mxu2 }
0x747d   :  { %v6449_v59 = vadd.f32 %v8602_v44, %v6448_v13 }
0x747f   :  { %v6451_v27 = vmul.f32 %v6449_v59, %v8722_v61 }
0x7481   :  { %v6452_v55 = vadd.f32 %v6451_v27, %v6403_v48 }
0x7483   :  { %6902 = vmatmul.msk.f32.vlgmr.msra.gmra.mxu1 %vm56_vm0, %v6452_v55 }
0x7500   :  { %v6473_v52 = vpop.f32.mrf.mxu1 }
0x7501   :  { %v6474_v57 = vadd.f32 %v8591_v12, %v6473_v52 }
0x7503   :  { %7137 = vtanh.f32 %v6474_v57 }
0x7509   :  { %v7138_v54 = vpop.eup %7137 }
0x750a   :  { %6903 = vmatmul.msk.f32.vlgmr.msra.gmra.mxu3 %vm916_vm1, %v7138_v54 }
0x758d   :  { %v6497_v58 = vpop.f32.mrf.mxu3 }
0x758e   :  { %v6498_v56 = vadd.f32 %v8602_v44, %v6497_v58 }
0x7590   :  { %v6500_v29 = vmul.f32 %v6498_v56, %v8722_v61  ;;  %v6598_v10 = vadd.f32 %v6498_v56, %v6498_v56 }
0x7592   :  { %v6501_v37 = vadd.f32 %v6500_v29, %v6403_v48  ;;  %v6599_v11 = vadd.f32 %v6598_v10, %v6449_v59 }
0x7594   :  { %6904 = vmatmul.msk.f32.vlgmr.msrb.gmra.mxu0 %vm56_vm0, %v6501_v37 }
0x7611   :  { %v6522_v60 = vpop.f32.mrf.mxu0 }
0x7612   :  { %v6523_v3 = vadd.f32 %v8591_v12, %v6522_v60 }
0x7614   :  { %7139 = vtanh.f32 %v6523_v3 }
0x761a   :  { %v7140_v62 = vpop.eup %7139 }
0x761b   :  { %6905 = vmatmul.msk.f32.vlgmr.msrb.gmra.mxu2 %vm916_vm1, %v7140_v62 }
0x769e   :  { %v6546_v40 = vpop.f32.mrf.mxu2 }
0x769f   :  { %v6547_v14 = vadd.f32 %v8602_v44, %v6546_v40 }
0x76a1   :  { %v6549_v16 = vmul.f32 %v6547_v14, %v8748_v21  ;;  %v6600_v0 = vadd.f32 %v6547_v14, %v6547_v14 }
0x76a3   :  { %v6550_v1 = vadd.f32 %v6549_v16, %v6403_v48  ;;  %v6601_v61 = vadd.f32 %v6600_v0, %v6599_v11 }
0x76a5   :  { %6906 = vmatmul.msk.f32.vlgmr.msrb.gmra.mxu1 %vm56_vm0, %v6550_v1 }
0x7722   :  { %v6571_v63 = vpop.f32.mrf.mxu1 }
0x7723   :  { %v6572_v23 = vadd.f32 %v8591_v12, %v6571_v63 }
0x7725   :  { %7141 = vtanh.f32 %v6572_v23 }
0x772b   :  { %v7142_v24 = vpop.eup %7141 }
0x772c   :  { %6907 = vmatmul.msk.f32.vlgmr.msrb.gmra.mxu3 %vm916_vm1, %v7142_v24 }
0x77af   :  { %v6595_v17 = vpop.f32.mrf.mxu3 }
0x77b0   :  { %v6596_v51 = vadd.f32 %v8602_v44, %v6595_v17 }
0x77b2   :  { %v6602_v18 = vadd.f32 %v6601_v61, %v6596_v51 }
0x77b4   :  { %v6603_v19 = vmul.f32 %v6602_v18, %v8763_v38 }
0x77b6   :  { %v6604_v22 = vadd.f32 %v6603_v19, %v6403_v48 }
0x77b8   :  { %6606 = vrot.lane.b32.xlu0 %v6604_v22, %s7214_s10  ;;  %6611 = vst.msk [vmem:[#allocation2] sm:$0xff] %vm56_vm0, %v6604_v22 }
0x782a   :  { %v6607_v12 = vpop.permute.xlu0 %6606 }
0x782b   :  { %6610 = vst.msk [vmem:[#allocation6] sm:$0xff] %vm6609_vm8, %v6607_v12 }
0x782c   :  { %6622 = dma.vmem_to_hbm [thread:$0]  %s6618_s12, 128, %s6620_s15, [#allocation4]  }
0x782d   :  { %7205 = dma.done.wait [#allocation4], 128  }
0x782e   :  { %7206 = vsyncadd [#allocation4], 4294967168 }
0x782f   :  { %6627 = vsyncpa [#allocation4], 1 }
0x7830   :  { %6628 = vsyncpa [#allocation5], 1 }

</bundles_post_ra>
